<compile_context>
chip_gen: v6e
topology: v6e:2x2x1
jax: 0.10.0
libtpu: 0.0.40
codegen_flags: <defaults>
</compile_context>

<pallas_src>
import numpy as np
import jax
import jax.numpy as jnp
from jax import lax
from jax.experimental import pallas as pl
from jax.experimental.pallas import tpu as pltpu


# ----------------------------- Pallas kernel --------------------------------
def rnn_forward_kernel(
    emb_ref,                                            # (T, B, E)
    w0f_ih_ref, w0f_hh_ref, b0f_ref,                    # layer0 fwd: (E,H),(H,H),(1,H)
    w0b_ih_ref, w0b_hh_ref, b0b_ref,                    # layer0 bwd
    w1f_ihf_ref, w1f_ihb_ref, w1f_hh_ref, b1f_ref,      # layer1 fwd: (H,H),(H,H),(H,H),(1,H)
    w1b_ihf_ref, w1b_ihb_ref, w1b_hh_ref, b1b_ref,      # layer1 bwd
    fcw_f_ref, fcw_b_ref, fcb_ref,                      # fc: (H,O),(H,O),(1,O)
    out_ref,                                            # (B, O)
    l0f_scr, l0b_scr,                                   # (T, B, H) layer-0 outputs
):
    T, B, _ = emb_ref.shape
    H = w0f_hh_ref.shape[0]
    f32 = jnp.float32

    def dot(a, b):
        return jnp.dot(a, b, preferred_element_type=f32)

    # ---- hoist layer-0 weights / biases out of the time loop ----
    w0f_ih = w0f_ih_ref[...]
    w0f_hh = w0f_hh_ref[...]
    w0b_ih = w0b_ih_ref[...]
    w0b_hh = w0b_hh_ref[...]
    b0f = jnp.broadcast_to(b0f_ref[...], (B, H))
    b0b = jnp.broadcast_to(b0b_ref[...], (B, H))

    zeros = jnp.zeros((B, H), f32)

    # ---- layer 0: fwd + bwd fused, h carried in registers ----
    def body0(t, carry):
        h_f, h_b = carry
        tr = T - 1 - t
        # input projections: no dependence on h -> off the serialized chain
        xf = dot(emb_ref[t], w0f_ih) + b0f
        xb = dot(emb_ref[tr], w0b_ih) + b0b
        h_f = jnp.tanh(xf + dot(h_f, w0f_hh))
        h_b = jnp.tanh(xb + dot(h_b, w0b_hh))
        l0f_scr[t] = h_f
        l0b_scr[tr] = h_b
        return h_f, h_b

    lax.fori_loop(0, T, body0, (zeros, zeros), unroll=True)

    # ---- hoist layer-1 weights / biases ----
    w1f_ihf = w1f_ihf_ref[...]
    w1f_ihb = w1f_ihb_ref[...]
    w1f_hh = w1f_hh_ref[...]
    w1b_ihf = w1b_ihf_ref[...]
    w1b_ihb = w1b_ihb_ref[...]
    w1b_hh = w1b_hh_ref[...]
    b1f = jnp.broadcast_to(b1f_ref[...], (B, H))
    b1b = jnp.broadcast_to(b1b_ref[...], (B, H))

    neg_inf = jnp.full((B, H), -jnp.inf, f32)

    # ---- layer 1: fwd + bwd fused, running max fused into the loop ----
    def body1(t, carry):
        h_f, h_b, m_f, m_b = carry
        tr = T - 1 - t
        xf = dot(l0f_scr[t], w1f_ihf) + dot(l0b_scr[t], w1f_ihb) + b1f
        xb = dot(l0f_scr[tr], w1b_ihf) + dot(l0b_scr[tr], w1b_ihb) + b1b
        h_f = jnp.tanh(xf + dot(h_f, w1f_hh))
        h_b = jnp.tanh(xb + dot(h_b, w1b_hh))
        m_f = jnp.maximum(m_f, h_f)
        m_b = jnp.maximum(m_b, h_b)
        return h_f, h_b, m_f, m_b

    _, _, m_f, m_b = lax.fori_loop(
        0, T, body1, (zeros, zeros, neg_inf, neg_inf), unroll=True
    )

    # ---- fc + sigmoid (pooled = running max over time) ----
    logits = dot(m_f, fcw_f_ref[...]) + dot(m_b, fcw_b_ref[...]) + fcb_ref[...]
    out_ref[...] = jax.nn.sigmoid(logits)


# ----------------------------- wrapper ---------------------------------------
def rnn_model_forward(tokens, params):
    """tokens: (B, T) int32.  Returns (B, output_dim) float32."""
    emb_table = params["embedding"]                       # (V, E)
    B, T = tokens.shape
    H = params["w_hh_l0_f"].shape[0]
    O = params["fc_w"].shape[0]

    # glue: embedding gather directly into time-major layout (no XLA transpose)
    embedded = jnp.take(emb_table, tokens.T, axis=0)      # (T, B, E)

    def combine_bias(bi, bh):
        return (bi + bh).reshape(1, -1).astype(jnp.float32)

    # glue: re-layout PyTorch-convention weights for the kernel
    kernel_inputs = [
        embedded,
        # layer 0 forward / backward
        params["w_ih_l0_f"].T, params["w_hh_l0_f"].T,
        combine_bias(params["b_ih_l0_f"], params["b_hh_l0_f"]),
        params["w_ih_l0_b"].T, params["w_hh_l0_b"].T,
        combine_bias(params["b_ih_l0_b"], params["b_hh_l0_b"]),
        # layer 1 forward (input weight split into fwd/bwd halves of the concat)
        params["w_ih_l1_f"][:, :H].T, params["w_ih_l1_f"][:, H:].T,
        params["w_hh_l1_f"].T,
        combine_bias(params["b_ih_l1_f"], params["b_hh_l1_f"]),
        # layer 1 backward
        params["w_ih_l1_b"][:, :H].T, params["w_ih_l1_b"][:, H:].T,
        params["w_hh_l1_b"].T,
        combine_bias(params["b_ih_l1_b"], params["b_hh_l1_b"]),
        # fc (split over the bidirectional concat) + bias
        params["fc_w"][:, :H].T, params["fc_w"][:, H:].T,
        params["fc_b"].reshape(1, -1),
    ]
    kernel_inputs = [jnp.asarray(a, jnp.float32) for a in kernel_inputs]

    vmem = pltpu.MemorySpace.VMEM
    out = pl.pallas_call(
        rnn_forward_kernel,
        out_shape=jax.ShapeDtypeStruct((B, O), jnp.float32),
        in_specs=[pl.BlockSpec(memory_space=vmem) for _ in kernel_inputs],
        out_specs=pl.BlockSpec(memory_space=vmem),
        scratch_shapes=[
            pltpu.VMEM((T, B, H), jnp.float32),   # layer-0 fwd outputs
            pltpu.VMEM((T, B, H), jnp.float32),   # layer-0 bwd outputs
        ],
    )(*kernel_inputs)
    return out


# ----------------------------- pure-JAX reference ----------------------------
def ref_forward(tokens, params):
    emb = jnp.take(params["embedding"], tokens, axis=0)   # (B, T, E)
    B, T, _ = emb.shape

    def run_dir(xseq, w_ih, w_hh, b_ih, b_hh, reverse):
        H = w_hh.shape[0]
        h = jnp.zeros((B, H), jnp.float32)
        outs = [None] * T
        order = range(T - 1, -1, -1) if reverse else range(T)
        for t in order:
            h = jnp.tanh(xseq[:, t] @ w_ih.T + h @ w_hh.T + b_ih + b_hh)
            outs[t] = h
        return jnp.stack(outs, axis=1)                    # (B, T, H)

    x = emb
    for l in ("l0", "l1"):
        of = run_dir(x, params[f"w_ih_{l}_f"], params[f"w_hh_{l}_f"],
                     params[f"b_ih_{l}_f"], params[f"b_hh_{l}_f"], reverse=False)
        ob = run_dir(x, params[f"w_ih_{l}_b"], params[f"w_hh_{l}_b"],
                     params[f"b_ih_{l}_b"], params[f"b_hh_{l}_b"], reverse=True)
        x = jnp.concatenate([of, ob], axis=-1)            # (B, T, 2H)

    pooled = jnp.max(x, axis=1)                           # (B, 2H)
    return jax.nn.sigmoid(pooled @ params["fc_w"].T + params["fc_b"])


# ----------------------------- parameter init --------------------------------
def init_params(key, vocab_size, embed_dim, hidden_dim, output_dim):
    keys = jax.random.split(key, 32)
    ki = iter(keys)
    u = lambda k, shape, s=0.2: jax.random.uniform(k, shape, jnp.float32, -s, s)

    p = {"embedding": jax.random.normal(next(ki), (vocab_size, embed_dim), jnp.float32)}
    H = hidden_dim
    for l, in_dim in (("l0", embed_dim), ("l1", 2 * hidden_dim)):
        for d in ("f", "b"):
            p[f"w_ih_{l}_{d}"] = u(next(ki), (H, in_dim))
            p[f"w_hh_{l}_{d}"] = u(next(ki), (H, H))
            p[f"b_ih_{l}_{d}"] = u(next(ki), (H,))
            p[f"b_hh_{l}_{d}"] = u(next(ki), (H,))
    p["fc_w"] = u(next(ki), (output_dim, 2 * H))
    p["fc_b"] = u(next(ki), (output_dim,))
    return p


# ----------------------------- main -------------------------------------------
if __name__ == "__main__":
    VOCAB, EMBED, HIDDEN, OUT = 64, 32, 32, 4
    B, T = 2, 8

    key = jax.random.PRNGKey(0)
    k_param, k_tok = jax.random.split(key)
    params = init_params(k_param, VOCAB, EMBED, HIDDEN, OUT)
    tokens = jax.random.randint(k_tok, (B, T), 0, VOCAB, dtype=jnp.int32)

    out = jax.block_until_ready(rnn_model_forward(tokens, params))
    ref = jax.block_until_ready(ref_forward(tokens, params))

    np.testing.assert_allclose(np.asarray(out), np.asarray(ref), rtol=1e-4, atol=1e-4)
    assert out.shape == (B, OUT)
    print("KERNEL_OK")
</pallas_src>

<mosaic_0001>
module attributes {stable_mosaic.version = 11 : i64} {
  func.func @rnn_forward_kernel(%arg0: memref<8x2x32xf32, #tpu.memory_space<vmem>>, %arg1: memref<32x32xf32, #tpu.memory_space<vmem>>, %arg2: memref<32x32xf32, #tpu.memory_space<vmem>>, %arg3: memref<1x32xf32, #tpu.memory_space<vmem>>, %arg4: memref<32x32xf32, #tpu.memory_space<vmem>>, %arg5: memref<32x32xf32, #tpu.memory_space<vmem>>, %arg6: memref<1x32xf32, #tpu.memory_space<vmem>>, %arg7: memref<32x32xf32, #tpu.memory_space<vmem>>, %arg8: memref<32x32xf32, #tpu.memory_space<vmem>>, %arg9: memref<32x32xf32, #tpu.memory_space<vmem>>, %arg10: memref<1x32xf32, #tpu.memory_space<vmem>>, %arg11: memref<32x32xf32, #tpu.memory_space<vmem>>, %arg12: memref<32x32xf32, #tpu.memory_space<vmem>>, %arg13: memref<32x32xf32, #tpu.memory_space<vmem>>, %arg14: memref<1x32xf32, #tpu.memory_space<vmem>>, %arg15: memref<32x4xf32, #tpu.memory_space<vmem>>, %arg16: memref<32x4xf32, #tpu.memory_space<vmem>>, %arg17: memref<1x4xf32, #tpu.memory_space<vmem>>, %arg18: memref<2x4xf32, #tpu.memory_space<vmem>>, %arg19: memref<8x2x32xf32, #tpu.memory_space<vmem>>, %arg20: memref<8x2x32xf32, #tpu.memory_space<vmem>>) attributes {dimension_semantics = [], scalar_prefetch = 0 : i64, scratch_operands = 2 : i64, tpu.core_type = #tpu.core_type<tc>} {
    %c0 = arith.constant 0 : index
    %c0_0 = arith.constant 0 : index
    %0 = vector.load %arg1[%c0, %c0_0] : memref<32x32xf32, #tpu.memory_space<vmem>>, vector<32x32xf32>
    %c0_1 = arith.constant 0 : index
    %c0_2 = arith.constant 0 : index
    %1 = vector.load %arg2[%c0_1, %c0_2] : memref<32x32xf32, #tpu.memory_space<vmem>>, vector<32x32xf32>
    %c0_3 = arith.constant 0 : index
    %c0_4 = arith.constant 0 : index
    %2 = vector.load %arg4[%c0_3, %c0_4] : memref<32x32xf32, #tpu.memory_space<vmem>>, vector<32x32xf32>
    %c0_5 = arith.constant 0 : index
    %c0_6 = arith.constant 0 : index
    %3 = vector.load %arg5[%c0_5, %c0_6] : memref<32x32xf32, #tpu.memory_space<vmem>>, vector<32x32xf32>
    %c0_7 = arith.constant 0 : index
    %c0_8 = arith.constant 0 : index
    %4 = vector.load %arg3[%c0_7, %c0_8] : memref<1x32xf32, #tpu.memory_space<vmem>>, vector<1x32xf32>
    %5 = vector.shape_cast %4 : vector<1x32xf32> to vector<1x32xf32>
    %6 = vector.broadcast %5 : vector<1x32xf32> to vector<2x32xf32>
    %c0_9 = arith.constant 0 : index
    %c0_10 = arith.constant 0 : index
    %7 = vector.load %arg6[%c0_9, %c0_10] : memref<1x32xf32, #tpu.memory_space<vmem>>, vector<1x32xf32>
    %8 = vector.shape_cast %7 : vector<1x32xf32> to vector<1x32xf32>
    %9 = vector.broadcast %8 : vector<1x32xf32> to vector<2x32xf32>
    %cst = arith.constant 0.000000e+00 : f32
    %10 = vector.broadcast %cst : f32 to vector<2x32xf32>
    %c0_i32 = arith.constant 0 : i32
    %c7_i32 = arith.constant 7 : i32
    %11 = arith.subi %c7_i32, %c0_i32 : i32
    %12 = arith.index_cast %c0_i32 : i32 to index
    %c0_11 = arith.constant 0 : index
    %c0_12 = arith.constant 0 : index
    %13 = vector.load %arg0[%12, %c0_11, %c0_12] : memref<8x2x32xf32, #tpu.memory_space<vmem>>, vector<1x2x32xf32>
    %14 = vector.shape_cast %13 : vector<1x2x32xf32> to vector<2x32xf32>
    %cst_13 = arith.constant dense<0.000000e+00> : vector<2x32xf32>
    %15 = tpu.matmul %14, %0, %cst_13 {dimension_numbers = #tpu.dot_dimension_numbers<[1], [0], [0], [1], [0, 0, 1, 1], [], []>} : vector<2x32xf32>, vector<32x32xf32>, vector<2x32xf32> -> vector<2x32xf32>
    %16 = arith.addf %15, %6 : vector<2x32xf32>
    %17 = arith.index_cast %11 : i32 to index
    %c0_14 = arith.constant 0 : index
    %c0_15 = arith.constant 0 : index
    %18 = vector.load %arg0[%17, %c0_14, %c0_15] : memref<8x2x32xf32, #tpu.memory_space<vmem>>, vector<1x2x32xf32>
    %19 = vector.shape_cast %18 : vector<1x2x32xf32> to vector<2x32xf32>
    %cst_16 = arith.constant dense<0.000000e+00> : vector<2x32xf32>
    %20 = tpu.matmul %19, %2, %cst_16 {dimension_numbers = #tpu.dot_dimension_numbers<[1], [0], [0], [1], [0, 0, 1, 1], [], []>} : vector<2x32xf32>, vector<32x32xf32>, vector<2x32xf32> -> vector<2x32xf32>
    %21 = arith.addf %20, %9 : vector<2x32xf32>
    %cst_17 = arith.constant dense<0.000000e+00> : vector<2x32xf32>
    %22 = tpu.matmul %10, %1, %cst_17 {dimension_numbers = #tpu.dot_dimension_numbers<[1], [0], [0], [1], [0, 0, 1, 1], [], []>} : vector<2x32xf32>, vector<32x32xf32>, vector<2x32xf32> -> vector<2x32xf32>
    %23 = arith.addf %16, %22 : vector<2x32xf32>
    %24 = math.tanh %23 : vector<2x32xf32>
    %cst_18 = arith.constant dense<0.000000e+00> : vector<2x32xf32>
    %25 = tpu.matmul %10, %3, %cst_18 {dimension_numbers = #tpu.dot_dimension_numbers<[1], [0], [0], [1], [0, 0, 1, 1], [], []>} : vector<2x32xf32>, vector<32x32xf32>, vector<2x32xf32> -> vector<2x32xf32>
    %26 = arith.addf %21, %25 : vector<2x32xf32>
    %27 = math.tanh %26 : vector<2x32xf32>
    %28 = arith.index_cast %c0_i32 : i32 to index
    %c0_19 = arith.constant 0 : index
    %c0_20 = arith.constant 0 : index
    %29 = vector.load %arg19[%28, %c0_19, %c0_20] : memref<8x2x32xf32, #tpu.memory_space<vmem>>, vector<1x2x32xf32>
    %30 = vector.shape_cast %29 : vector<1x2x32xf32> to vector<2x32xf32>
    %31 = vector.shape_cast %24 : vector<2x32xf32> to vector<1x2x32xf32>
    tpu.vector_store %arg19[%28, %c0_19, %c0_20], %31 {strides = array<i32>} : memref<8x2x32xf32, #tpu.memory_space<vmem>>, vector<1x2x32xf32>,
    %32 = arith.index_cast %11 : i32 to index
    %c0_21 = arith.constant 0 : index
    %c0_22 = arith.constant 0 : index
    %33 = vector.load %arg20[%32, %c0_21, %c0_22] : memref<8x2x32xf32, #tpu.memory_space<vmem>>, vector<1x2x32xf32>
    %34 = vector.shape_cast %33 : vector<1x2x32xf32> to vector<2x32xf32>
    %35 = vector.shape_cast %27 : vector<2x32xf32> to vector<1x2x32xf32>
    tpu.vector_store %arg20[%32, %c0_21, %c0_22], %35 {strides = array<i32>} : memref<8x2x32xf32, #tpu.memory_space<vmem>>, vector<1x2x32xf32>,
    %c1_i32 = arith.constant 1 : i32
    %c7_i32_23 = arith.constant 7 : i32
    %36 = arith.subi %c7_i32_23, %c1_i32 : i32
    %37 = arith.index_cast %c1_i32 : i32 to index
    %c0_24 = arith.constant 0 : index
    %c0_25 = arith.constant 0 : index
    %38 = vector.load %arg0[%37, %c0_24, %c0_25] : memref<8x2x32xf32, #tpu.memory_space<vmem>>, vector<1x2x32xf32>
    %39 = vector.shape_cast %38 : vector<1x2x32xf32> to vector<2x32xf32>
    %cst_26 = arith.constant dense<0.000000e+00> : vector<2x32xf32>
    %40 = tpu.matmul %39, %0, %cst_26 {dimension_numbers = #tpu.dot_dimension_numbers<[1], [0], [0], [1], [0, 0, 1, 1], [], []>} : vector<2x32xf32>, vector<32x32xf32>, vector<2x32xf32> -> vector<2x32xf32>
    %41 = arith.addf %40, %6 : vector<2x32xf32>
    %42 = arith.index_cast %36 : i32 to index
    %c0_27 = arith.constant 0 : index
    %c0_28 = arith.constant 0 : index
    %43 = vector.load %arg0[%42, %c0_27, %c0_28] : memref<8x2x32xf32, #tpu.memory_space<vmem>>, vector<1x2x32xf32>
    %44 = vector.shape_cast %43 : vector<1x2x32xf32> to vector<2x32xf32>
    %cst_29 = arith.constant dense<0.000000e+00> : vector<2x32xf32>
    %45 = tpu.matmul %44, %2, %cst_29 {dimension_numbers = #tpu.dot_dimension_numbers<[1], [0], [0], [1], [0, 0, 1, 1], [], []>} : vector<2x32xf32>, vector<32x32xf32>, vector<2x32xf32> -> vector<2x32xf32>
    %46 = arith.addf %45, %9 : vector<2x32xf32>
    %cst_30 = arith.constant dense<0.000000e+00> : vector<2x32xf32>
    %47 = tpu.matmul %24, %1, %cst_30 {dimension_numbers = #tpu.dot_dimension_numbers<[1], [0], [0], [1], [0, 0, 1, 1], [], []>} : vector<2x32xf32>, vector<32x32xf32>, vector<2x32xf32> -> vector<2x32xf32>
    %48 = arith.addf %41, %47 : vector<2x32xf32>
    %49 = math.tanh %48 : vector<2x32xf32>
    %cst_31 = arith.constant dense<0.000000e+00> : vector<2x32xf32>
    %50 = tpu.matmul %27, %3, %cst_31 {dimension_numbers = #tpu.dot_dimension_numbers<[1], [0], [0], [1], [0, 0, 1, 1], [], []>} : vector<2x32xf32>, vector<32x32xf32>, vector<2x32xf32> -> vector<2x32xf32>
    %51 = arith.addf %46, %50 : vector<2x32xf32>
    %52 = math.tanh %51 : vector<2x32xf32>
    %53 = arith.index_cast %c1_i32 : i32 to index
    %c0_32 = arith.constant 0 : index
    %c0_33 = arith.constant 0 : index
    %54 = vector.load %arg19[%53, %c0_32, %c0_33] : memref<8x2x32xf32, #tpu.memory_space<vmem>>, vector<1x2x32xf32>
    %55 = vector.shape_cast %54 : vector<1x2x32xf32> to vector<2x32xf32>
    %56 = vector.shape_cast %49 : vector<2x32xf32> to vector<1x2x32xf32>
    tpu.vector_store %arg19[%53, %c0_32, %c0_33], %56 {strides = array<i32>} : memref<8x2x32xf32, #tpu.memory_space<vmem>>, vector<1x2x32xf32>,
    %57 = arith.index_cast %36 : i32 to index
    %c0_34 = arith.constant 0 : index
    %c0_35 = arith.constant 0 : index
    %58 = vector.load %arg20[%57, %c0_34, %c0_35] : memref<8x2x32xf32, #tpu.memory_space<vmem>>, vector<1x2x32xf32>
    %59 = vector.shape_cast %58 : vector<1x2x32xf32> to vector<2x32xf32>
    %60 = vector.shape_cast %52 : vector<2x32xf32> to vector<1x2x32xf32>
    tpu.vector_store %arg20[%57, %c0_34, %c0_35], %60 {strides = array<i32>} : memref<8x2x32xf32, #tpu.memory_space<vmem>>, vector<1x2x32xf32>,
    %c2_i32 = arith.constant 2 : i32
    %c7_i32_36 = arith.constant 7 : i32
    %61 = arith.subi %c7_i32_36, %c2_i32 : i32
    %62 = arith.index_cast %c2_i32 : i32 to index
    %c0_37 = arith.constant 0 : index
    %c0_38 = arith.constant 0 : index
    %63 = vector.load %arg0[%62, %c0_37, %c0_38] : memref<8x2x32xf32, #tpu.memory_space<vmem>>, vector<1x2x32xf32>
    %64 = vector.shape_cast %63 : vector<1x2x32xf32> to vector<2x32xf32>
    %cst_39 = arith.constant dense<0.000000e+00> : vector<2x32xf32>
    %65 = tpu.matmul %64, %0, %cst_39 {dimension_numbers = #tpu.dot_dimension_numbers<[1], [0], [0], [1], [0, 0, 1, 1], [], []>} : vector<2x32xf32>, vector<32x32xf32>, vector<2x32xf32> -> vector<2x32xf32>
    %66 = arith.addf %65, %6 : vector<2x32xf32>
    %67 = arith.index_cast %61 : i32 to index
    %c0_40 = arith.constant 0 : index
    %c0_41 = arith.constant 0 : index
    %68 = vector.load %arg0[%67, %c0_40, %c0_41] : memref<8x2x32xf32, #tpu.memory_space<vmem>>, vector<1x2x32xf32>
    %69 = vector.shape_cast %68 : vector<1x2x32xf32> to vector<2x32xf32>
    %cst_42 = arith.constant dense<0.000000e+00> : vector<2x32xf32>
    %70 = tpu.matmul %69, %2, %cst_42 {dimension_numbers = #tpu.dot_dimension_numbers<[1], [0], [0], [1], [0, 0, 1, 1], [], []>} : vector<2x32xf32>, vector<32x32xf32>, vector<2x32xf32> -> vector<2x32xf32>
    %71 = arith.addf %70, %9 : vector<2x32xf32>
    %cst_43 = arith.constant dense<0.000000e+00> : vector<2x32xf32>
    %72 = tpu.matmul %49, %1, %cst_43 {dimension_numbers = #tpu.dot_dimension_numbers<[1], [0], [0], [1], [0, 0, 1, 1], [], []>} : vector<2x32xf32>, vector<32x32xf32>, vector<2x32xf32> -> vector<2x32xf32>
    %73 = arith.addf %66, %72 : vector<2x32xf32>
    %74 = math.tanh %73 : vector<2x32xf32>
    %cst_44 = arith.constant dense<0.000000e+00> : vector<2x32xf32>
    %75 = tpu.matmul %52, %3, %cst_44 {dimension_numbers = #tpu.dot_dimension_numbers<[1], [0], [0], [1], [0, 0, 1, 1], [], []>} : vector<2x32xf32>, vector<32x32xf32>, vector<2x32xf32> -> vector<2x32xf32>
    %76 = arith.addf %71, %75 : vector<2x32xf32>
    %77 = math.tanh %76 : vector<2x32xf32>
    %78 = arith.index_cast %c2_i32 : i32 to index
    %c0_45 = arith.constant 0 : index
    %c0_46 = arith.constant 0 : index
    %79 = vector.load %arg19[%78, %c0_45, %c0_46] : memref<8x2x32xf32, #tpu.memory_space<vmem>>, vector<1x2x32xf32>
    %80 = vector.shape_cast %79 : vector<1x2x32xf32> to vector<2x32xf32>
    %81 = vector.shape_cast %74 : vector<2x32xf32> to vector<1x2x32xf32>
    tpu.vector_store %arg19[%78, %c0_45, %c0_46], %81 {strides = array<i32>} : memref<8x2x32xf32, #tpu.memory_space<vmem>>, vector<1x2x32xf32>,
    %82 = arith.index_cast %61 : i32 to index
    %c0_47 = arith.constant 0 : index
    %c0_48 = arith.constant 0 : index
    %83 = vector.load %arg20[%82, %c0_47, %c0_48] : memref<8x2x32xf32, #tpu.memory_space<vmem>>, vector<1x2x32xf32>
    %84 = vector.shape_cast %83 : vector<1x2x32xf32> to vector<2x32xf32>
    %85 = vector.shape_cast %77 : vector<2x32xf32> to vector<1x2x32xf32>
    tpu.vector_store %arg20[%82, %c0_47, %c0_48], %85 {strides = array<i32>} : memref<8x2x32xf32, #tpu.memory_space<vmem>>, vector<1x2x32xf32>,
    %c3_i32 = arith.constant 3 : i32
    %c7_i32_49 = arith.constant 7 : i32
    %86 = arith.subi %c7_i32_49, %c3_i32 : i32
    %87 = arith.index_cast %c3_i32 : i32 to index
    %c0_50 = arith.constant 0 : index
    %c0_51 = arith.constant 0 : index
    %88 = vector.load %arg0[%87, %c0_50, %c0_51] : memref<8x2x32xf32, #tpu.memory_space<vmem>>, vector<1x2x32xf32>
    %89 = vector.shape_cast %88 : vector<1x2x32xf32> to vector<2x32xf32>
    %cst_52 = arith.constant dense<0.000000e+00> : vector<2x32xf32>
    %90 = tpu.matmul %89, %0, %cst_52 {dimension_numbers = #tpu.dot_dimension_numbers<[1], [0], [0], [1], [0, 0, 1, 1], [], []>} : vector<2x32xf32>, vector<32x32xf32>, vector<2x32xf32> -> vector<2x32xf32>
    %91 = arith.addf %90, %6 : vector<2x32xf32>
    %92 = arith.index_cast %86 : i32 to index
    %c0_53 = arith.constant 0 : index
    %c0_54 = arith.constant 0 : index
    %93 = vector.load %arg0[%92, %c0_53, %c0_54] : memref<8x2x32xf32, #tpu.memory_space<vmem>>, vector<1x2x32xf32>
    %94 = vector.shape_cast %93 : vector<1x2x32xf32> to vector<2x32xf32>
    %cst_55 = arith.constant dense<0.000000e+00> : vector<2x32xf32>
    %95 = tpu.matmul %94, %2, %cst_55 {dimension_numbers = #tpu.dot_dimension_numbers<[1], [0], [0], [1], [0, 0, 1, 1], [], []>} : vector<2x32xf32>, vector<32x32xf32>, vector<2x32xf32> -> vector<2x32xf32>
    %96 = arith.addf %95, %9 : vector<2x32xf32>
    %cst_56 = arith.constant dense<0.000000e+00> : vector<2x32xf32>
    %97 = tpu.matmul %74, %1, %cst_56 {dimension_numbers = #tpu.dot_dimension_numbers<[1], [0], [0], [1], [0, 0, 1, 1], [], []>} : vector<2x32xf32>, vector<32x32xf32>, vector<2x32xf32> -> vector<2x32xf32>
    %98 = arith.addf %91, %97 : vector<2x32xf32>
    %99 = math.tanh %98 : vector<2x32xf32>
    %cst_57 = arith.constant dense<0.000000e+00> : vector<2x32xf32>
    %100 = tpu.matmul %77, %3, %cst_57 {dimension_numbers = #tpu.dot_dimension_numbers<[1], [0], [0], [1], [0, 0, 1, 1], [], []>} : vector<2x32xf32>, vector<32x32xf32>, vector<2x32xf32> -> vector<2x32xf32>
    %101 = arith.addf %96, %100 : vector<2x32xf32>
    %102 = math.tanh %101 : vector<2x32xf32>
    %103 = arith.index_cast %c3_i32 : i32 to index
    %c0_58 = arith.constant 0 : index
    %c0_59 = arith.constant 0 : index
    %104 = vector.load %arg19[%103, %c0_58, %c0_59] : memref<8x2x32xf32, #tpu.memory_space<vmem>>, vector<1x2x32xf32>
    %105 = vector.shape_cast %104 : vector<1x2x32xf32> to vector<2x32xf32>
    %106 = vector.shape_cast %99 : vector<2x32xf32> to vector<1x2x32xf32>
    tpu.vector_store %arg19[%103, %c0_58, %c0_59], %106 {strides = array<i32>} : memref<8x2x32xf32, #tpu.memory_space<vmem>>, vector<1x2x32xf32>,
    %107 = arith.index_cast %86 : i32 to index
    %c0_60 = arith.constant 0 : index
    %c0_61 = arith.constant 0 : index
    %108 = vector.load %arg20[%107, %c0_60, %c0_61] : memref<8x2x32xf32, #tpu.memory_space<vmem>>, vector<1x2x32xf32>
    %109 = vector.shape_cast %108 : vector<1x2x32xf32> to vector<2x32xf32>
    %110 = vector.shape_cast %102 : vector<2x32xf32> to vector<1x2x32xf32>
    tpu.vector_store %arg20[%107, %c0_60, %c0_61], %110 {strides = array<i32>} : memref<8x2x32xf32, #tpu.memory_space<vmem>>, vector<1x2x32xf32>,
    %c4_i32 = arith.constant 4 : i32
    %c7_i32_62 = arith.constant 7 : i32
    %111 = arith.subi %c7_i32_62, %c4_i32 : i32
    %112 = arith.index_cast %c4_i32 : i32 to index
    %c0_63 = arith.constant 0 : index
    %c0_64 = arith.constant 0 : index
    %113 = vector.load %arg0[%112, %c0_63, %c0_64] : memref<8x2x32xf32, #tpu.memory_space<vmem>>, vector<1x2x32xf32>
    %114 = vector.shape_cast %113 : vector<1x2x32xf32> to vector<2x32xf32>
    %cst_65 = arith.constant dense<0.000000e+00> : vector<2x32xf32>
    %115 = tpu.matmul %114, %0, %cst_65 {dimension_numbers = #tpu.dot_dimension_numbers<[1], [0], [0], [1], [0, 0, 1, 1], [], []>} : vector<2x32xf32>, vector<32x32xf32>, vector<2x32xf32> -> vector<2x32xf32>
    %116 = arith.addf %115, %6 : vector<2x32xf32>
    %117 = arith.index_cast %111 : i32 to index
    %c0_66 = arith.constant 0 : index
    %c0_67 = arith.constant 0 : index
    %118 = vector.load %arg0[%117, %c0_66, %c0_67] : memref<8x2x32xf32, #tpu.memory_space<vmem>>, vector<1x2x32xf32>
    %119 = vector.shape_cast %118 : vector<1x2x32xf32> to vector<2x32xf32>
    %cst_68 = arith.constant dense<0.000000e+00> : vector<2x32xf32>
    %120 = tpu.matmul %119, %2, %cst_68 {dimension_numbers = #tpu.dot_dimension_numbers<[1], [0], [0], [1], [0, 0, 1, 1], [], []>} : vector<2x32xf32>, vector<32x32xf32>, vector<2x32xf32> -> vector<2x32xf32>
    %121 = arith.addf %120, %9 : vector<2x32xf32>
    %cst_69 = arith.constant dense<0.000000e+00> : vector<2x32xf32>
    %122 = tpu.matmul %99, %1, %cst_69 {dimension_numbers = #tpu.dot_dimension_numbers<[1], [0], [0], [1], [0, 0, 1, 1], [], []>} : vector<2x32xf32>, vector<32x32xf32>, vector<2x32xf32> -> vector<2x32xf32>
    %123 = arith.addf %116, %122 : vector<2x32xf32>
    %124 = math.tanh %123 : vector<2x32xf32>
    %cst_70 = arith.constant dense<0.000000e+00> : vector<2x32xf32>
    %125 = tpu.matmul %102, %3, %cst_70 {dimension_numbers = #tpu.dot_dimension_numbers<[1], [0], [0], [1], [0, 0, 1, 1], [], []>} : vector<2x32xf32>, vector<32x32xf32>, vector<2x32xf32> -> vector<2x32xf32>
    %126 = arith.addf %121, %125 : vector<2x32xf32>
    %127 = math.tanh %126 : vector<2x32xf32>
    %128 = arith.index_cast %c4_i32 : i32 to index
    %c0_71 = arith.constant 0 : index
    %c0_72 = arith.constant 0 : index
    %129 = vector.load %arg19[%128, %c0_71, %c0_72] : memref<8x2x32xf32, #tpu.memory_space<vmem>>, vector<1x2x32xf32>
    %130 = vector.shape_cast %129 : vector<1x2x32xf32> to vector<2x32xf32>
    %131 = vector.shape_cast %124 : vector<2x32xf32> to vector<1x2x32xf32>
    tpu.vector_store %arg19[%128, %c0_71, %c0_72], %131 {strides = array<i32>} : memref<8x2x32xf32, #tpu.memory_space<vmem>>, vector<1x2x32xf32>,
    %132 = arith.index_cast %111 : i32 to index
    %c0_73 = arith.constant 0 : index
    %c0_74 = arith.constant 0 : index
    %133 = vector.load %arg20[%132, %c0_73, %c0_74] : memref<8x2x32xf32, #tpu.memory_space<vmem>>, vector<1x2x32xf32>
    %134 = vector.shape_cast %133 : vector<1x2x32xf32> to vector<2x32xf32>
    %135 = vector.shape_cast %127 : vector<2x32xf32> to vector<1x2x32xf32>
    tpu.vector_store %arg20[%132, %c0_73, %c0_74], %135 {strides = array<i32>} : memref<8x2x32xf32, #tpu.memory_space<vmem>>, vector<1x2x32xf32>,
    %c5_i32 = arith.constant 5 : i32
    %c7_i32_75 = arith.constant 7 : i32
    %136 = arith.subi %c7_i32_75, %c5_i32 : i32
    %137 = arith.index_cast %c5_i32 : i32 to index
    %c0_76 = arith.constant 0 : index
    %c0_77 = arith.constant 0 : index
    %138 = vector.load %arg0[%137, %c0_76, %c0_77] : memref<8x2x32xf32, #tpu.memory_space<vmem>>, vector<1x2x32xf32>
    %139 = vector.shape_cast %138 : vector<1x2x32xf32> to vector<2x32xf32>
    %cst_78 = arith.constant dense<0.000000e+00> : vector<2x32xf32>
    %140 = tpu.matmul %139, %0, %cst_78 {dimension_numbers = #tpu.dot_dimension_numbers<[1], [0], [0], [1], [0, 0, 1, 1], [], []>} : vector<2x32xf32>, vector<32x32xf32>, vector<2x32xf32> -> vector<2x32xf32>
    %141 = arith.addf %140, %6 : vector<2x32xf32>
    %142 = arith.index_cast %136 : i32 to index
    %c0_79 = arith.constant 0 : index
    %c0_80 = arith.constant 0 : index
    %143 = vector.load %arg0[%142, %c0_79, %c0_80] : memref<8x2x32xf32, #tpu.memory_space<vmem>>, vector<1x2x32xf32>
    %144 = vector.shape_cast %143 : vector<1x2x32xf32> to vector<2x32xf32>
    %cst_81 = arith.constant dense<0.000000e+00> : vector<2x32xf32>
    %145 = tpu.matmul %144, %2, %cst_81 {dimension_numbers = #tpu.dot_dimension_numbers<[1], [0], [0], [1], [0, 0, 1, 1], [], []>} : vector<2x32xf32>, vector<32x32xf32>, vector<2x32xf32> -> vector<2x32xf32>
    %146 = arith.addf %145, %9 : vector<2x32xf32>
    %cst_82 = arith.constant dense<0.000000e+00> : vector<2x32xf32>
    %147 = tpu.matmul %124, %1, %cst_82 {dimension_numbers = #tpu.dot_dimension_numbers<[1], [0], [0], [1], [0, 0, 1, 1], [], []>} : vector<2x32xf32>, vector<32x32xf32>, vector<2x32xf32> -> vector<2x32xf32>
    %148 = arith.addf %141, %147 : vector<2x32xf32>
    %149 = math.tanh %148 : vector<2x32xf32>
    %cst_83 = arith.constant dense<0.000000e+00> : vector<2x32xf32>
    %150 = tpu.matmul %127, %3, %cst_83 {dimension_numbers = #tpu.dot_dimension_numbers<[1], [0], [0], [1], [0, 0, 1, 1], [], []>} : vector<2x32xf32>, vector<32x32xf32>, vector<2x32xf32> -> vector<2x32xf32>
    %151 = arith.addf %146, %150 : vector<2x32xf32>
    %152 = math.tanh %151 : vector<2x32xf32>
    %153 = arith.index_cast %c5_i32 : i32 to index
    %c0_84 = arith.constant 0 : index
    %c0_85 = arith.constant 0 : index
    %154 = vector.load %arg19[%153, %c0_84, %c0_85] : memref<8x2x32xf32, #tpu.memory_space<vmem>>, vector<1x2x32xf32>
    %155 = vector.shape_cast %154 : vector<1x2x32xf32> to vector<2x32xf32>
    %156 = vector.shape_cast %149 : vector<2x32xf32> to vector<1x2x32xf32>
    tpu.vector_store %arg19[%153, %c0_84, %c0_85], %156 {strides = array<i32>} : memref<8x2x32xf32, #tpu.memory_space<vmem>>, vector<1x2x32xf32>,
    %157 = arith.index_cast %136 : i32 to index
    %c0_86 = arith.constant 0 : index
    %c0_87 = arith.constant 0 : index
    %158 = vector.load %arg20[%157, %c0_86, %c0_87] : memref<8x2x32xf32, #tpu.memory_space<vmem>>, vector<1x2x32xf32>
    %159 = vector.shape_cast %158 : vector<1x2x32xf32> to vector<2x32xf32>
    %160 = vector.shape_cast %152 : vector<2x32xf32> to vector<1x2x32xf32>
    tpu.vector_store %arg20[%157, %c0_86, %c0_87], %160 {strides = array<i32>} : memref<8x2x32xf32, #tpu.memory_space<vmem>>, vector<1x2x32xf32>,
    %c6_i32 = arith.constant 6 : i32
    %c7_i32_88 = arith.constant 7 : i32
    %161 = arith.subi %c7_i32_88, %c6_i32 : i32
    %162 = arith.index_cast %c6_i32 : i32 to index
    %c0_89 = arith.constant 0 : index
    %c0_90 = arith.constant 0 : index
    %163 = vector.load %arg0[%162, %c0_89, %c0_90] : memref<8x2x32xf32, #tpu.memory_space<vmem>>, vector<1x2x32xf32>
    %164 = vector.shape_cast %163 : vector<1x2x32xf32> to vector<2x32xf32>
    %cst_91 = arith.constant dense<0.000000e+00> : vector<2x32xf32>
    %165 = tpu.matmul %164, %0, %cst_91 {dimension_numbers = #tpu.dot_dimension_numbers<[1], [0], [0], [1], [0, 0, 1, 1], [], []>} : vector<2x32xf32>, vector<32x32xf32>, vector<2x32xf32> -> vector<2x32xf32>
    %166 = arith.addf %165, %6 : vector<2x32xf32>
    %167 = arith.index_cast %161 : i32 to index
    %c0_92 = arith.constant 0 : index
    %c0_93 = arith.constant 0 : index
    %168 = vector.load %arg0[%167, %c0_92, %c0_93] : memref<8x2x32xf32, #tpu.memory_space<vmem>>, vector<1x2x32xf32>
    %169 = vector.shape_cast %168 : vector<1x2x32xf32> to vector<2x32xf32>
    %cst_94 = arith.constant dense<0.000000e+00> : vector<2x32xf32>
    %170 = tpu.matmul %169, %2, %cst_94 {dimension_numbers = #tpu.dot_dimension_numbers<[1], [0], [0], [1], [0, 0, 1, 1], [], []>} : vector<2x32xf32>, vector<32x32xf32>, vector<2x32xf32> -> vector<2x32xf32>
    %171 = arith.addf %170, %9 : vector<2x32xf32>
    %cst_95 = arith.constant dense<0.000000e+00> : vector<2x32xf32>
    %172 = tpu.matmul %149, %1, %cst_95 {dimension_numbers = #tpu.dot_dimension_numbers<[1], [0], [0], [1], [0, 0, 1, 1], [], []>} : vector<2x32xf32>, vector<32x32xf32>, vector<2x32xf32> -> vector<2x32xf32>
    %173 = arith.addf %166, %172 : vector<2x32xf32>
    %174 = math.tanh %173 : vector<2x32xf32>
    %cst_96 = arith.constant dense<0.000000e+00> : vector<2x32xf32>
    %175 = tpu.matmul %152, %3, %cst_96 {dimension_numbers = #tpu.dot_dimension_numbers<[1], [0], [0], [1], [0, 0, 1, 1], [], []>} : vector<2x32xf32>, vector<32x32xf32>, vector<2x32xf32> -> vector<2x32xf32>
    %176 = arith.addf %171, %175 : vector<2x32xf32>
    %177 = math.tanh %176 : vector<2x32xf32>
    %178 = arith.index_cast %c6_i32 : i32 to index
    %c0_97 = arith.constant 0 : index
    %c0_98 = arith.constant 0 : index
    %179 = vector.load %arg19[%178, %c0_97, %c0_98] : memref<8x2x32xf32, #tpu.memory_space<vmem>>, vector<1x2x32xf32>
    %180 = vector.shape_cast %179 : vector<1x2x32xf32> to vector<2x32xf32>
    %181 = vector.shape_cast %174 : vector<2x32xf32> to vector<1x2x32xf32>
    tpu.vector_store %arg19[%178, %c0_97, %c0_98], %181 {strides = array<i32>} : memref<8x2x32xf32, #tpu.memory_space<vmem>>, vector<1x2x32xf32>,
    %182 = arith.index_cast %161 : i32 to index
    %c0_99 = arith.constant 0 : index
    %c0_100 = arith.constant 0 : index
    %183 = vector.load %arg20[%182, %c0_99, %c0_100] : memref<8x2x32xf32, #tpu.memory_space<vmem>>, vector<1x2x32xf32>
    %184 = vector.shape_cast %183 : vector<1x2x32xf32> to vector<2x32xf32>
    %185 = vector.shape_cast %177 : vector<2x32xf32> to vector<1x2x32xf32>
    tpu.vector_store %arg20[%182, %c0_99, %c0_100], %185 {strides = array<i32>} : memref<8x2x32xf32, #tpu.memory_space<vmem>>, vector<1x2x32xf32>,
    %c7_i32_101 = arith.constant 7 : i32
    %c7_i32_102 = arith.constant 7 : i32
    %186 = arith.subi %c7_i32_102, %c7_i32_101 : i32
    %187 = arith.index_cast %c7_i32_101 : i32 to index
    %c0_103 = arith.constant 0 : index
    %c0_104 = arith.constant 0 : index
    %188 = vector.load %arg0[%187, %c0_103, %c0_104] : memref<8x2x32xf32, #tpu.memory_space<vmem>>, vector<1x2x32xf32>
    %189 = vector.shape_cast %188 : vector<1x2x32xf32> to vector<2x32xf32>
    %cst_105 = arith.constant dense<0.000000e+00> : vector<2x32xf32>
    %190 = tpu.matmul %189, %0, %cst_105 {dimension_numbers = #tpu.dot_dimension_numbers<[1], [0], [0], [1], [0, 0, 1, 1], [], []>} : vector<2x32xf32>, vector<32x32xf32>, vector<2x32xf32> -> vector<2x32xf32>
    %191 = arith.addf %190, %6 : vector<2x32xf32>
    %192 = arith.index_cast %186 : i32 to index
    %c0_106 = arith.constant 0 : index
    %c0_107 = arith.constant 0 : index
    %193 = vector.load %arg0[%192, %c0_106, %c0_107] : memref<8x2x32xf32, #tpu.memory_space<vmem>>, vector<1x2x32xf32>
    %194 = vector.shape_cast %193 : vector<1x2x32xf32> to vector<2x32xf32>
    %cst_108 = arith.constant dense<0.000000e+00> : vector<2x32xf32>
    %195 = tpu.matmul %194, %2, %cst_108 {dimension_numbers = #tpu.dot_dimension_numbers<[1], [0], [0], [1], [0, 0, 1, 1], [], []>} : vector<2x32xf32>, vector<32x32xf32>, vector<2x32xf32> -> vector<2x32xf32>
    %196 = arith.addf %195, %9 : vector<2x32xf32>
    %cst_109 = arith.constant dense<0.000000e+00> : vector<2x32xf32>
    %197 = tpu.matmul %174, %1, %cst_109 {dimension_numbers = #tpu.dot_dimension_numbers<[1], [0], [0], [1], [0, 0, 1, 1], [], []>} : vector<2x32xf32>, vector<32x32xf32>, vector<2x32xf32> -> vector<2x32xf32>
    %198 = arith.addf %191, %197 : vector<2x32xf32>
    %199 = math.tanh %198 : vector<2x32xf32>
    %cst_110 = arith.constant dense<0.000000e+00> : vector<2x32xf32>
    %200 = tpu.matmul %177, %3, %cst_110 {dimension_numbers = #tpu.dot_dimension_numbers<[1], [0], [0], [1], [0, 0, 1, 1], [], []>} : vector<2x32xf32>, vector<32x32xf32>, vector<2x32xf32> -> vector<2x32xf32>
    %201 = arith.addf %196, %200 : vector<2x32xf32>
    %202 = math.tanh %201 : vector<2x32xf32>
    %203 = arith.index_cast %c7_i32_101 : i32 to index
    %c0_111 = arith.constant 0 : index
    %c0_112 = arith.constant 0 : index
    %204 = vector.load %arg19[%203, %c0_111, %c0_112] : memref<8x2x32xf32, #tpu.memory_space<vmem>>, vector<1x2x32xf32>
    %205 = vector.shape_cast %204 : vector<1x2x32xf32> to vector<2x32xf32>
    %206 = vector.shape_cast %199 : vector<2x32xf32> to vector<1x2x32xf32>
    tpu.vector_store %arg19[%203, %c0_111, %c0_112], %206 {strides = array<i32>} : memref<8x2x32xf32, #tpu.memory_space<vmem>>, vector<1x2x32xf32>,
    %207 = arith.index_cast %186 : i32 to index
    %c0_113 = arith.constant 0 : index
    %c0_114 = arith.constant 0 : index
    %208 = vector.load %arg20[%207, %c0_113, %c0_114] : memref<8x2x32xf32, #tpu.memory_space<vmem>>, vector<1x2x32xf32>
    %209 = vector.shape_cast %208 : vector<1x2x32xf32> to vector<2x32xf32>
    %210 = vector.shape_cast %202 : vector<2x32xf32> to vector<1x2x32xf32>
    tpu.vector_store %arg20[%207, %c0_113, %c0_114], %210 {strides = array<i32>} : memref<8x2x32xf32, #tpu.memory_space<vmem>>, vector<1x2x32xf32>,
    %c8_i32 = arith.constant 8 : i32
    %c0_115 = arith.constant 0 : index
    %c0_116 = arith.constant 0 : index
    %211 = vector.load %arg7[%c0_115, %c0_116] : memref<32x32xf32, #tpu.memory_space<vmem>>, vector<32x32xf32>
    %c0_117 = arith.constant 0 : index
    %c0_118 = arith.constant 0 : index
    %212 = vector.load %arg8[%c0_117, %c0_118] : memref<32x32xf32, #tpu.memory_space<vmem>>, vector<32x32xf32>
    %c0_119 = arith.constant 0 : index
    %c0_120 = arith.constant 0 : index
    %213 = vector.load %arg9[%c0_119, %c0_120] : memref<32x32xf32, #tpu.memory_space<vmem>>, vector<32x32xf32>
    %c0_121 = arith.constant 0 : index
    %c0_122 = arith.constant 0 : index
    %214 = vector.load %arg11[%c0_121, %c0_122] : memref<32x32xf32, #tpu.memory_space<vmem>>, vector<32x32xf32>
    %c0_123 = arith.constant 0 : index
    %c0_124 = arith.constant 0 : index
    %215 = vector.load %arg12[%c0_123, %c0_124] : memref<32x32xf32, #tpu.memory_space<vmem>>, vector<32x32xf32>
    %c0_125 = arith.constant 0 : index
    %c0_126 = arith.constant 0 : index
    %216 = vector.load %arg13[%c0_125, %c0_126] : memref<32x32xf32, #tpu.memory_space<vmem>>, vector<32x32xf32>
    %c0_127 = arith.constant 0 : index
    %c0_128 = arith.constant 0 : index
    %217 = vector.load %arg10[%c0_127, %c0_128] : memref<1x32xf32, #tpu.memory_space<vmem>>, vector<1x32xf32>
    %218 = vector.shape_cast %217 : vector<1x32xf32> to vector<1x32xf32>
    %219 = vector.broadcast %218 : vector<1x32xf32> to vector<2x32xf32>
    %c0_129 = arith.constant 0 : index
    %c0_130 = arith.constant 0 : index
    %220 = vector.load %arg14[%c0_129, %c0_130] : memref<1x32xf32, #tpu.memory_space<vmem>>, vector<1x32xf32>
    %221 = vector.shape_cast %220 : vector<1x32xf32> to vector<1x32xf32>
    %222 = vector.broadcast %221 : vector<1x32xf32> to vector<2x32xf32>
    %cst_131 = arith.constant 0xFF800000 : f32
    %223 = vector.broadcast %cst_131 : f32 to vector<2x32xf32>
    %c0_i32_132 = arith.constant 0 : i32
    %c7_i32_133 = arith.constant 7 : i32
    %224 = arith.subi %c7_i32_133, %c0_i32_132 : i32
    %225 = arith.index_cast %c0_i32_132 : i32 to index
    %c0_134 = arith.constant 0 : index
    %c0_135 = arith.constant 0 : index
    %226 = vector.load %arg19[%225, %c0_134, %c0_135] : memref<8x2x32xf32, #tpu.memory_space<vmem>>, vector<1x2x32xf32>
    %227 = vector.shape_cast %226 : vector<1x2x32xf32> to vector<2x32xf32>
    %cst_136 = arith.constant dense<0.000000e+00> : vector<2x32xf32>
    %228 = tpu.matmul %227, %211, %cst_136 {dimension_numbers = #tpu.dot_dimension_numbers<[1], [0], [0], [1], [0, 0, 1, 1], [], []>} : vector<2x32xf32>, vector<32x32xf32>, vector<2x32xf32> -> vector<2x32xf32>
    %229 = arith.index_cast %c0_i32_132 : i32 to index
    %c0_137 = arith.constant 0 : index
    %c0_138 = arith.constant 0 : index
    %230 = vector.load %arg20[%229, %c0_137, %c0_138] : memref<8x2x32xf32, #tpu.memory_space<vmem>>, vector<1x2x32xf32>
    %231 = vector.shape_cast %230 : vector<1x2x32xf32> to vector<2x32xf32>
    %cst_139 = arith.constant dense<0.000000e+00> : vector<2x32xf32>
    %232 = tpu.matmul %231, %212, %cst_139 {dimension_numbers = #tpu.dot_dimension_numbers<[1], [0], [0], [1], [0, 0, 1, 1], [], []>} : vector<2x32xf32>, vector<32x32xf32>, vector<2x32xf32> -> vector<2x32xf32>
    %233 = arith.addf %228, %232 : vector<2x32xf32>
    %234 = arith.addf %233, %219 : vector<2x32xf32>
    %235 = arith.index_cast %224 : i32 to index
    %c0_140 = arith.constant 0 : index
    %c0_141 = arith.constant 0 : index
    %236 = vector.load %arg19[%235, %c0_140, %c0_141] : memref<8x2x32xf32, #tpu.memory_space<vmem>>, vector<1x2x32xf32>
    %237 = vector.shape_cast %236 : vector<1x2x32xf32> to vector<2x32xf32>
    %cst_142 = arith.constant dense<0.000000e+00> : vector<2x32xf32>
    %238 = tpu.matmul %237, %214, %cst_142 {dimension_numbers = #tpu.dot_dimension_numbers<[1], [0], [0], [1], [0, 0, 1, 1], [], []>} : vector<2x32xf32>, vector<32x32xf32>, vector<2x32xf32> -> vector<2x32xf32>
    %239 = arith.index_cast %224 : i32 to index
    %c0_143 = arith.constant 0 : index
    %c0_144 = arith.constant 0 : index
    %240 = vector.load %arg20[%239, %c0_143, %c0_144] : memref<8x2x32xf32, #tpu.memory_space<vmem>>, vector<1x2x32xf32>
    %241 = vector.shape_cast %240 : vector<1x2x32xf32> to vector<2x32xf32>
    %cst_145 = arith.constant dense<0.000000e+00> : vector<2x32xf32>
    %242 = tpu.matmul %241, %215, %cst_145 {dimension_numbers = #tpu.dot_dimension_numbers<[1], [0], [0], [1], [0, 0, 1, 1], [], []>} : vector<2x32xf32>, vector<32x32xf32>, vector<2x32xf32> -> vector<2x32xf32>
    %243 = arith.addf %238, %242 : vector<2x32xf32>
    %244 = arith.addf %243, %222 : vector<2x32xf32>
    %cst_146 = arith.constant dense<0.000000e+00> : vector<2x32xf32>
    %245 = tpu.matmul %10, %213, %cst_146 {dimension_numbers = #tpu.dot_dimension_numbers<[1], [0], [0], [1], [0, 0, 1, 1], [], []>} : vector<2x32xf32>, vector<32x32xf32>, vector<2x32xf32> -> vector<2x32xf32>
    %246 = arith.addf %234, %245 : vector<2x32xf32>
    %247 = math.tanh %246 : vector<2x32xf32>
    %cst_147 = arith.constant dense<0.000000e+00> : vector<2x32xf32>
    %248 = tpu.matmul %10, %216, %cst_147 {dimension_numbers = #tpu.dot_dimension_numbers<[1], [0], [0], [1], [0, 0, 1, 1], [], []>} : vector<2x32xf32>, vector<32x32xf32>, vector<2x32xf32> -> vector<2x32xf32>
    %249 = arith.addf %244, %248 : vector<2x32xf32>
    %250 = math.tanh %249 : vector<2x32xf32>
    %251 = arith.maximumf %223, %247 : vector<2x32xf32>
    %252 = arith.maximumf %223, %250 : vector<2x32xf32>
    %c1_i32_148 = arith.constant 1 : i32
    %c7_i32_149 = arith.constant 7 : i32
    %253 = arith.subi %c7_i32_149, %c1_i32_148 : i32
    %254 = arith.index_cast %c1_i32_148 : i32 to index
    %c0_150 = arith.constant 0 : index
    %c0_151 = arith.constant 0 : index
    %255 = vector.load %arg19[%254, %c0_150, %c0_151] : memref<8x2x32xf32, #tpu.memory_space<vmem>>, vector<1x2x32xf32>
    %256 = vector.shape_cast %255 : vector<1x2x32xf32> to vector<2x32xf32>
    %cst_152 = arith.constant dense<0.000000e+00> : vector<2x32xf32>
    %257 = tpu.matmul %256, %211, %cst_152 {dimension_numbers = #tpu.dot_dimension_numbers<[1], [0], [0], [1], [0, 0, 1, 1], [], []>} : vector<2x32xf32>, vector<32x32xf32>, vector<2x32xf32> -> vector<2x32xf32>
    %258 = arith.index_cast %c1_i32_148 : i32 to index
    %c0_153 = arith.constant 0 : index
    %c0_154 = arith.constant 0 : index
    %259 = vector.load %arg20[%258, %c0_153, %c0_154] : memref<8x2x32xf32, #tpu.memory_space<vmem>>, vector<1x2x32xf32>
    %260 = vector.shape_cast %259 : vector<1x2x32xf32> to vector<2x32xf32>
    %cst_155 = arith.constant dense<0.000000e+00> : vector<2x32xf32>
    %261 = tpu.matmul %260, %212, %cst_155 {dimension_numbers = #tpu.dot_dimension_numbers<[1], [0], [0], [1], [0, 0, 1, 1], [], []>} : vector<2x32xf32>, vector<32x32xf32>, vector<2x32xf32> -> vector<2x32xf32>
    %262 = arith.addf %257, %261 : vector<2x32xf32>
    %263 = arith.addf %262, %219 : vector<2x32xf32>
    %264 = arith.index_cast %253 : i32 to index
    %c0_156 = arith.constant 0 : index
    %c0_157 = arith.constant 0 : index
    %265 = vector.load %arg19[%264, %c0_156, %c0_157] : memref<8x2x32xf32, #tpu.memory_space<vmem>>, vector<1x2x32xf32>
    %266 = vector.shape_cast %265 : vector<1x2x32xf32> to vector<2x32xf32>
    %cst_158 = arith.constant dense<0.000000e+00> : vector<2x32xf32>
    %267 = tpu.matmul %266, %214, %cst_158 {dimension_numbers = #tpu.dot_dimension_numbers<[1], [0], [0], [1], [0, 0, 1, 1], [], []>} : vector<2x32xf32>, vector<32x32xf32>, vector<2x32xf32> -> vector<2x32xf32>
    %268 = arith.index_cast %253 : i32 to index
    %c0_159 = arith.constant 0 : index
    %c0_160 = arith.constant 0 : index
    %269 = vector.load %arg20[%268, %c0_159, %c0_160] : memref<8x2x32xf32, #tpu.memory_space<vmem>>, vector<1x2x32xf32>
    %270 = vector.shape_cast %269 : vector<1x2x32xf32> to vector<2x32xf32>
    %cst_161 = arith.constant dense<0.000000e+00> : vector<2x32xf32>
    %271 = tpu.matmul %270, %215, %cst_161 {dimension_numbers = #tpu.dot_dimension_numbers<[1], [0], [0], [1], [0, 0, 1, 1], [], []>} : vector<2x32xf32>, vector<32x32xf32>, vector<2x32xf32> -> vector<2x32xf32>
    %272 = arith.addf %267, %271 : vector<2x32xf32>
    %273 = arith.addf %272, %222 : vector<2x32xf32>
    %cst_162 = arith.constant dense<0.000000e+00> : vector<2x32xf32>
    %274 = tpu.matmul %247, %213, %cst_162 {dimension_numbers = #tpu.dot_dimension_numbers<[1], [0], [0], [1], [0, 0, 1, 1], [], []>} : vector<2x32xf32>, vector<32x32xf32>, vector<2x32xf32> -> vector<2x32xf32>
    %275 = arith.addf %263, %274 : vector<2x32xf32>
    %276 = math.tanh %275 : vector<2x32xf32>
    %cst_163 = arith.constant dense<0.000000e+00> : vector<2x32xf32>
    %277 = tpu.matmul %250, %216, %cst_163 {dimension_numbers = #tpu.dot_dimension_numbers<[1], [0], [0], [1], [0, 0, 1, 1], [], []>} : vector<2x32xf32>, vector<32x32xf32>, vector<2x32xf32> -> vector<2x32xf32>
    %278 = arith.addf %273, %277 : vector<2x32xf32>
    %279 = math.tanh %278 : vector<2x32xf32>
    %280 = arith.maximumf %251, %276 : vector<2x32xf32>
    %281 = arith.maximumf %252, %279 : vector<2x32xf32>
    %c2_i32_164 = arith.constant 2 : i32
    %c7_i32_165 = arith.constant 7 : i32
    %282 = arith.subi %c7_i32_165, %c2_i32_164 : i32
    %283 = arith.index_cast %c2_i32_164 : i32 to index
    %c0_166 = arith.constant 0 : index
    %c0_167 = arith.constant 0 : index
    %284 = vector.load %arg19[%283, %c0_166, %c0_167] : memref<8x2x32xf32, #tpu.memory_space<vmem>>, vector<1x2x32xf32>
    %285 = vector.shape_cast %284 : vector<1x2x32xf32> to vector<2x32xf32>
    %cst_168 = arith.constant dense<0.000000e+00> : vector<2x32xf32>
    %286 = tpu.matmul %285, %211, %cst_168 {dimension_numbers = #tpu.dot_dimension_numbers<[1], [0], [0], [1], [0, 0, 1, 1], [], []>} : vector<2x32xf32>, vector<32x32xf32>, vector<2x32xf32> -> vector<2x32xf32>
    %287 = arith.index_cast %c2_i32_164 : i32 to index
    %c0_169 = arith.constant 0 : index
    %c0_170 = arith.constant 0 : index
    %288 = vector.load %arg20[%287, %c0_169, %c0_170] : memref<8x2x32xf32, #tpu.memory_space<vmem>>, vector<1x2x32xf32>
    %289 = vector.shape_cast %288 : vector<1x2x32xf32> to vector<2x32xf32>
    %cst_171 = arith.constant dense<0.000000e+00> : vector<2x32xf32>
    %290 = tpu.matmul %289, %212, %cst_171 {dimension_numbers = #tpu.dot_dimension_numbers<[1], [0], [0], [1], [0, 0, 1, 1], [], []>} : vector<2x32xf32>, vector<32x32xf32>, vector<2x32xf32> -> vector<2x32xf32>
    %291 = arith.addf %286, %290 : vector<2x32xf32>
    %292 = arith.addf %291, %219 : vector<2x32xf32>
    %293 = arith.index_cast %282 : i32 to index
    %c0_172 = arith.constant 0 : index
    %c0_173 = arith.constant 0 : index
    %294 = vector.load %arg19[%293, %c0_172, %c0_173] : memref<8x2x32xf32, #tpu.memory_space<vmem>>, vector<1x2x32xf32>
    %295 = vector.shape_cast %294 : vector<1x2x32xf32> to vector<2x32xf32>
    %cst_174 = arith.constant dense<0.000000e+00> : vector<2x32xf32>
    %296 = tpu.matmul %295, %214, %cst_174 {dimension_numbers = #tpu.dot_dimension_numbers<[1], [0], [0], [1], [0, 0, 1, 1], [], []>} : vector<2x32xf32>, vector<32x32xf32>, vector<2x32xf32> -> vector<2x32xf32>
    %297 = arith.index_cast %282 : i32 to index
    %c0_175 = arith.constant 0 : index
    %c0_176 = arith.constant 0 : index
    %298 = vector.load %arg20[%297, %c0_175, %c0_176] : memref<8x2x32xf32, #tpu.memory_space<vmem>>, vector<1x2x32xf32>
    %299 = vector.shape_cast %298 : vector<1x2x32xf32> to vector<2x32xf32>
    %cst_177 = arith.constant dense<0.000000e+00> : vector<2x32xf32>
    %300 = tpu.matmul %299, %215, %cst_177 {dimension_numbers = #tpu.dot_dimension_numbers<[1], [0], [0], [1], [0, 0, 1, 1], [], []>} : vector<2x32xf32>, vector<32x32xf32>, vector<2x32xf32> -> vector<2x32xf32>
    %301 = arith.addf %296, %300 : vector<2x32xf32>
    %302 = arith.addf %301, %222 : vector<2x32xf32>
    %cst_178 = arith.constant dense<0.000000e+00> : vector<2x32xf32>
    %303 = tpu.matmul %276, %213, %cst_178 {dimension_numbers = #tpu.dot_dimension_numbers<[1], [0], [0], [1], [0, 0, 1, 1], [], []>} : vector<2x32xf32>, vector<32x32xf32>, vector<2x32xf32> -> vector<2x32xf32>
    %304 = arith.addf %292, %303 : vector<2x32xf32>
    %305 = math.tanh %304 : vector<2x32xf32>
    %cst_179 = arith.constant dense<0.000000e+00> : vector<2x32xf32>
    %306 = tpu.matmul %279, %216, %cst_179 {dimension_numbers = #tpu.dot_dimension_numbers<[1], [0], [0], [1], [0, 0, 1, 1], [], []>} : vector<2x32xf32>, vector<32x32xf32>, vector<2x32xf32> -> vector<2x32xf32>
    %307 = arith.addf %302, %306 : vector<2x32xf32>
    %308 = math.tanh %307 : vector<2x32xf32>
    %309 = arith.maximumf %280, %305 : vector<2x32xf32>
    %310 = arith.maximumf %281, %308 : vector<2x32xf32>
    %c3_i32_180 = arith.constant 3 : i32
    %c7_i32_181 = arith.constant 7 : i32
    %311 = arith.subi %c7_i32_181, %c3_i32_180 : i32
    %312 = arith.index_cast %c3_i32_180 : i32 to index
    %c0_182 = arith.constant 0 : index
    %c0_183 = arith.constant 0 : index
    %313 = vector.load %arg19[%312, %c0_182, %c0_183] : memref<8x2x32xf32, #tpu.memory_space<vmem>>, vector<1x2x32xf32>
    %314 = vector.shape_cast %313 : vector<1x2x32xf32> to vector<2x32xf32>
    %cst_184 = arith.constant dense<0.000000e+00> : vector<2x32xf32>
    %315 = tpu.matmul %314, %211, %cst_184 {dimension_numbers = #tpu.dot_dimension_numbers<[1], [0], [0], [1], [0, 0, 1, 1], [], []>} : vector<2x32xf32>, vector<32x32xf32>, vector<2x32xf32> -> vector<2x32xf32>
    %316 = arith.index_cast %c3_i32_180 : i32 to index
    %c0_185 = arith.constant 0 : index
    %c0_186 = arith.constant 0 : index
    %317 = vector.load %arg20[%316, %c0_185, %c0_186] : memref<8x2x32xf32, #tpu.memory_space<vmem>>, vector<1x2x32xf32>
    %318 = vector.shape_cast %317 : vector<1x2x32xf32> to vector<2x32xf32>
    %cst_187 = arith.constant dense<0.000000e+00> : vector<2x32xf32>
    %319 = tpu.matmul %318, %212, %cst_187 {dimension_numbers = #tpu.dot_dimension_numbers<[1], [0], [0], [1], [0, 0, 1, 1], [], []>} : vector<2x32xf32>, vector<32x32xf32>, vector<2x32xf32> -> vector<2x32xf32>
    %320 = arith.addf %315, %319 : vector<2x32xf32>
    %321 = arith.addf %320, %219 : vector<2x32xf32>
    %322 = arith.index_cast %311 : i32 to index
    %c0_188 = arith.constant 0 : index
    %c0_189 = arith.constant 0 : index
    %323 = vector.load %arg19[%322, %c0_188, %c0_189] : memref<8x2x32xf32, #tpu.memory_space<vmem>>, vector<1x2x32xf32>
    %324 = vector.shape_cast %323 : vector<1x2x32xf32> to vector<2x32xf32>
    %cst_190 = arith.constant dense<0.000000e+00> : vector<2x32xf32>
    %325 = tpu.matmul %324, %214, %cst_190 {dimension_numbers = #tpu.dot_dimension_numbers<[1], [0], [0], [1], [0, 0, 1, 1], [], []>} : vector<2x32xf32>, vector<32x32xf32>, vector<2x32xf32> -> vector<2x32xf32>
    %326 = arith.index_cast %311 : i32 to index
    %c0_191 = arith.constant 0 : index
    %c0_192 = arith.constant 0 : index
    %327 = vector.load %arg20[%326, %c0_191, %c0_192] : memref<8x2x32xf32, #tpu.memory_space<vmem>>, vector<1x2x32xf32>
    %328 = vector.shape_cast %327 : vector<1x2x32xf32> to vector<2x32xf32>
    %cst_193 = arith.constant dense<0.000000e+00> : vector<2x32xf32>
    %329 = tpu.matmul %328, %215, %cst_193 {dimension_numbers = #tpu.dot_dimension_numbers<[1], [0], [0], [1], [0, 0, 1, 1], [], []>} : vector<2x32xf32>, vector<32x32xf32>, vector<2x32xf32> -> vector<2x32xf32>
    %330 = arith.addf %325, %329 : vector<2x32xf32>
    %331 = arith.addf %330, %222 : vector<2x32xf32>
    %cst_194 = arith.constant dense<0.000000e+00> : vector<2x32xf32>
    %332 = tpu.matmul %305, %213, %cst_194 {dimension_numbers = #tpu.dot_dimension_numbers<[1], [0], [0], [1], [0, 0, 1, 1], [], []>} : vector<2x32xf32>, vector<32x32xf32>, vector<2x32xf32> -> vector<2x32xf32>
    %333 = arith.addf %321, %332 : vector<2x32xf32>
    %334 = math.tanh %333 : vector<2x32xf32>
    %cst_195 = arith.constant dense<0.000000e+00> : vector<2x32xf32>
    %335 = tpu.matmul %308, %216, %cst_195 {dimension_numbers = #tpu.dot_dimension_numbers<[1], [0], [0], [1], [0, 0, 1, 1], [], []>} : vector<2x32xf32>, vector<32x32xf32>, vector<2x32xf32> -> vector<2x32xf32>
    %336 = arith.addf %331, %335 : vector<2x32xf32>
    %337 = math.tanh %336 : vector<2x32xf32>
    %338 = arith.maximumf %309, %334 : vector<2x32xf32>
    %339 = arith.maximumf %310, %337 : vector<2x32xf32>
    %c4_i32_196 = arith.constant 4 : i32
    %c7_i32_197 = arith.constant 7 : i32
    %340 = arith.subi %c7_i32_197, %c4_i32_196 : i32
    %341 = arith.index_cast %c4_i32_196 : i32 to index
    %c0_198 = arith.constant 0 : index
    %c0_199 = arith.constant 0 : index
    %342 = vector.load %arg19[%341, %c0_198, %c0_199] : memref<8x2x32xf32, #tpu.memory_space<vmem>>, vector<1x2x32xf32>
    %343 = vector.shape_cast %342 : vector<1x2x32xf32> to vector<2x32xf32>
    %cst_200 = arith.constant dense<0.000000e+00> : vector<2x32xf32>
    %344 = tpu.matmul %343, %211, %cst_200 {dimension_numbers = #tpu.dot_dimension_numbers<[1], [0], [0], [1], [0, 0, 1, 1], [], []>} : vector<2x32xf32>, vector<32x32xf32>, vector<2x32xf32> -> vector<2x32xf32>
    %345 = arith.index_cast %c4_i32_196 : i32 to index
    %c0_201 = arith.constant 0 : index
    %c0_202 = arith.constant 0 : index
    %346 = vector.load %arg20[%345, %c0_201, %c0_202] : memref<8x2x32xf32, #tpu.memory_space<vmem>>, vector<1x2x32xf32>
    %347 = vector.shape_cast %346 : vector<1x2x32xf32> to vector<2x32xf32>
    %cst_203 = arith.constant dense<0.000000e+00> : vector<2x32xf32>
    %348 = tpu.matmul %347, %212, %cst_203 {dimension_numbers = #tpu.dot_dimension_numbers<[1], [0], [0], [1], [0, 0, 1, 1], [], []>} : vector<2x32xf32>, vector<32x32xf32>, vector<2x32xf32> -> vector<2x32xf32>
    %349 = arith.addf %344, %348 : vector<2x32xf32>
    %350 = arith.addf %349, %219 : vector<2x32xf32>
    %351 = arith.index_cast %340 : i32 to index
    %c0_204 = arith.constant 0 : index
    %c0_205 = arith.constant 0 : index
    %352 = vector.load %arg19[%351, %c0_204, %c0_205] : memref<8x2x32xf32, #tpu.memory_space<vmem>>, vector<1x2x32xf32>
    %353 = vector.shape_cast %352 : vector<1x2x32xf32> to vector<2x32xf32>
    %cst_206 = arith.constant dense<0.000000e+00> : vector<2x32xf32>
    %354 = tpu.matmul %353, %214, %cst_206 {dimension_numbers = #tpu.dot_dimension_numbers<[1], [0], [0], [1], [0, 0, 1, 1], [], []>} : vector<2x32xf32>, vector<32x32xf32>, vector<2x32xf32> -> vector<2x32xf32>
    %355 = arith.index_cast %340 : i32 to index
    %c0_207 = arith.constant 0 : index
    %c0_208 = arith.constant 0 : index
    %356 = vector.load %arg20[%355, %c0_207, %c0_208] : memref<8x2x32xf32, #tpu.memory_space<vmem>>, vector<1x2x32xf32>
    %357 = vector.shape_cast %356 : vector<1x2x32xf32> to vector<2x32xf32>
    %cst_209 = arith.constant dense<0.000000e+00> : vector<2x32xf32>
    %358 = tpu.matmul %357, %215, %cst_209 {dimension_numbers = #tpu.dot_dimension_numbers<[1], [0], [0], [1], [0, 0, 1, 1], [], []>} : vector<2x32xf32>, vector<32x32xf32>, vector<2x32xf32> -> vector<2x32xf32>
    %359 = arith.addf %354, %358 : vector<2x32xf32>
    %360 = arith.addf %359, %222 : vector<2x32xf32>
    %cst_210 = arith.constant dense<0.000000e+00> : vector<2x32xf32>
    %361 = tpu.matmul %334, %213, %cst_210 {dimension_numbers = #tpu.dot_dimension_numbers<[1], [0], [0], [1], [0, 0, 1, 1], [], []>} : vector<2x32xf32>, vector<32x32xf32>, vector<2x32xf32> -> vector<2x32xf32>
    %362 = arith.addf %350, %361 : vector<2x32xf32>
    %363 = math.tanh %362 : vector<2x32xf32>
    %cst_211 = arith.constant dense<0.000000e+00> : vector<2x32xf32>
    %364 = tpu.matmul %337, %216, %cst_211 {dimension_numbers = #tpu.dot_dimension_numbers<[1], [0], [0], [1], [0, 0, 1, 1], [], []>} : vector<2x32xf32>, vector<32x32xf32>, vector<2x32xf32> -> vector<2x32xf32>
    %365 = arith.addf %360, %364 : vector<2x32xf32>
    %366 = math.tanh %365 : vector<2x32xf32>
    %367 = arith.maximumf %338, %363 : vector<2x32xf32>
    %368 = arith.maximumf %339, %366 : vector<2x32xf32>
    %c5_i32_212 = arith.constant 5 : i32
    %c7_i32_213 = arith.constant 7 : i32
    %369 = arith.subi %c7_i32_213, %c5_i32_212 : i32
    %370 = arith.index_cast %c5_i32_212 : i32 to index
    %c0_214 = arith.constant 0 : index
    %c0_215 = arith.constant 0 : index
    %371 = vector.load %arg19[%370, %c0_214, %c0_215] : memref<8x2x32xf32, #tpu.memory_space<vmem>>, vector<1x2x32xf32>
    %372 = vector.shape_cast %371 : vector<1x2x32xf32> to vector<2x32xf32>
    %cst_216 = arith.constant dense<0.000000e+00> : vector<2x32xf32>
    %373 = tpu.matmul %372, %211, %cst_216 {dimension_numbers = #tpu.dot_dimension_numbers<[1], [0], [0], [1], [0, 0, 1, 1], [], []>} : vector<2x32xf32>, vector<32x32xf32>, vector<2x32xf32> -> vector<2x32xf32>
    %374 = arith.index_cast %c5_i32_212 : i32 to index
    %c0_217 = arith.constant 0 : index
    %c0_218 = arith.constant 0 : index
    %375 = vector.load %arg20[%374, %c0_217, %c0_218] : memref<8x2x32xf32, #tpu.memory_space<vmem>>, vector<1x2x32xf32>
    %376 = vector.shape_cast %375 : vector<1x2x32xf32> to vector<2x32xf32>
    %cst_219 = arith.constant dense<0.000000e+00> : vector<2x32xf32>
    %377 = tpu.matmul %376, %212, %cst_219 {dimension_numbers = #tpu.dot_dimension_numbers<[1], [0], [0], [1], [0, 0, 1, 1], [], []>} : vector<2x32xf32>, vector<32x32xf32>, vector<2x32xf32> -> vector<2x32xf32>
    %378 = arith.addf %373, %377 : vector<2x32xf32>
    %379 = arith.addf %378, %219 : vector<2x32xf32>
    %380 = arith.index_cast %369 : i32 to index
    %c0_220 = arith.constant 0 : index
    %c0_221 = arith.constant 0 : index
    %381 = vector.load %arg19[%380, %c0_220, %c0_221] : memref<8x2x32xf32, #tpu.memory_space<vmem>>, vector<1x2x32xf32>
    %382 = vector.shape_cast %381 : vector<1x2x32xf32> to vector<2x32xf32>
    %cst_222 = arith.constant dense<0.000000e+00> : vector<2x32xf32>
    %383 = tpu.matmul %382, %214, %cst_222 {dimension_numbers = #tpu.dot_dimension_numbers<[1], [0], [0], [1], [0, 0, 1, 1], [], []>} : vector<2x32xf32>, vector<32x32xf32>, vector<2x32xf32> -> vector<2x32xf32>
    %384 = arith.index_cast %369 : i32 to index
    %c0_223 = arith.constant 0 : index
    %c0_224 = arith.constant 0 : index
    %385 = vector.load %arg20[%384, %c0_223, %c0_224] : memref<8x2x32xf32, #tpu.memory_space<vmem>>, vector<1x2x32xf32>
    %386 = vector.shape_cast %385 : vector<1x2x32xf32> to vector<2x32xf32>
    %cst_225 = arith.constant dense<0.000000e+00> : vector<2x32xf32>
    %387 = tpu.matmul %386, %215, %cst_225 {dimension_numbers = #tpu.dot_dimension_numbers<[1], [0], [0], [1], [0, 0, 1, 1], [], []>} : vector<2x32xf32>, vector<32x32xf32>, vector<2x32xf32> -> vector<2x32xf32>
    %388 = arith.addf %383, %387 : vector<2x32xf32>
    %389 = arith.addf %388, %222 : vector<2x32xf32>
    %cst_226 = arith.constant dense<0.000000e+00> : vector<2x32xf32>
    %390 = tpu.matmul %363, %213, %cst_226 {dimension_numbers = #tpu.dot_dimension_numbers<[1], [0], [0], [1], [0, 0, 1, 1], [], []>} : vector<2x32xf32>, vector<32x32xf32>, vector<2x32xf32> -> vector<2x32xf32>
    %391 = arith.addf %379, %390 : vector<2x32xf32>
    %392 = math.tanh %391 : vector<2x32xf32>
    %cst_227 = arith.constant dense<0.000000e+00> : vector<2x32xf32>
    %393 = tpu.matmul %366, %216, %cst_227 {dimension_numbers = #tpu.dot_dimension_numbers<[1], [0], [0], [1], [0, 0, 1, 1], [], []>} : vector<2x32xf32>, vector<32x32xf32>, vector<2x32xf32> -> vector<2x32xf32>
    %394 = arith.addf %389, %393 : vector<2x32xf32>
    %395 = math.tanh %394 : vector<2x32xf32>
    %396 = arith.maximumf %367, %392 : vector<2x32xf32>
    %397 = arith.maximumf %368, %395 : vector<2x32xf32>
    %c6_i32_228 = arith.constant 6 : i32
    %c7_i32_229 = arith.constant 7 : i32
    %398 = arith.subi %c7_i32_229, %c6_i32_228 : i32
    %399 = arith.index_cast %c6_i32_228 : i32 to index
    %c0_230 = arith.constant 0 : index
    %c0_231 = arith.constant 0 : index
    %400 = vector.load %arg19[%399, %c0_230, %c0_231] : memref<8x2x32xf32, #tpu.memory_space<vmem>>, vector<1x2x32xf32>
    %401 = vector.shape_cast %400 : vector<1x2x32xf32> to vector<2x32xf32>
    %cst_232 = arith.constant dense<0.000000e+00> : vector<2x32xf32>
    %402 = tpu.matmul %401, %211, %cst_232 {dimension_numbers = #tpu.dot_dimension_numbers<[1], [0], [0], [1], [0, 0, 1, 1], [], []>} : vector<2x32xf32>, vector<32x32xf32>, vector<2x32xf32> -> vector<2x32xf32>
    %403 = arith.index_cast %c6_i32_228 : i32 to index
    %c0_233 = arith.constant 0 : index
    %c0_234 = arith.constant 0 : index
    %404 = vector.load %arg20[%403, %c0_233, %c0_234] : memref<8x2x32xf32, #tpu.memory_space<vmem>>, vector<1x2x32xf32>
    %405 = vector.shape_cast %404 : vector<1x2x32xf32> to vector<2x32xf32>
    %cst_235 = arith.constant dense<0.000000e+00> : vector<2x32xf32>
    %406 = tpu.matmul %405, %212, %cst_235 {dimension_numbers = #tpu.dot_dimension_numbers<[1], [0], [0], [1], [0, 0, 1, 1], [], []>} : vector<2x32xf32>, vector<32x32xf32>, vector<2x32xf32> -> vector<2x32xf32>
    %407 = arith.addf %402, %406 : vector<2x32xf32>
    %408 = arith.addf %407, %219 : vector<2x32xf32>
    %409 = arith.index_cast %398 : i32 to index
    %c0_236 = arith.constant 0 : index
    %c0_237 = arith.constant 0 : index
    %410 = vector.load %arg19[%409, %c0_236, %c0_237] : memref<8x2x32xf32, #tpu.memory_space<vmem>>, vector<1x2x32xf32>
    %411 = vector.shape_cast %410 : vector<1x2x32xf32> to vector<2x32xf32>
    %cst_238 = arith.constant dense<0.000000e+00> : vector<2x32xf32>
    %412 = tpu.matmul %411, %214, %cst_238 {dimension_numbers = #tpu.dot_dimension_numbers<[1], [0], [0], [1], [0, 0, 1, 1], [], []>} : vector<2x32xf32>, vector<32x32xf32>, vector<2x32xf32> -> vector<2x32xf32>
    %413 = arith.index_cast %398 : i32 to index
    %c0_239 = arith.constant 0 : index
    %c0_240 = arith.constant 0 : index
    %414 = vector.load %arg20[%413, %c0_239, %c0_240] : memref<8x2x32xf32, #tpu.memory_space<vmem>>, vector<1x2x32xf32>
    %415 = vector.shape_cast %414 : vector<1x2x32xf32> to vector<2x32xf32>
    %cst_241 = arith.constant dense<0.000000e+00> : vector<2x32xf32>
    %416 = tpu.matmul %415, %215, %cst_241 {dimension_numbers = #tpu.dot_dimension_numbers<[1], [0], [0], [1], [0, 0, 1, 1], [], []>} : vector<2x32xf32>, vector<32x32xf32>, vector<2x32xf32> -> vector<2x32xf32>
    %417 = arith.addf %412, %416 : vector<2x32xf32>
    %418 = arith.addf %417, %222 : vector<2x32xf32>
    %cst_242 = arith.constant dense<0.000000e+00> : vector<2x32xf32>
    %419 = tpu.matmul %392, %213, %cst_242 {dimension_numbers = #tpu.dot_dimension_numbers<[1], [0], [0], [1], [0, 0, 1, 1], [], []>} : vector<2x32xf32>, vector<32x32xf32>, vector<2x32xf32> -> vector<2x32xf32>
    %420 = arith.addf %408, %419 : vector<2x32xf32>
    %421 = math.tanh %420 : vector<2x32xf32>
    %cst_243 = arith.constant dense<0.000000e+00> : vector<2x32xf32>
    %422 = tpu.matmul %395, %216, %cst_243 {dimension_numbers = #tpu.dot_dimension_numbers<[1], [0], [0], [1], [0, 0, 1, 1], [], []>} : vector<2x32xf32>, vector<32x32xf32>, vector<2x32xf32> -> vector<2x32xf32>
    %423 = arith.addf %418, %422 : vector<2x32xf32>
    %424 = math.tanh %423 : vector<2x32xf32>
    %425 = arith.maximumf %396, %421 : vector<2x32xf32>
    %426 = arith.maximumf %397, %424 : vector<2x32xf32>
    %c7_i32_244 = arith.constant 7 : i32
    %c7_i32_245 = arith.constant 7 : i32
    %427 = arith.subi %c7_i32_245, %c7_i32_244 : i32
    %428 = arith.index_cast %c7_i32_244 : i32 to index
    %c0_246 = arith.constant 0 : index
    %c0_247 = arith.constant 0 : index
    %429 = vector.load %arg19[%428, %c0_246, %c0_247] : memref<8x2x32xf32, #tpu.memory_space<vmem>>, vector<1x2x32xf32>
    %430 = vector.shape_cast %429 : vector<1x2x32xf32> to vector<2x32xf32>
    %cst_248 = arith.constant dense<0.000000e+00> : vector<2x32xf32>
    %431 = tpu.matmul %430, %211, %cst_248 {dimension_numbers = #tpu.dot_dimension_numbers<[1], [0], [0], [1], [0, 0, 1, 1], [], []>} : vector<2x32xf32>, vector<32x32xf32>, vector<2x32xf32> -> vector<2x32xf32>
    %432 = arith.index_cast %c7_i32_244 : i32 to index
    %c0_249 = arith.constant 0 : index
    %c0_250 = arith.constant 0 : index
    %433 = vector.load %arg20[%432, %c0_249, %c0_250] : memref<8x2x32xf32, #tpu.memory_space<vmem>>, vector<1x2x32xf32>
    %434 = vector.shape_cast %433 : vector<1x2x32xf32> to vector<2x32xf32>
    %cst_251 = arith.constant dense<0.000000e+00> : vector<2x32xf32>
    %435 = tpu.matmul %434, %212, %cst_251 {dimension_numbers = #tpu.dot_dimension_numbers<[1], [0], [0], [1], [0, 0, 1, 1], [], []>} : vector<2x32xf32>, vector<32x32xf32>, vector<2x32xf32> -> vector<2x32xf32>
    %436 = arith.addf %431, %435 : vector<2x32xf32>
    %437 = arith.addf %436, %219 : vector<2x32xf32>
    %438 = arith.index_cast %427 : i32 to index
    %c0_252 = arith.constant 0 : index
    %c0_253 = arith.constant 0 : index
    %439 = vector.load %arg19[%438, %c0_252, %c0_253] : memref<8x2x32xf32, #tpu.memory_space<vmem>>, vector<1x2x32xf32>
    %440 = vector.shape_cast %439 : vector<1x2x32xf32> to vector<2x32xf32>
    %cst_254 = arith.constant dense<0.000000e+00> : vector<2x32xf32>
    %441 = tpu.matmul %440, %214, %cst_254 {dimension_numbers = #tpu.dot_dimension_numbers<[1], [0], [0], [1], [0, 0, 1, 1], [], []>} : vector<2x32xf32>, vector<32x32xf32>, vector<2x32xf32> -> vector<2x32xf32>
    %442 = arith.index_cast %427 : i32 to index
    %c0_255 = arith.constant 0 : index
    %c0_256 = arith.constant 0 : index
    %443 = vector.load %arg20[%442, %c0_255, %c0_256] : memref<8x2x32xf32, #tpu.memory_space<vmem>>, vector<1x2x32xf32>
    %444 = vector.shape_cast %443 : vector<1x2x32xf32> to vector<2x32xf32>
    %cst_257 = arith.constant dense<0.000000e+00> : vector<2x32xf32>
    %445 = tpu.matmul %444, %215, %cst_257 {dimension_numbers = #tpu.dot_dimension_numbers<[1], [0], [0], [1], [0, 0, 1, 1], [], []>} : vector<2x32xf32>, vector<32x32xf32>, vector<2x32xf32> -> vector<2x32xf32>
    %446 = arith.addf %441, %445 : vector<2x32xf32>
    %447 = arith.addf %446, %222 : vector<2x32xf32>
    %cst_258 = arith.constant dense<0.000000e+00> : vector<2x32xf32>
    %448 = tpu.matmul %421, %213, %cst_258 {dimension_numbers = #tpu.dot_dimension_numbers<[1], [0], [0], [1], [0, 0, 1, 1], [], []>} : vector<2x32xf32>, vector<32x32xf32>, vector<2x32xf32> -> vector<2x32xf32>
    %449 = arith.addf %437, %448 : vector<2x32xf32>
    %450 = math.tanh %449 : vector<2x32xf32>
    %cst_259 = arith.constant dense<0.000000e+00> : vector<2x32xf32>
    %451 = tpu.matmul %424, %216, %cst_259 {dimension_numbers = #tpu.dot_dimension_numbers<[1], [0], [0], [1], [0, 0, 1, 1], [], []>} : vector<2x32xf32>, vector<32x32xf32>, vector<2x32xf32> -> vector<2x32xf32>
    %452 = arith.addf %447, %451 : vector<2x32xf32>
    %453 = math.tanh %452 : vector<2x32xf32>
    %454 = arith.maximumf %425, %450 : vector<2x32xf32>
    %455 = arith.maximumf %426, %453 : vector<2x32xf32>
    %c8_i32_260 = arith.constant 8 : i32
    %c0_261 = arith.constant 0 : index
    %c0_262 = arith.constant 0 : index
    %456 = vector.load %arg15[%c0_261, %c0_262] : memref<32x4xf32, #tpu.memory_space<vmem>>, vector<32x4xf32>
    %cst_263 = arith.constant dense<0.000000e+00> : vector<2x4xf32>
    %457 = tpu.matmul %454, %456, %cst_263 {dimension_numbers = #tpu.dot_dimension_numbers<[1], [0], [0], [1], [0, 0, 1, 1], [], []>} : vector<2x32xf32>, vector<32x4xf32>, vector<2x4xf32> -> vector<2x4xf32>
    %c0_264 = arith.constant 0 : index
    %c0_265 = arith.constant 0 : index
    %458 = vector.load %arg16[%c0_264, %c0_265] : memref<32x4xf32, #tpu.memory_space<vmem>>, vector<32x4xf32>
    %cst_266 = arith.constant dense<0.000000e+00> : vector<2x4xf32>
    %459 = tpu.matmul %455, %458, %cst_266 {dimension_numbers = #tpu.dot_dimension_numbers<[1], [0], [0], [1], [0, 0, 1, 1], [], []>} : vector<2x32xf32>, vector<32x4xf32>, vector<2x4xf32> -> vector<2x4xf32>
    %460 = arith.addf %457, %459 : vector<2x4xf32>
    %c0_267 = arith.constant 0 : index
    %c0_268 = arith.constant 0 : index
    %461 = vector.load %arg17[%c0_267, %c0_268] : memref<1x4xf32, #tpu.memory_space<vmem>>, vector<1x4xf32>
    %462 = vector.broadcast %461 : vector<1x4xf32> to vector<2x4xf32>
    %463 = arith.addf %460, %462 : vector<2x4xf32>
    %464 = arith.negf %463 : vector<2x4xf32>
    %465 = math.exp %464 : vector<2x4xf32>
    %cst_269 = arith.constant 1.000000e+00 : f32
    %466 = vector.broadcast %cst_269 : f32 to vector<2x4xf32>
    %467 = arith.addf %466, %465 : vector<2x4xf32>
    %468 = arith.divf %466, %467 : vector<2x4xf32>
    %c0_270 = arith.constant 0 : index
    %c0_271 = arith.constant 0 : index
    %469 = vector.load %arg18[%c0_270, %c0_271] : memref<2x4xf32, #tpu.memory_space<vmem>>, vector<2x4xf32>
    tpu.vector_store %arg18[%c0_270, %c0_271], %468 {strides = array<i32>} : memref<2x4xf32, #tpu.memory_space<vmem>>, vector<2x4xf32>,
    return
  }
}

</mosaic_0001>

<bundles_post_ra>
// kernel: tpu_custom_call.1
= control target key start
LH: loop header
LB: loop body
LE: loop exit
PB: predicated region body
PF: predicated region fallthrough
CT: control target
= control target key end

     0   :  { %s9524_s0 = inlined_call_operand.hbm [shape: f32[8,2,32], index: 0, kind: input, shape index: {}]   ;;  %s9525_s1 = inlined_call_operand.vmem [shape: f32[32,32], index: 1, kind: input, shape index: {}]   ;;  %s9526_s2 = inlined_call_operand.vmem [shape: f32[32,32], index: 2, kind: input, shape index: {}]   ;;  %s9527_s3 = inlined_call_operand.vmem [shape: f32[1,32], index: 3, kind: input, shape index: {}]   ;;  %s9528_s4 = inlined_call_operand.hbm [shape: f32[32,32], index: 4, kind: input, shape index: {}]   ;;  %s9529_s5 = inlined_call_operand.hbm [shape: f32[32,32], index: 5, kind: input, shape index: {}]   ;;  %s9530_s6 = inlined_call_operand.vmem [shape: f32[1,32], index: 6, kind: input, shape index: {}]   ;;  %s9531_s7 = inlined_call_operand.hbm [shape: f32[32,32], index: 7, kind: input, shape index: {}]   ;;  %s9532_s8 = inlined_call_operand.hbm [shape: f32[32,32], index: 8, kind: input, shape index: {}]   ;;  %s9533_s9 = inlined_call_operand.hbm [shape: f32[32,32], index: 9, kind: input, shape index: {}]   ;;  %s9534_s10 = inlined_call_operand.vmem [shape: f32[1,32], index: 10, kind: input, shape index: {}]   ;;  %s9535_s11 = inlined_call_operand.hbm [shape: f32[32,32], index: 11, kind: input, shape index: {}]   ;;  %s9536_s12 = inlined_call_operand.hbm [shape: f32[32,32], index: 12, kind: input, shape index: {}]   ;;  %s9537_s13 = inlined_call_operand.hbm [shape: f32[32,32], index: 13, kind: input, shape index: {}]   ;;  %s9538_s14 = inlined_call_operand.vmem [shape: f32[1,32], index: 14, kind: input, shape index: {}]   ;;  %s9539_s15 = inlined_call_operand.vmem [shape: f32[32,4], index: 15, kind: input, shape index: {}]   ;;  %s9540_s16 = inlined_call_operand.vmem [shape: f32[32,4], index: 16, kind: input, shape index: {}]   ;;  %s9541_s17 = inlined_call_operand.vmem [shape: f32[1,4], index: 17, kind: input, shape index: {}]   ;;  %s9542_s18 = inlined_call_operand.hbm [shape: f32[2,4], index: 18, kind: output, shape index: {}]  }
   0x1   :  { %9545 = sst [smem:[#allocation26_spill]] %s9524_s0 }
   0x2   :  { %9546 = sst [smem:[#allocation27_spill]] %s9525_s1 }
   0x3   :  { %9547 = sst [smem:[#allocation28_spill]] %s9526_s2 }
   0x4   :  { %23 = vsyncpa [#allocation5], 0 }
   0x5   :  { %24 = vsyncpa [#allocation8], 0 }
   0x6   :  { %25 = vsyncpa [#allocation11], 0 }
   0x7   :  { %26 = vsyncpa [#allocation14], 0 }
   0x8   :  { %27 = vsyncpa [#allocation17], 0 }
   0x9   :  { %28 = vsyncpa [#allocation6], 0  ;;  %s8109_s27 = smov [#allocation7]  }
   0xa   :  { %s52_s28 = sshll.u32 %s8109_s27, 4  ;;  %s53_s28 = int_to_ptr.vmem [resolvable:$true] %s52_s28 }
   0xb   :  { %s7905_s29 = scalar_lea.vmem %s53_s28, 512  ;;  %p7910_p1 = scmp.lt.s32.totalorder %s53_s28, %s53_s28 }
   0xc   :  { %p7906_p0 = scmp.ne.s32.totalorder %s53_s28, %s7905_s29  ;;  %p7911_p2 = scmp.lt.s32.totalorder %s7905_s29, %s7905_s29 }
   0xe   :  { %p7912_p3 = por %p7911_p2, %p7910_p1 }
  0x10   :  { %p7913_p4 = pnand %p7912_p3, %p7906_p0 }
  0x12   :  { %7916 = shalt.err (!%p7913_p4)
}
  0x13   :  { %s8110_s30 = smov 128   ;;  %s8111_s0 = smov 8  }
  0x14   :  { %58 = dma.hbm_to_vmem [thread:$0]  %s9528_s4, 512, %s53_s28, [#allocation8], %s8110_s30, %s8110_s30, %s8111_s0  }
  0x15   :  { %s8112_s20 = smov [#allocation10]   ;;  %s8113_s22 = smov [#allocation13]  }
  0x16   :  { %s78_s21 = sshll.u32 %s8112_s20, 4  ;;  %s102_s2 = sshll.u32 %s8113_s22, 4  ;;  %s79_s21 = int_to_ptr.vmem [resolvable:$true] %s78_s21  ;;  %s103_s2 = int_to_ptr.vmem [resolvable:$true] %s102_s2 }
  0x17   :  { %s7925_s23 = scalar_lea.vmem %s79_s21, 512  ;;  %p7930_p6 = scmp.lt.s32.totalorder %s79_s21, %s79_s21 }
  0x18   :  { %p7926_p5 = scmp.ne.s32.totalorder %s79_s21, %s7925_s23  ;;  %p7931_p7 = scmp.lt.s32.totalorder %s7925_s23, %s7925_s23 }
  0x1a   :  { %p7932_p8 = por %p7931_p7, %p7930_p6 }
  0x1c   :  { %p7933_p9 = pnand %p7932_p8, %p7926_p5 }
  0x1e   :  { %7936 = shalt.err (!%p7933_p9)
}
  0x1f   :  { %84 = dma.hbm_to_vmem [thread:$0]  %s9531_s7, 512, %s79_s21, [#allocation11], %s8110_s30, %s8110_s30, %s8111_s0  }
  0x20   :  { %s7945_s4 = scalar_lea.vmem %s103_s2, 512  ;;  %p7950_p11 = scmp.lt.s32.totalorder %s103_s2, %s103_s2 }
  0x21   :  { %p7946_p10 = scmp.ne.s32.totalorder %s103_s2, %s7945_s4  ;;  %p7951_p12 = scmp.lt.s32.totalorder %s7945_s4, %s7945_s4 }
  0x23   :  { %p7952_p13 = por %p7951_p12, %p7950_p11 }
  0x25   :  { %p7953_p0 = pnand %p7952_p13, %p7946_p10 }
  0x27   :  { %7956 = shalt.err (!%p7953_p0)
}
  0x28   :  { %108 = dma.hbm_to_vmem [thread:$0]  %s9533_s9, 512, %s103_s2, [#allocation14], %s8110_s30, %s8110_s30, %s8111_s0  }
  0x29   :  { %s8114_s28 = smov [#allocation16]   ;;  %s8115_s19 = smov [#allocation4]  }
  0x2a   :  { %s128_s29 = sshll.u32 %s8114_s28, 4  ;;  %s34_s7 = sshll.u32 %s8115_s19, 4  ;;  %s129_s29 = int_to_ptr.vmem [resolvable:$true] %s128_s29  ;;  %s35_s7 = int_to_ptr.vmem [resolvable:$true] %s34_s7 }
  0x2b   :  { %s7965_s1 = scalar_lea.vmem %s129_s29, 512  ;;  %p7970_p2 = scmp.lt.s32.totalorder %s129_s29, %s129_s29 }
  0x2c   :  { %p7966_p1 = scmp.ne.s32.totalorder %s129_s29, %s7965_s1  ;;  %p7971_p3 = scmp.lt.s32.totalorder %s7965_s1, %s7965_s1 }
  0x2e   :  { %p7972_p4 = por %p7971_p3, %p7970_p2 }
  0x30   :  { %p7973_p5 = pnand %p7972_p4, %p7966_p1 }
  0x32   :  { %7976 = shalt.err (!%p7973_p5)
}
  0x33   :  { %134 = dma.hbm_to_vmem [thread:$0]  %s9536_s12, 512, %s129_s29, [#allocation17], %s8110_s30, %s8110_s30, %s8111_s0  }
  0x34   :  { %s7985_s9 = scalar_lea.vmem %s35_s7, 256  ;;  %p7990_p7 = scmp.lt.s32.totalorder %s35_s7, %s35_s7 }
  0x35   :  { %p7986_p6 = scmp.ne.s32.totalorder %s35_s7, %s7985_s9  ;;  %p7991_p8 = scmp.lt.s32.totalorder %s7985_s9, %s7985_s9 }
  0x37   :  { %p7992_p9 = por %p7991_p8, %p7990_p7 }
  0x39   :  { %p7993_p10 = pnand %p7992_p9, %p7986_p6 }
  0x3b   :  { %7996 = shalt.err (!%p7993_p10)
}
  0x3c   :  { %s8116_s22 = smov 32   ;;  %s8117_s2 = smov 2  }
  0x3d   :  { %s9548_s25 = sld [smem:[#allocation26_spill]]  ;;  %s8118_s4 = smov [#allocation9]  }
  0x3e   :  { %s64_s26 = sshll.u32 %s8118_s4, 4  ;;  %s8119_s27 = smov [#allocation12]   ;;  %s65_s26 = int_to_ptr.vmem [resolvable:$true] %s64_s26 }
  0x3f   :  { %s90_s28 = sshll.u32 %s8119_s27, 4  ;;  %s8005_s12 = scalar_lea.vmem %s65_s26, 512  ;;  %s91_s28 = int_to_ptr.vmem [resolvable:$true] %s90_s28 }
  0x40   :  { %p8006_p11 = scmp.ne.s32.totalorder %s65_s26, %s8005_s12  ;;  %p8010_p12 = scmp.lt.s32.totalorder %s65_s26, %s65_s26 }
  0x41   :  { %p8011_p13 = scmp.lt.s32.totalorder %s8005_s12, %s8005_s12 }
  0x43   :  { %40 = dma.hbm_to_vmem [thread:$0]  %s9548_s25, 256, %s35_s7, [#allocation5], %s8116_s22, %s8116_s22, %s8117_s2  }
  0x44   :  { %p8012_p0 = por %p8011_p13, %p8010_p12 }
  0x46   :  { %p8013_p1 = pnand %p8012_p0, %p8006_p11 }
  0x48   :  { %8016 = shalt.err (!%p8013_p1)
}
  0x49   :  { %70 = dma.hbm_to_vmem [thread:$0]  %s9529_s5, 512, %s65_s26, [#allocation8], %s8110_s30, %s8110_s30, %s8111_s0  }
  0x4a   :  { %s8025_s7 = scalar_lea.vmem %s91_s28, 512  ;;  %p8030_p3 = scmp.lt.s32.totalorder %s91_s28, %s91_s28 }
  0x4b   :  { %p8026_p2 = scmp.ne.s32.totalorder %s91_s28, %s8025_s7  ;;  %p8031_p4 = scmp.lt.s32.totalorder %s8025_s7, %s8025_s7 }
  0x4d   :  { %p8032_p5 = por %p8031_p4, %p8030_p3 }
  0x4f   :  { %p8033_p6 = pnand %p8032_p5, %p8026_p2 }
  0x51   :  { %8036 = shalt.err (!%p8033_p6)
}
  0x52   :  { %96 = dma.hbm_to_vmem [thread:$0]  %s9532_s8, 512, %s91_s28, [#allocation11], %s8110_s30, %s8110_s30, %s8111_s0  }
  0x53   :  { %s8120_s21 = smov [#allocation15]   ;;  %s8121_s22 = smov [#allocation18]  }
  0x54   :  { %s116_s9 = sshll.u32 %s8120_s21, 4  ;;  %s140_s5 = sshll.u32 %s8121_s22, 4  ;;  %s117_s9 = int_to_ptr.vmem [resolvable:$true] %s116_s9  ;;  %s141_s5 = int_to_ptr.vmem [resolvable:$true] %s140_s5 }
  0x55   :  { %s8045_s2 = scalar_lea.vmem %s117_s9, 512  ;;  %p8050_p8 = scmp.lt.s32.totalorder %s117_s9, %s117_s9 }
  0x56   :  { %p8046_p7 = scmp.ne.s32.totalorder %s117_s9, %s8045_s2  ;;  %p8051_p9 = scmp.lt.s32.totalorder %s8045_s2, %s8045_s2 }
  0x58   :  { %p8052_p10 = por %p8051_p9, %p8050_p8 }
  0x5a   :  { %p8053_p11 = pnand %p8052_p10, %p8046_p7 }
  0x5c   :  { %8056 = shalt.err (!%p8053_p11)
}
  0x5d   :  { %122 = dma.hbm_to_vmem [thread:$0]  %s9535_s11, 512, %s117_s9, [#allocation14], %s8110_s30, %s8110_s30, %s8111_s0  }
  0x5e   :  { %s8065_s8 = scalar_lea.vmem %s141_s5, 512  ;;  %p8070_p13 = scmp.lt.s32.totalorder %s141_s5, %s141_s5 }
  0x5f   :  { %p8066_p12 = scmp.ne.s32.totalorder %s141_s5, %s8065_s8  ;;  %p8071_p0 = scmp.lt.s32.totalorder %s8065_s8, %s8065_s8 }
  0x61   :  { %p8072_p1 = por %p8071_p0, %p8070_p13 }
  0x63   :  { %p8073_p2 = pnand %p8072_p1, %p8066_p12 }
  0x65   :  { %8076 = shalt.err (!%p8073_p2)
}
  0x66   :  { %146 = dma.hbm_to_vmem [thread:$0]  %s9537_s13, 512, %s141_s5, [#allocation17], %s8110_s30, %s8110_s30, %s8111_s0  }
  0x67   :  { %8097 = dma.done.wait [#allocation5], 256  }
  0x68   :  { %8098 = vsyncadd [#allocation5], 4294967040 }
  0x69   :  { %8099 = dma.done.wait [#allocation8], 1024  }
  0x6a   :  { %8100 = vsyncadd [#allocation8], 4294966272 }
  0x6b   :  { %8101 = dma.done.wait [#allocation11], 1024  }
  0x6c   :  { %8102 = vsyncadd [#allocation11], 4294966272 }
  0x6d   :  { %8103 = dma.done.wait [#allocation14], 1024  }
  0x6e   :  { %8104 = vsyncadd [#allocation14], 4294966272 }
  0x6f   :  { %8105 = dma.done.wait [#allocation17], 1024  }
  0x70   :  { %8106 = vsyncadd [#allocation17], 4294966272  ;;  %v8122_v0 = vmov 0.0   ;;  %vm8123_vm0 = vmmov 0   ;;  %s9549_s30 = sld [smem:[#allocation27_spill]]  ;;  %v8282_v2 = vld [vmem:[#allocation7 + $0x18] sm:$0xff] }
  0x71   :  { %6881 = vmatprep.subr.mxu0 %v8122_v0  ;;  %6892 = vmatprep.subr.mxu1 %v8122_v0  ;;  %v8291_v4 = vld [vmem:[#allocation7 + $0x10] sm:$0xff]  ;;  %v8300_v6 = vld [vmem:[#allocation7 + $0x8] sm:$0xff]  ;;  %v8311_v8 = vld [vmem:[#allocation7] sm:$0xff]  ;;  %vm213_vm1 = vcmask 261120   ;;  %s9550_s1 = sld [smem:[#allocation28_spill]]  ;;  %vm509_vm2 = vcmask 254976  }
  0x72   :  { %6900 = vmatprep.mubr.msk.f32.mxu1 %vm8123_vm0, %v8122_v0  ;;  %6889 = vmatprep.mubr.msk.f32.mxu0 %vm8123_vm0, %v8122_v0  ;;  %v288_v9 = vld [vmem:[#allocation4 + $0xe] sm:$0x3]  ;;  %v212_v10 = vld [vmem:[#allocation4] sm:$0x3]  ;;  %v8346_v16 = vld [vmem:[#allocation9 + $0x8] sm:$0xff]  ;;  %s8124_s24 = smov [#allocation19]  }
  0x73   :  { %6893 = vmatpush3.msra.mxu1 %v8282_v2  ;;  %v8324_v12 = vld [vmem:[#allocation9 + $0x18] sm:$0xff]  ;;  %v8335_v14 = vld [vmem:[#allocation9 + $0x10] sm:$0xff]  ;;  %v8359_v18 = vld [vmem:[#allocation9] sm:$0xff]  ;;  %s6374_s8 = sshll.u32 %s8124_s24, 4  ;;  %vm6366_vm3 = vcmask 25600   ;;  %s6375_s8 = int_to_ptr.vmem [resolvable:$true] %s6374_s8 }
  0x74   :  { %6894 = vmatprep.subr.mxu1 %v8122_v0  ;;  %v589_v19 = vld [vmem:[#allocation4 + $0xc] sm:$0x3]  ;;  %v514_v20 = vld [vmem:[#allocation4 + $0x2] sm:$0x3]  ;;  %v8418_v25 = vld [vmem:[%s9527_s3] ss:$0 sm:$0xff]  ;;  %p8082_p4 = scmp.lt.s32.totalorder %s6375_s8, %s6375_s8 }
  0x75   :  { %6895 = vmatpush3.msra.mxu1 %v8291_v4  ;;  %v8423_v26 = vld [vmem:[%s9530_s6] ss:$0 sm:$0xff]  ;;  %v893_v41 = vld [vmem:[#allocation4 + $0xa] sm:$0x3]  ;;  %v818_v42 = vld [vmem:[#allocation4 + $0x4] sm:$0x3] }
  0x76   :  { %v8280_v1 = vld [vmem:[%s9549_s30 + $0x18] sm:$0xff]  ;;  %v8287_v3 = vld [vmem:[%s9549_s30 + $0x10] sm:$0xff]  ;;  %v8298_v5 = vld [vmem:[%s9549_s30 + $0x8] sm:$0xff]  ;;  %6896 = vmatprep.subr.mxu1 %v8122_v0  ;;  %s8077_s25 = scalar_lea.vmem %s6375_s8, 32 }
  0x77   :  { %6882 = vmatpush3.msra.mxu0 %v8280_v1  ;;  %v8309_v7 = vld [vmem:[%s9549_s30] sm:$0xff]  ;;  %6897 = vmatpush3.msra.mxu1 %v8300_v6  ;;  %v8322_v11 = vld [vmem:[%s9550_s1 + $0x18] sm:$0xff]  ;;  %v8333_v13 = vld [vmem:[%s9550_s1 + $0x10] sm:$0xff]  ;;  %p8078_p3 = scmp.ne.s32.totalorder %s6375_s8, %s8077_s25  ;;  %p8083_p5 = scmp.lt.s32.totalorder %s8077_s25, %s8077_s25 }
  0x78   :  { %6883 = vmatprep.subr.mxu0 %v8122_v0  ;;  %6898 = vmatprep.subr.mxu1 %v8122_v0  ;;  %v8344_v15 = vld [vmem:[%s9550_s1 + $0x8] sm:$0xff]  ;;  %v8355_v17 = vld [vmem:[%s9550_s1] sm:$0xff] }
  0x79   :  { %6884 = vmatpush3.msra.mxu0 %v8287_v3  ;;  %6899 = vmatpush3.msra.mxu1 %v8311_v8  ;;  %v1197_v57 = vld [vmem:[#allocation4 + $0x8] sm:$0x3]  ;;  %v1122_v58 = vld [vmem:[#allocation4 + $0x6] sm:$0x3]  ;;  %p8084_p6 = por %p8083_p5, %p8082_p4 }
  0x7a   :  { %6885 = vmatprep.subr.mxu0 %v8122_v0  ;;  %6901 = vmatmul.mubr.msk.f32.vlgmr.msra.gmra.mxu1 %vm213_vm1, %v288_v9 }
  0x7b   :  { %6886 = vmatpush3.msra.mxu0 %v8298_v5  ;;  %6914 = vmatprep.subr.mxu1 %v8122_v0  ;;  %p8085_p7 = pnand %p8084_p6, %p8078_p3 }
  0x7c   :  { %6887 = vmatprep.subr.mxu0 %v8122_v0  ;;  %6915 = vmatpush3.msra.mxu1 %v8324_v12 }
  0x7d   :  { %6888 = vmatpush3.msra.mxu0 %v8309_v7  ;;  %6916 = vmatprep.subr.mxu1 %v8122_v0 }
  0x7e   :  { %6903 = vmatprep.subr.mxu0 %v8122_v0  ;;  %6890 = vmatmul.mubr.msk.f32.vlgmr.msra.gmra.mxu0 %vm213_vm1, %v212_v10 }
  0x7f   :  { %6904 = vmatpush3.msra.mxu0 %v8322_v11  ;;  %6917 = vmatpush3.msra.mxu1 %v8335_v14 }
  0x80   :  { %6905 = vmatprep.subr.mxu0 %v8122_v0  ;;  %6918 = vmatprep.subr.mxu1 %v8122_v0 }
  0x81   :  { %6906 = vmatpush3.msra.mxu0 %v8333_v13  ;;  %6919 = vmatpush3.msra.mxu1 %v8346_v16 }
  0x82   :  { %6907 = vmatprep.subr.mxu0 %v8122_v0  ;;  %6920 = vmatprep.subr.mxu1 %v8122_v0 }
  0x83   :  { %6908 = vmatpush3.msra.mxu0 %v8344_v15  ;;  %6911 = vmatprep.mubr.msk.f32.mxu0 %vm8123_vm0, %v8122_v0 }
  0x84   :  { %6909 = vmatprep.subr.mxu0 %v8122_v0  ;;  %6921 = vmatpush3.msra.mxu1 %v8359_v18 }
  0x85   :  { %6910 = vmatpush3.msra.mxu0 %v8355_v17  ;;  %6922 = vmatprep.mubr.msk.f32.mxu1 %vm8123_vm0, %v8122_v0 }
  0x86   :  { %6912 = vmatmul.mubr.f32.vlgmr.msra.gmra.mxu0 %v8122_v0  ;;  %6923 = vmatmul.mubr.f32.vlgmr.msra.gmra.mxu1 %v8122_v0 }
  0x87   :  { %6936 = vmatprep.subr.mxu1 %v8122_v0  ;;  %6925 = vmatprep.subr.mxu0 %v8122_v0 }
  0x88   :  { %6937 = vmatpush3.msra.mxu1 %v8282_v2  ;;  %6926 = vmatpush3.msra.mxu0 %v8280_v1 }
  0x89   :  { %6938 = vmatprep.subr.mxu1 %v8122_v0  ;;  %6927 = vmatprep.subr.mxu0 %v8122_v0 }
  0x8a   :  { %6939 = vmatpush3.msra.mxu1 %v8291_v4  ;;  %6928 = vmatpush3.msra.mxu0 %v8287_v3 }
  0x8b   :  { %6940 = vmatprep.subr.mxu1 %v8122_v0  ;;  %6929 = vmatprep.subr.mxu0 %v8122_v0 }
  0x8c   :  { %6941 = vmatpush3.msra.mxu1 %v8300_v6  ;;  %6930 = vmatpush3.msra.mxu0 %v8298_v5 }
  0x8d   :  { %6942 = vmatprep.subr.mxu1 %v8122_v0  ;;  %6931 = vmatprep.subr.mxu0 %v8122_v0 }
  0x8e   :  { %6943 = vmatpush3.msra.mxu1 %v8311_v8  ;;  %6944 = vmatprep.mubr.msk.f32.mxu1 %vm8123_vm0, %v8122_v0 }
  0x8f   :  { %6932 = vmatpush3.msra.mxu0 %v8309_v7  ;;  %6933 = vmatprep.mubr.msk.f32.mxu0 %vm8123_vm0, %v8122_v0 }
  0x90   :  { %6947 = vmatprep.subr.mxu0 %v8122_v0  ;;  %6958 = vmatprep.subr.mxu1 %v8122_v0 }
  0x91   :  { %6945 = vmatmul.mubr.msk.f32.vlgmr.msra.gmra.mxu1 %vm213_vm1, %v589_v19  ;;  %6934 = vmatmul.mubr.msk.f32.vlgmr.msra.gmra.mxu0 %vm213_vm1, %v514_v20 }
  0x92   :  { %6959 = vmatpush3.msra.mxu1 %v8324_v12  ;;  %6966 = vmatprep.mubr.msk.f32.mxu1 %vm8123_vm0, %v8122_v0 }
  0x93   :  { %6960 = vmatprep.subr.mxu1 %v8122_v0  ;;  %6948 = vmatpush3.msra.mxu0 %v8322_v11 }
  0x94   :  { %6961 = vmatpush3.msra.mxu1 %v8335_v14  ;;  %6949 = vmatprep.subr.mxu0 %v8122_v0 }
  0x95   :  { %6962 = vmatprep.subr.mxu1 %v8122_v0  ;;  %6950 = vmatpush3.msra.mxu0 %v8333_v13 }
  0x96   :  { %6963 = vmatpush3.msra.mxu1 %v8346_v16  ;;  %6951 = vmatprep.subr.mxu0 %v8122_v0 }
  0x97   :  { %6964 = vmatprep.subr.mxu1 %v8122_v0  ;;  %6952 = vmatpush3.msra.mxu0 %v8344_v15 }
  0x98   :  { %6955 = vmatprep.mubr.msk.f32.mxu0 %vm8123_vm0, %v8122_v0  ;;  %6953 = vmatprep.subr.mxu0 %v8122_v0 }
  0x99   :  { %6965 = vmatpush3.msra.mxu1 %v8359_v18  ;;  %6954 = vmatpush3.msra.mxu0 %v8355_v17 }
  0x9a   :  { %6980 = vmatprep.subr.mxu1 %v8122_v0  ;;  %6969 = vmatprep.subr.mxu0 %v8122_v0 }
 0x13a   :  { %v358_v21 = vpop.f32.mrf.mxu1 }
 0x13b   :  { %v359_v28 = vadd.f32 %v8423_v26, %v358_v21 }
 0x13c   :  { %v6902_v23 = vpop.f32.mrf.mxu1 }
 0x13e   :  { %v283_v22 = vpop.f32.mrf.mxu0 }
 0x13f   :  { %v284_v27 = vadd.f32 %v8418_v25, %v283_v22 }
 0x140   :  { %v6891_v24 = vpop.f32.mrf.mxu0 }
 0x146   :  { %v431_v29 = vpop.f32.mrf.mxu0  ;;  %v503_v30 = vpop.f32.mrf.mxu1 }
 0x147   :  { %v435_v31 = vadd.f32 %v431_v29, %v284_v27  ;;  %v507_v32 = vadd.f32 %v503_v30, %v359_v28  ;;  %v1499_v28 = vld [vmem:[#allocation4 + $0x6] sm:$0x3]  ;;  %v1425_v29 = vld [vmem:[#allocation4 + $0x8] sm:$0x3] }
 0x148   :  { %v6924_v33 = vpop.f32.mrf.mxu1  ;;  %v6913_v34 = vpop.f32.mrf.mxu0 }
 0x149   :  { %7799 = vtanh.f32 %v435_v31 }
 0x14a   :  { %7801 = vtanh.f32 %v507_v32 }
 0x151   :  { %v659_v37 = vpop.f32.mrf.mxu1  ;;  %v584_v39 = vpop.f32.mrf.mxu0 }
 0x152   :  { %v585_v43 = vadd.f32 %v8418_v25, %v584_v39  ;;  %v660_v44 = vadd.f32 %v8423_v26, %v659_v37 }
 0x153   :  { %v6946_v38 = vpop.f32.mrf.mxu1  ;;  %v6935_v40 = vpop.f32.mrf.mxu0 }
 0x156   :  { %v7800_v35 = vpop.eup %7799 }
 0x157   :  { %v7802_v36 = vpop.eup %7801  ;;  %510 = vst.msk [vmem:[#allocation2] sm:$0x3] %vm509_vm2, %v7800_v35  ;;  %6956 = vmatmul.mubr.msk.f32.vlgmr.msra.gmra.mxu0 %vm213_vm1, %v7800_v35 }
 0x158   :  { %512 = vst.msk [vmem:[#allocation3 + $0xe] sm:$0x3] %vm509_vm2, %v7802_v36  ;;  %6967 = vmatmul.mubr.msk.f32.vlgmr.msra.gmra.mxu1 %vm213_vm1, %v7802_v36  ;;  %6970 = vmatpush3.msra.mxu0 %v8280_v1 }
 0x159   :  { %6981 = vmatpush3.msra.mxu1 %v8282_v2  ;;  %6971 = vmatprep.subr.mxu0 %v8122_v0 }
 0x15a   :  { %6982 = vmatprep.subr.mxu1 %v8122_v0  ;;  %6972 = vmatpush3.msra.mxu0 %v8287_v3 }
 0x15b   :  { %6983 = vmatpush3.msra.mxu1 %v8291_v4  ;;  %6973 = vmatprep.subr.mxu0 %v8122_v0 }
 0x15c   :  { %6984 = vmatprep.subr.mxu1 %v8122_v0  ;;  %6974 = vmatpush3.msra.mxu0 %v8298_v5 }
 0x15d   :  { %6985 = vmatpush3.msra.mxu1 %v8300_v6  ;;  %6975 = vmatprep.subr.mxu0 %v8122_v0 }
 0x15e   :  { %6986 = vmatprep.subr.mxu1 %v8122_v0  ;;  %6988 = vmatprep.mubr.msk.f32.mxu1 %vm8123_vm0, %v8122_v0 }
 0x15f   :  { %6987 = vmatpush3.msra.mxu1 %v8311_v8  ;;  %6976 = vmatpush3.msra.mxu0 %v8309_v7 }
 0x160   :  { %6977 = vmatprep.mubr.msk.f32.mxu0 %vm8123_vm0, %v8122_v0  ;;  %6991 = vmatprep.subr.mxu0 %v8122_v0 }
 0x161   :  { %7002 = vmatprep.subr.mxu1 %v8122_v0  ;;  %6989 = vmatmul.mubr.msk.f32.vlgmr.msra.gmra.mxu1 %vm213_vm1, %v893_v41 }
 0x162   :  { %7003 = vmatpush3.msra.mxu1 %v8324_v12  ;;  %7010 = vmatprep.mubr.msk.f32.mxu1 %vm8123_vm0, %v8122_v0 }
 0x163   :  { %6978 = vmatmul.mubr.msk.f32.vlgmr.msra.gmra.mxu0 %vm213_vm1, %v818_v42  ;;  %7004 = vmatprep.subr.mxu1 %v8122_v0 }
 0x164   :  { %6992 = vmatpush3.msra.mxu0 %v8322_v11  ;;  %7005 = vmatpush3.msra.mxu1 %v8335_v14 }
 0x165   :  { %6993 = vmatprep.subr.mxu0 %v8122_v0  ;;  %7006 = vmatprep.subr.mxu1 %v8122_v0 }
 0x166   :  { %6994 = vmatpush3.msra.mxu0 %v8333_v13  ;;  %7007 = vmatpush3.msra.mxu1 %v8346_v16 }
 0x167   :  { %6995 = vmatprep.subr.mxu0 %v8122_v0  ;;  %7008 = vmatprep.subr.mxu1 %v8122_v0 }
 0x168   :  { %6996 = vmatpush3.msra.mxu0 %v8344_v15  ;;  %6999 = vmatprep.mubr.msk.f32.mxu0 %vm8123_vm0, %v8122_v0 }
 0x169   :  { %6997 = vmatprep.subr.mxu0 %v8122_v0  ;;  %7009 = vmatpush3.msra.mxu1 %v8359_v18 }
 0x16a   :  { %6998 = vmatpush3.msra.mxu0 %v8355_v17  ;;  %7024 = vmatprep.subr.mxu1 %v8122_v0 }
 0x16b   :  { %7013 = vmatprep.subr.mxu0 %v8122_v0 }
 0x217   :  { %v732_v45 = vpop.f32.mrf.mxu0 }
 0x218   :  { %v736_v46 = vadd.f32 %v732_v45, %v585_v43  ;;  %v807_v47 = vpop.f32.mrf.mxu1  ;;  %v1727_v45 = vld [vmem:[#allocation4 + $0xa] sm:$0x3] }
 0x219   :  { %v811_v48 = vadd.f32 %v807_v47, %v660_v44  ;;  %v6957_v49 = vpop.f32.mrf.mxu0  ;;  %v1801_v44 = vld [vmem:[#allocation4 + $0x4] sm:$0x3] }
 0x21a   :  { %7803 = vtanh.f32 %v736_v46  ;;  %v6968_v50 = vpop.f32.mrf.mxu1 }
 0x21b   :  { %7805 = vtanh.f32 %v811_v48 }
 0x221   :  { %v963_v53 = vpop.f32.mrf.mxu1 }
 0x222   :  { %v964_v60 = vadd.f32 %v8423_v26, %v963_v53 }
 0x223   :  { %v6990_v54 = vpop.f32.mrf.mxu1  ;;  %v888_v55 = vpop.f32.mrf.mxu0 }
 0x224   :  { %v889_v59 = vadd.f32 %v8418_v25, %v888_v55 }
 0x225   :  { %v6979_v56 = vpop.f32.mrf.mxu0 }
 0x227   :  { %v7804_v51 = vpop.eup %7803 }
 0x228   :  { %v7806_v52 = vpop.eup %7805  ;;  %814 = vst.msk [vmem:[#allocation2 + $0x2] sm:$0x3] %vm509_vm2, %v7804_v51  ;;  %7000 = vmatmul.mubr.msk.f32.vlgmr.msra.gmra.mxu0 %vm213_vm1, %v7804_v51 }
 0x229   :  { %816 = vst.msk [vmem:[#allocation3 + $0xc] sm:$0x3] %vm509_vm2, %v7806_v52  ;;  %7011 = vmatmul.mubr.msk.f32.vlgmr.msra.gmra.mxu1 %vm213_vm1, %v7806_v52  ;;  %7014 = vmatpush3.msra.mxu0 %v8280_v1 }
 0x22a   :  { %7025 = vmatpush3.msra.mxu1 %v8282_v2  ;;  %7015 = vmatprep.subr.mxu0 %v8122_v0 }
 0x22b   :  { %7026 = vmatprep.subr.mxu1 %v8122_v0  ;;  %7016 = vmatpush3.msra.mxu0 %v8287_v3 }
 0x22c   :  { %7027 = vmatpush3.msra.mxu1 %v8291_v4  ;;  %7017 = vmatprep.subr.mxu0 %v8122_v0 }
 0x22d   :  { %7028 = vmatprep.subr.mxu1 %v8122_v0  ;;  %7018 = vmatpush3.msra.mxu0 %v8298_v5 }
 0x22e   :  { %7029 = vmatpush3.msra.mxu1 %v8300_v6  ;;  %7019 = vmatprep.subr.mxu0 %v8122_v0 }
 0x22f   :  { %7030 = vmatprep.subr.mxu1 %v8122_v0  ;;  %7032 = vmatprep.mubr.msk.f32.mxu1 %vm8123_vm0, %v8122_v0 }
 0x230   :  { %7031 = vmatpush3.msra.mxu1 %v8311_v8  ;;  %7020 = vmatpush3.msra.mxu0 %v8309_v7 }
 0x231   :  { %7021 = vmatprep.mubr.msk.f32.mxu0 %vm8123_vm0, %v8122_v0  ;;  %7035 = vmatprep.subr.mxu0 %v8122_v0 }
 0x232   :  { %7046 = vmatprep.subr.mxu1 %v8122_v0  ;;  %7033 = vmatmul.mubr.msk.f32.vlgmr.msra.gmra.mxu1 %vm213_vm1, %v1197_v57 }
 0x233   :  { %7047 = vmatpush3.msra.mxu1 %v8324_v12  ;;  %7054 = vmatprep.mubr.msk.f32.mxu1 %vm8123_vm0, %v8122_v0 }
 0x234   :  { %7022 = vmatmul.mubr.msk.f32.vlgmr.msra.gmra.mxu0 %vm213_vm1, %v1122_v58  ;;  %7048 = vmatprep.subr.mxu1 %v8122_v0 }
 0x235   :  { %7036 = vmatpush3.msra.mxu0 %v8322_v11  ;;  %7049 = vmatpush3.msra.mxu1 %v8335_v14 }
 0x236   :  { %7037 = vmatprep.subr.mxu0 %v8122_v0  ;;  %7050 = vmatprep.subr.mxu1 %v8122_v0 }
 0x237   :  { %7038 = vmatpush3.msra.mxu0 %v8333_v13  ;;  %7051 = vmatpush3.msra.mxu1 %v8346_v16 }
 0x238   :  { %7039 = vmatprep.subr.mxu0 %v8122_v0  ;;  %7052 = vmatprep.subr.mxu1 %v8122_v0 }
 0x239   :  { %7040 = vmatpush3.msra.mxu0 %v8344_v15  ;;  %7043 = vmatprep.mubr.msk.f32.mxu0 %vm8123_vm0, %v8122_v0 }
 0x23a   :  { %7041 = vmatprep.subr.mxu0 %v8122_v0  ;;  %7053 = vmatpush3.msra.mxu1 %v8359_v18 }
 0x23b   :  { %7042 = vmatpush3.msra.mxu0 %v8355_v17  ;;  %7068 = vmatprep.subr.mxu1 %v8122_v0 }
 0x23c   :  { %7057 = vmatprep.subr.mxu0 %v8122_v0 }
 0x2e8   :  { %v1036_v61 = vpop.f32.mrf.mxu0 }
 0x2e9   :  { %v1040_v62 = vadd.f32 %v1036_v61, %v889_v59  ;;  %v1111_v63 = vpop.f32.mrf.mxu1  ;;  %v2029_v61 = vld [vmem:[#allocation4 + $0xc] sm:$0x3] }
 0x2ea   :  { %v1115_v9 = vadd.f32 %v1111_v63, %v964_v60  ;;  %v7001_v10 = vpop.f32.mrf.mxu0  ;;  %v2103_v60 = vld [vmem:[#allocation4 + $0x2] sm:$0x3] }
 0x2eb   :  { %7807 = vtanh.f32 %v1040_v62  ;;  %v7012_v19 = vpop.f32.mrf.mxu1 }
 0x2ec   :  { %7809 = vtanh.f32 %v1115_v9 }
 0x2f2   :  { %v1267_v22 = vpop.f32.mrf.mxu1 }
 0x2f3   :  { %v1268_v31 = vadd.f32 %v8423_v26, %v1267_v22 }
 0x2f4   :  { %v7034_v23 = vpop.f32.mrf.mxu1  ;;  %v1192_v24 = vpop.f32.mrf.mxu0 }
 0x2f5   :  { %v1193_v30 = vadd.f32 %v8418_v25, %v1192_v24 }
 0x2f6   :  { %v7023_v27 = vpop.f32.mrf.mxu0 }
 0x2f7   :  { %v8715_v27 = vld [vmem:[#allocation10 + $0x18] sm:$0xff] }
 0x2f8   :  { %v7808_v20 = vpop.eup %7807 }
 0x2f9   :  { %v7810_v21 = vpop.eup %7809  ;;  %1118 = vst.msk [vmem:[#allocation2 + $0x4] sm:$0x3] %vm509_vm2, %v7808_v20  ;;  %7044 = vmatmul.mubr.msk.f32.vlgmr.msra.gmra.mxu0 %vm213_vm1, %v7808_v20 }
 0x2fa   :  { %1120 = vst.msk [vmem:[#allocation3 + $0xa] sm:$0x3] %vm509_vm2, %v7810_v21  ;;  %7055 = vmatmul.mubr.msk.f32.vlgmr.msra.gmra.mxu1 %vm213_vm1, %v7810_v21  ;;  %7058 = vmatpush3.msra.mxu0 %v8280_v1 }
 0x2fb   :  { %7069 = vmatpush3.msra.mxu1 %v8282_v2  ;;  %7059 = vmatprep.subr.mxu0 %v8122_v0 }
 0x2fc   :  { %7070 = vmatprep.subr.mxu1 %v8122_v0  ;;  %7060 = vmatpush3.msra.mxu0 %v8287_v3 }
 0x2fd   :  { %7071 = vmatpush3.msra.mxu1 %v8291_v4  ;;  %7061 = vmatprep.subr.mxu0 %v8122_v0 }
 0x2fe   :  { %7072 = vmatprep.subr.mxu1 %v8122_v0  ;;  %7062 = vmatpush3.msra.mxu0 %v8298_v5 }
 0x2ff   :  { %7073 = vmatpush3.msra.mxu1 %v8300_v6  ;;  %7063 = vmatprep.subr.mxu0 %v8122_v0 }
 0x300   :  { %7074 = vmatprep.subr.mxu1 %v8122_v0  ;;  %7076 = vmatprep.mubr.msk.f32.mxu1 %vm8123_vm0, %v8122_v0 }
 0x301   :  { %7075 = vmatpush3.msra.mxu1 %v8311_v8  ;;  %7064 = vmatpush3.msra.mxu0 %v8309_v7 }
 0x302   :  { %7065 = vmatprep.mubr.msk.f32.mxu0 %vm8123_vm0, %v8122_v0  ;;  %7079 = vmatprep.subr.mxu0 %v8122_v0 }
 0x303   :  { %7090 = vmatprep.subr.mxu1 %v8122_v0  ;;  %7077 = vmatmul.mubr.msk.f32.vlgmr.msra.gmra.mxu1 %vm213_vm1, %v1499_v28  ;;  %v8721_v28 = vld [vmem:[#allocation10 + $0x10] sm:$0xff] }
 0x304   :  { %7091 = vmatpush3.msra.mxu1 %v8324_v12  ;;  %7098 = vmatprep.mubr.msk.f32.mxu1 %vm8123_vm0, %v8122_v0 }
 0x305   :  { %7066 = vmatmul.mubr.msk.f32.vlgmr.msra.gmra.mxu0 %vm213_vm1, %v1425_v29  ;;  %7092 = vmatprep.subr.mxu1 %v8122_v0  ;;  %v8729_v29 = vld [vmem:[#allocation10 + $0x8] sm:$0xff] }
 0x306   :  { %7080 = vmatpush3.msra.mxu0 %v8322_v11  ;;  %7093 = vmatpush3.msra.mxu1 %v8335_v14 }
 0x307   :  { %7081 = vmatprep.subr.mxu0 %v8122_v0  ;;  %7094 = vmatprep.subr.mxu1 %v8122_v0 }
 0x308   :  { %7082 = vmatpush3.msra.mxu0 %v8333_v13  ;;  %7095 = vmatpush3.msra.mxu1 %v8346_v16 }
 0x309   :  { %7083 = vmatprep.subr.mxu0 %v8122_v0  ;;  %7096 = vmatprep.subr.mxu1 %v8122_v0 }
 0x30a   :  { %7084 = vmatpush3.msra.mxu0 %v8344_v15  ;;  %7087 = vmatprep.mubr.msk.f32.mxu0 %vm8123_vm0, %v8122_v0 }
 0x30b   :  { %7085 = vmatprep.subr.mxu0 %v8122_v0  ;;  %7097 = vmatpush3.msra.mxu1 %v8359_v18 }
 0x30c   :  { %7086 = vmatpush3.msra.mxu0 %v8355_v17  ;;  %7112 = vmatprep.subr.mxu1 %v8122_v0 }
 0x30d   :  { %7101 = vmatprep.subr.mxu0 %v8122_v0 }
 0x3b9   :  { %v1340_v32 = vpop.f32.mrf.mxu0 }
 0x3ba   :  { %v1344_v33 = vadd.f32 %v1340_v32, %v1193_v30  ;;  %v1415_v34 = vpop.f32.mrf.mxu1  ;;  %v8733_v30 = vld [vmem:[#allocation10] sm:$0xff] }
 0x3bb   :  { %v1419_v35 = vadd.f32 %v1415_v34, %v1268_v31  ;;  %v7045_v36 = vpop.f32.mrf.mxu0  ;;  %v2670_v31 = vld [vmem:[#allocation2] sm:$0x3] }
 0x3bc   :  { %7811 = vtanh.f32 %v1344_v33  ;;  %v7056_v37 = vpop.f32.mrf.mxu1  ;;  %v8742_v36 = vld [vmem:[#allocation12 + $0x18] sm:$0xff] }
 0x3bd   :  { %7813 = vtanh.f32 %v1419_v35  ;;  %v8744_v37 = vld [vmem:[#allocation15 + $0x18] sm:$0xff] }
 0x3c3   :  { %v1569_v40 = vpop.f32.mrf.mxu1 }
 0x3c4   :  { %v1570_v47 = vadd.f32 %v8423_v26, %v1569_v40  ;;  %v8754_v40 = vld [vmem:[#allocation12 + $0x8] sm:$0xff] }
 0x3c5   :  { %v7078_v41 = vpop.f32.mrf.mxu1  ;;  %v1495_v42 = vpop.f32.mrf.mxu0 }
 0x3c6   :  { %v1496_v46 = vadd.f32 %v8418_v25, %v1495_v42  ;;  %v8756_v41 = vld [vmem:[#allocation15 + $0x8] sm:$0xff]  ;;  %v8762_v42 = vld [vmem:[#allocation12] sm:$0xff] }
 0x3c7   :  { %v7067_v43 = vpop.f32.mrf.mxu0 }
 0x3c8   :  { %v8764_v43 = vld [vmem:[#allocation15] sm:$0xff] }
 0x3c9   :  { %v7812_v38 = vpop.eup %7811 }
 0x3ca   :  { %v7814_v39 = vpop.eup %7813  ;;  %1422 = vst.msk [vmem:[#allocation2 + $0x6] sm:$0x3] %vm509_vm2, %v7812_v38  ;;  %7088 = vmatmul.mubr.msk.f32.vlgmr.msra.gmra.mxu0 %vm213_vm1, %v7812_v38  ;;  %v8746_v38 = vld [vmem:[#allocation12 + $0x10] sm:$0xff] }
 0x3cb   :  { %1424 = vst.msk [vmem:[#allocation3 + $0x8] sm:$0x3] %vm509_vm2, %v7814_v39  ;;  %7099 = vmatmul.mubr.msk.f32.vlgmr.msra.gmra.mxu1 %vm213_vm1, %v7814_v39  ;;  %7102 = vmatpush3.msra.mxu0 %v8280_v1  ;;  %v8750_v39 = vld [vmem:[#allocation15 + $0x10] sm:$0xff] }
 0x3cc   :  { %7113 = vmatpush3.msra.mxu1 %v8282_v2  ;;  %7103 = vmatprep.subr.mxu0 %v8122_v0 }
 0x3cd   :  { %7114 = vmatprep.subr.mxu1 %v8122_v0  ;;  %7104 = vmatpush3.msra.mxu0 %v8287_v3 }
 0x3ce   :  { %7115 = vmatpush3.msra.mxu1 %v8291_v4  ;;  %7105 = vmatprep.subr.mxu0 %v8122_v0 }
 0x3cf   :  { %7116 = vmatprep.subr.mxu1 %v8122_v0  ;;  %7106 = vmatpush3.msra.mxu0 %v8298_v5 }
 0x3d0   :  { %7117 = vmatpush3.msra.mxu1 %v8300_v6  ;;  %7107 = vmatprep.subr.mxu0 %v8122_v0 }
 0x3d1   :  { %7118 = vmatprep.subr.mxu1 %v8122_v0  ;;  %7120 = vmatprep.mubr.msk.f32.mxu1 %vm8123_vm0, %v8122_v0 }
 0x3d2   :  { %7119 = vmatpush3.msra.mxu1 %v8311_v8  ;;  %7108 = vmatpush3.msra.mxu0 %v8309_v7 }
 0x3d3   :  { %7109 = vmatprep.mubr.msk.f32.mxu0 %vm8123_vm0, %v8122_v0  ;;  %7123 = vmatprep.subr.mxu0 %v8122_v0 }
 0x3d4   :  { %7134 = vmatprep.subr.mxu1 %v8122_v0  ;;  %7121 = vmatmul.mubr.msk.f32.vlgmr.msra.gmra.mxu1 %vm213_vm1, %v1801_v44 }
 0x3d5   :  { %7135 = vmatpush3.msra.mxu1 %v8324_v12  ;;  %7142 = vmatprep.mubr.msk.f32.mxu1 %vm8123_vm0, %v8122_v0 }
 0x3d6   :  { %7110 = vmatmul.mubr.msk.f32.vlgmr.msra.gmra.mxu0 %vm213_vm1, %v1727_v45  ;;  %7136 = vmatprep.subr.mxu1 %v8122_v0 }
 0x3d7   :  { %7124 = vmatpush3.msra.mxu0 %v8322_v11  ;;  %7137 = vmatpush3.msra.mxu1 %v8335_v14 }
 0x3d8   :  { %7125 = vmatprep.subr.mxu0 %v8122_v0  ;;  %7138 = vmatprep.subr.mxu1 %v8122_v0 }
 0x3d9   :  { %7126 = vmatpush3.msra.mxu0 %v8333_v13  ;;  %7139 = vmatpush3.msra.mxu1 %v8346_v16 }
 0x3da   :  { %7127 = vmatprep.subr.mxu0 %v8122_v0  ;;  %7140 = vmatprep.subr.mxu1 %v8122_v0 }
 0x3db   :  { %7128 = vmatpush3.msra.mxu0 %v8344_v15  ;;  %7131 = vmatprep.mubr.msk.f32.mxu0 %vm8123_vm0, %v8122_v0 }
 0x3dc   :  { %7129 = vmatprep.subr.mxu0 %v8122_v0  ;;  %7141 = vmatpush3.msra.mxu1 %v8359_v18 }
 0x3dd   :  { %7130 = vmatpush3.msra.mxu0 %v8355_v17  ;;  %7156 = vmatprep.subr.mxu1 %v8122_v0 }
 0x3de   :  { %7145 = vmatprep.subr.mxu0 %v8122_v0 }
 0x48a   :  { %v1642_v48 = vpop.f32.mrf.mxu0 }
 0x48b   :  { %v1646_v49 = vadd.f32 %v1642_v48, %v1496_v46  ;;  %v1717_v50 = vpop.f32.mrf.mxu1 }
 0x48c   :  { %v1721_v51 = vadd.f32 %v1717_v50, %v1570_v47  ;;  %v7089_v52 = vpop.f32.mrf.mxu0 }
 0x48d   :  { %7815 = vtanh.f32 %v1646_v49  ;;  %v7100_v53 = vpop.f32.mrf.mxu1 }
 0x48e   :  { %7817 = vtanh.f32 %v1721_v51 }
 0x494   :  { %v1871_v56 = vpop.f32.mrf.mxu1 }
 0x495   :  { %v1872_v63 = vadd.f32 %v8423_v26, %v1871_v56 }
 0x496   :  { %v7122_v57 = vpop.f32.mrf.mxu1  ;;  %v1797_v58 = vpop.f32.mrf.mxu0 }
 0x497   :  { %v1798_v62 = vadd.f32 %v8418_v25, %v1797_v58  ;;  %v8785_v58 = vld [vmem:[#allocation18 + $0x10] sm:$0xff] }
 0x498   :  { %v7111_v59 = vpop.f32.mrf.mxu0 }
 0x499   :  { %v8789_v59 = vld [vmem:[#allocation16 + $0x10] sm:$0xff] }
 0x49a   :  { %v7816_v54 = vpop.eup %7815 }
 0x49b   :  { %v7818_v55 = vpop.eup %7817  ;;  %1724 = vst.msk [vmem:[#allocation2 + $0x8] sm:$0x3] %vm509_vm2, %v7816_v54  ;;  %7132 = vmatmul.mubr.msk.f32.vlgmr.msra.gmra.mxu0 %vm213_vm1, %v7816_v54 }
 0x49c   :  { %1726 = vst.msk [vmem:[#allocation3 + $0x6] sm:$0x3] %vm509_vm2, %v7818_v55  ;;  %7143 = vmatmul.mubr.msk.f32.vlgmr.msra.gmra.mxu1 %vm213_vm1, %v7818_v55  ;;  %7146 = vmatpush3.msra.mxu0 %v8280_v1 }
 0x49d   :  { %7157 = vmatpush3.msra.mxu1 %v8282_v2  ;;  %7147 = vmatprep.subr.mxu0 %v8122_v0 }
 0x49e   :  { %7158 = vmatprep.subr.mxu1 %v8122_v0  ;;  %7148 = vmatpush3.msra.mxu0 %v8287_v3 }
 0x49f   :  { %7159 = vmatpush3.msra.mxu1 %v8291_v4  ;;  %7149 = vmatprep.subr.mxu0 %v8122_v0 }
 0x4a0   :  { %7160 = vmatprep.subr.mxu1 %v8122_v0  ;;  %7150 = vmatpush3.msra.mxu0 %v8298_v5 }
 0x4a1   :  { %7161 = vmatpush3.msra.mxu1 %v8300_v6  ;;  %7151 = vmatprep.subr.mxu0 %v8122_v0 }
 0x4a2   :  { %7162 = vmatprep.subr.mxu1 %v8122_v0  ;;  %7164 = vmatprep.mubr.msk.f32.mxu1 %vm8123_vm0, %v8122_v0 }
 0x4a3   :  { %7163 = vmatpush3.msra.mxu1 %v8311_v8  ;;  %7152 = vmatpush3.msra.mxu0 %v8309_v7 }
 0x4a4   :  { %7153 = vmatprep.mubr.msk.f32.mxu0 %vm8123_vm0, %v8122_v0  ;;  %7167 = vmatprep.subr.mxu0 %v8122_v0 }
 0x4a5   :  { %7178 = vmatprep.subr.mxu1 %v8122_v0  ;;  %7165 = vmatmul.mubr.msk.f32.vlgmr.msra.gmra.mxu1 %vm213_vm1, %v2103_v60  ;;  %v8793_v60 = vld [vmem:[#allocation18 + $0x8] sm:$0xff] }
 0x4a6   :  { %7179 = vmatpush3.msra.mxu1 %v8324_v12  ;;  %7186 = vmatprep.mubr.msk.f32.mxu1 %vm8123_vm0, %v8122_v0 }
 0x4a7   :  { %7154 = vmatmul.mubr.msk.f32.vlgmr.msra.gmra.mxu0 %vm213_vm1, %v2029_v61  ;;  %7180 = vmatprep.subr.mxu1 %v8122_v0  ;;  %v8797_v61 = vld [vmem:[#allocation16 + $0x8] sm:$0xff] }
 0x4a8   :  { %7168 = vmatpush3.msra.mxu0 %v8322_v11  ;;  %7181 = vmatpush3.msra.mxu1 %v8335_v14 }
 0x4a9   :  { %7169 = vmatprep.subr.mxu0 %v8122_v0  ;;  %7182 = vmatprep.subr.mxu1 %v8122_v0 }
 0x4aa   :  { %7170 = vmatpush3.msra.mxu0 %v8333_v13  ;;  %7183 = vmatpush3.msra.mxu1 %v8346_v16 }
 0x4ab   :  { %7171 = vmatprep.subr.mxu0 %v8122_v0  ;;  %7184 = vmatprep.subr.mxu1 %v8122_v0 }
 0x4ac   :  { %7172 = vmatpush3.msra.mxu0 %v8344_v15  ;;  %7175 = vmatprep.mubr.msk.f32.mxu0 %vm8123_vm0, %v8122_v0 }
 0x4ad   :  { %7173 = vmatprep.subr.mxu0 %v8122_v0  ;;  %7185 = vmatpush3.msra.mxu1 %v8359_v18 }
 0x4ae   :  { %7174 = vmatpush3.msra.mxu0 %v8355_v17  ;;  %7200 = vmatprep.subr.mxu1 %v8122_v0 }
 0x4af   :  { %7189 = vmatprep.subr.mxu0 %v8122_v0 }
 0x55b   :  { %v1944_v9 = vpop.f32.mrf.mxu0 }
 0x55c   :  { %v1948_v10 = vadd.f32 %v1944_v9, %v1798_v62  ;;  %v2019_v19 = vpop.f32.mrf.mxu1  ;;  %v8803_v62 = vld [vmem:[#allocation16] sm:$0xff]  ;;  %v2820_v9 = vld [vmem:[#allocation3 + $0xe] sm:$0x3] }
 0x55d   :  { %v2023_v20 = vadd.f32 %v2019_v19, %v1872_v63  ;;  %v7133_v21 = vpop.f32.mrf.mxu0  ;;  %v8805_v63 = vld [vmem:[#allocation18] sm:$0xff]  ;;  %v8821_v19 = vld [vmem:[#allocation13 + $0x10] sm:$0xff] }
 0x55e   :  { %7819 = vtanh.f32 %v1948_v10  ;;  %v7144_v22 = vpop.f32.mrf.mxu1  ;;  %v8814_v10 = vld [vmem:[#allocation13 + $0x18] sm:$0xff]  ;;  %v8833_v21 = vld [vmem:[#allocation13] sm:$0xff] }
 0x55f   :  { %7821 = vtanh.f32 %v2023_v20  ;;  %v8827_v20 = vld [vmem:[#allocation13 + $0x8] sm:$0xff]  ;;  %v8847_v22 = vld [vmem:[#allocation2 + $0x2] sm:$0x3] }
 0x56b   :  { %v7820_v23 = vpop.eup %7819 }
 0x56c   :  { %v7822_v24 = vpop.eup %7821  ;;  %2026 = vst.msk [vmem:[#allocation2 + $0xa] sm:$0x3] %vm509_vm2, %v7820_v23  ;;  %7176 = vmatmul.mubr.msk.f32.vlgmr.msra.gmra.mxu0 %vm213_vm1, %v7820_v23 }
 0x56d   :  { %2028 = vst.msk [vmem:[#allocation3 + $0x4] sm:$0x3] %vm509_vm2, %v7822_v24  ;;  %7187 = vmatmul.mubr.msk.f32.vlgmr.msra.gmra.mxu1 %vm213_vm1, %v7822_v24  ;;  %7190 = vmatpush3.msra.mxu0 %v8280_v1  ;;  %v2173_v1 = vpop.f32.mrf.mxu1 }
 0x56e   :  { %7201 = vmatpush3.msra.mxu1 %v8282_v2  ;;  %7191 = vmatprep.subr.mxu0 %v8122_v0 }
 0x56f   :  { %7202 = vmatprep.subr.mxu1 %v8122_v0  ;;  %7192 = vmatpush3.msra.mxu0 %v8287_v3  ;;  %v7166_v2 = vpop.f32.mrf.mxu1  ;;  %v2099_v3 = vpop.f32.mrf.mxu0 }
 0x570   :  { %7203 = vmatpush3.msra.mxu1 %v8291_v4  ;;  %7193 = vmatprep.subr.mxu0 %v8122_v0 }
 0x571   :  { %7204 = vmatprep.subr.mxu1 %v8122_v0  ;;  %7194 = vmatpush3.msra.mxu0 %v8298_v5  ;;  %v7155_v4 = vpop.f32.mrf.mxu0  ;;  %v2405_v5 = vld [vmem:[#allocation4] sm:$0x3] }
 0x572   :  { %7205 = vmatpush3.msra.mxu1 %v8300_v6  ;;  %7195 = vmatprep.subr.mxu0 %v8122_v0  ;;  %v2331_v6 = vld [vmem:[#allocation4 + $0xe] sm:$0x3] }
 0x573   :  { %7206 = vmatprep.subr.mxu1 %v8122_v0  ;;  %7208 = vmatprep.mubr.msk.f32.mxu1 %vm8123_vm0, %v8122_v0 }
 0x574   :  { %7207 = vmatpush3.msra.mxu1 %v8311_v8  ;;  %7196 = vmatpush3.msra.mxu0 %v8309_v7  ;;  %v2100_v7 = vadd.f32 %v8418_v25, %v2099_v3  ;;  %v2174_v8 = vadd.f32 %v8423_v26, %v2173_v1  ;;  %v8894_v1 = vld [vmem:[#allocation3 + $0xc] sm:$0x3] }
 0x575   :  { %7222 = vmatprep.subr.mxu1 %v8122_v0  ;;  %7197 = vmatprep.mubr.msk.f32.mxu0 %vm8123_vm0, %v8122_v0 }
 0x576   :  { %7211 = vmatprep.subr.mxu0 %v8122_v0  ;;  %7209 = vmatmul.mubr.msk.f32.vlgmr.msra.gmra.mxu1 %vm213_vm1, %v2405_v5 }
 0x577   :  { %7223 = vmatpush3.msra.mxu1 %v8324_v12  ;;  %7230 = vmatprep.mubr.msk.f32.mxu1 %vm8123_vm0, %v8122_v0 }
 0x578   :  { %7198 = vmatmul.mubr.msk.f32.vlgmr.msra.gmra.mxu0 %vm213_vm1, %v2331_v6  ;;  %7224 = vmatprep.subr.mxu1 %v8122_v0 }
 0x579   :  { %7212 = vmatpush3.msra.mxu0 %v8322_v11  ;;  %7225 = vmatpush3.msra.mxu1 %v8335_v14 }
 0x57a   :  { %7213 = vmatprep.subr.mxu0 %v8122_v0  ;;  %7226 = vmatprep.subr.mxu1 %v8122_v0 }
 0x57b   :  { %7214 = vmatpush3.msra.mxu0 %v8333_v13  ;;  %7227 = vmatpush3.msra.mxu1 %v8346_v16 }
 0x57c   :  { %7215 = vmatprep.subr.mxu0 %v8122_v0  ;;  %7228 = vmatprep.subr.mxu1 %v8122_v0 }
 0x57d   :  { %7216 = vmatpush3.msra.mxu0 %v8344_v15  ;;  %7229 = vmatpush3.msra.mxu1 %v8359_v18 }
 0x57e   :  { %7217 = vmatprep.subr.mxu0 %v8122_v0  ;;  %7219 = vmatprep.mubr.msk.f32.mxu0 %vm8123_vm0, %v8122_v0 }
 0x57f   :  { %7218 = vmatpush3.msra.mxu0 %v8355_v17  ;;  %7244 = vmatprep.subr.mxu1 %v8122_v0 }
 0x580   :  { %7233 = vmatprep.subr.mxu0 %v8122_v0 }
 0x62c   :  { %v2246_v11 = vpop.f32.mrf.mxu0 }
 0x62d   :  { %v2250_v12 = vadd.f32 %v2246_v11, %v2100_v7  ;;  %v2321_v13 = vpop.f32.mrf.mxu1  ;;  %v8918_v7 = vld [vmem:[%s9538_s14] ss:$0 sm:$0xff] }
 0x62e   :  { %v2325_v14 = vadd.f32 %v2321_v13, %v2174_v8  ;;  %v7177_v15 = vpop.f32.mrf.mxu0 }
 0x62f   :  { %7823 = vtanh.f32 %v2250_v12  ;;  %v7188_v16 = vpop.f32.mrf.mxu1 }
 0x630   :  { %7825 = vtanh.f32 %v2325_v14 }
 0x636   :  { %v2475_v32 = vpop.f32.mrf.mxu1 }
 0x637   :  { %v2476_v45 = vadd.f32 %v8423_v26, %v2475_v32  ;;  %v8782_v26 = vld [vmem:[#allocation16 + $0x18] sm:$0xff] }
 0x638   :  { %v7210_v33 = vpop.f32.mrf.mxu1  ;;  %v2401_v34 = vpop.f32.mrf.mxu0 }
 0x639   :  { %v2402_v44 = vadd.f32 %v8418_v25, %v2401_v34  ;;  %v8780_v25 = vld [vmem:[#allocation18 + $0x18] sm:$0xff] }
 0x63a   :  { %v7199_v35 = vpop.f32.mrf.mxu0 }
 0x63c   :  { %v7824_v18 = vpop.eup %7823 }
 0x63d   :  { %v7826_v17 = vpop.eup %7825  ;;  %2328 = vst.msk [vmem:[#allocation2 + $0xc] sm:$0x3] %vm509_vm2, %v7824_v18  ;;  %7220 = vmatmul.mubr.msk.f32.vlgmr.msra.gmra.mxu0 %vm213_vm1, %v7824_v18  ;;  %v8925_v18 = vld [vmem:[%s9534_s10] ss:$0 sm:$0xff] }
 0x63e   :  { %2330 = vst.msk [vmem:[#allocation3 + $0x2] sm:$0x3] %vm509_vm2, %v7826_v17  ;;  %7231 = vmatmul.mubr.msk.f32.vlgmr.msra.gmra.mxu1 %vm213_vm1, %v7826_v17  ;;  %7241 = vmatprep.mubr.msk.f32.mxu0 %vm8123_vm0, %v8122_v0 }
 0x63f   :  { %7245 = vmatpush3.msra.mxu1 %v8715_v27  ;;  %7252 = vmatprep.mubr.msk.f32.mxu1 %vm8123_vm0, %v8122_v0 }
 0x640   :  { %7246 = vmatprep.subr.mxu1 %v8122_v0  ;;  %7234 = vmatpush3.msra.mxu0 %v8742_v36 }
 0x641   :  { %7247 = vmatpush3.msra.mxu1 %v8721_v28  ;;  %7235 = vmatprep.subr.mxu0 %v8122_v0 }
 0x642   :  { %7248 = vmatprep.subr.mxu1 %v8122_v0  ;;  %7236 = vmatpush3.msra.mxu0 %v8746_v38 }
 0x643   :  { %7249 = vmatpush3.msra.mxu1 %v8729_v29  ;;  %7237 = vmatprep.subr.mxu0 %v8122_v0 }
 0x644   :  { %7250 = vmatprep.subr.mxu1 %v8122_v0  ;;  %7238 = vmatpush3.msra.mxu0 %v8754_v40  ;;  %v8875_v24 = vld [vmem:[#allocation2 + $0xc] sm:$0x3] }
 0x645   :  { %7251 = vmatpush3.msra.mxu1 %v8733_v30  ;;  %7239 = vmatprep.subr.mxu0 %v8122_v0  ;;  %v8869_v23 = vld [vmem:[#allocation3 + $0x2] sm:$0x3] }
 0x646   :  { %7253 = vmatmul.mubr.msk.f32.vlgmr.msra.gmra.mxu1 %vm213_vm1, %v2670_v31  ;;  %7266 = vmatprep.subr.mxu1 %v8122_v0 }
 0x647   :  { %7274 = vmatprep.mubr.msk.f32.mxu1 %vm8123_vm0, %v8122_v0  ;;  %7267 = vmatpush3.msra.mxu1 %v8744_v37 }
 0x648   :  { %7268 = vmatprep.subr.mxu1 %v8122_v0  ;;  %7240 = vmatpush3.msra.mxu0 %v8762_v42 }
 0x649   :  { %7269 = vmatpush3.msra.mxu1 %v8750_v39  ;;  %7255 = vmatprep.subr.mxu0 %v8122_v0 }
 0x64a   :  { %7270 = vmatprep.subr.mxu1 %v8122_v0 }
 0x64b   :  { %7271 = vmatpush3.msra.mxu1 %v8756_v41 }
 0x64c   :  { %7272 = vmatprep.subr.mxu1 %v8122_v0 }
 0x64d   :  { %7273 = vmatpush3.msra.mxu1 %v8764_v43 }
 0x64e   :  { %7288 = vmatprep.subr.mxu1 %v8122_v0 }
 0x6fd   :  { %v2548_v46 = vpop.f32.mrf.mxu0 }
 0x6fe   :  { %v2552_v47 = vadd.f32 %v2548_v46, %v2402_v44  ;;  %v2623_v48 = vpop.f32.mrf.mxu1 }
 0x6ff   :  { %v2627_v49 = vadd.f32 %v2623_v48, %v2476_v45  ;;  %v7221_v50 = vpop.f32.mrf.mxu0 }
 0x700   :  { %7827 = vtanh.f32 %v2552_v47  ;;  %v7232_v51 = vpop.f32.mrf.mxu1 }
 0x701   :  { %7829 = vtanh.f32 %v2627_v49  ;;  %v8948_v51 = vld [vmem:[#allocation2 + $0x4] sm:$0x3] }
 0x706   :  { %v8776_v52 = vpop.f32.mrf.mxu1 }
 0x708   :  { %v7254_v53 = vpop.f32.mrf.mxu1 }
 0x70d   :  { %v7828_v54 = vpop.eup %7827 }
 0x70e   :  { %v7830_v55 = vpop.eup %7829  ;;  %2630 = vst.msk [vmem:[#allocation2 + $0xe] sm:$0x3] %vm509_vm2, %v7828_v54 }
 0x70f   :  { %2631 = vst.msk [vmem:[#allocation3] sm:$0x3] %vm509_vm2, %v7830_v55  ;;  %v8964_v55 = vld [vmem:[#allocation3 + $0x4] sm:$0x3] }
 0x715   :  { %v2819_v56 = vld [vmem:[#allocation2 + $0xe] sm:$0x3] }
 0x716   :  { %v2671_v57 = vld [vmem:[#allocation3] sm:$0x3]  ;;  %7275 = vmatmul.mubr.msk.f32.vlgmr.msra.gmra.mxu1 %vm213_vm1, %v2819_v56  ;;  %v8978_v56 = vld [vmem:[#allocation2 + $0xa] sm:$0x3] }
 0x717   :  { %7242 = vmatmul.mubr.msk.f32.vlgmr.msra.gmra.mxu0 %vm213_vm1, %v2671_v57  ;;  %7289 = vmatpush3.msra.mxu1 %v8780_v25  ;;  %v8989_v57 = vld [vmem:[#allocation3 + $0xa] sm:$0x3] }
 0x718   :  { %7256 = vmatpush3.msra.mxu0 %v8782_v26  ;;  %7290 = vmatprep.subr.mxu1 %v8122_v0 }
 0x719   :  { %7257 = vmatprep.subr.mxu0 %v8122_v0  ;;  %7291 = vmatpush3.msra.mxu1 %v8785_v58 }
 0x71a   :  { %7258 = vmatpush3.msra.mxu0 %v8789_v59  ;;  %7292 = vmatprep.subr.mxu1 %v8122_v0 }
 0x71b   :  { %7259 = vmatprep.subr.mxu0 %v8122_v0  ;;  %7293 = vmatpush3.msra.mxu1 %v8793_v60 }
 0x71c   :  { %7260 = vmatpush3.msra.mxu0 %v8797_v61  ;;  %7294 = vmatprep.subr.mxu1 %v8122_v0 }
 0x71d   :  { %7261 = vmatprep.subr.mxu0 %v8122_v0  ;;  %7263 = vmatprep.mubr.msk.f32.mxu0 %vm8123_vm0, %v8122_v0 }
 0x71e   :  { %7262 = vmatpush3.msra.mxu0 %v8803_v62  ;;  %7295 = vmatpush3.msra.mxu1 %v8805_v63 }
 0x71f   :  { %7264 = vmatmul.mubr.msk.f32.vlgmr.msra.gmra.mxu0 %vm213_vm1, %v2820_v9  ;;  %7277 = vmatprep.subr.mxu0 %v8122_v0 }
 0x720   :  { %7296 = vmatprep.mubr.msk.f32.mxu1 %vm8123_vm0, %v8122_v0  ;;  %7310 = vmatprep.subr.mxu1 %v8122_v0 }
 0x721   :  { %7278 = vmatpush3.msra.mxu0 %v8814_v10  ;;  %7297 = vmatmul.mubr.f32.vlgmr.msra.gmra.mxu1 %v8122_v0 }
 0x722   :  { %7311 = vmatpush3.msra.mxu1 %v8715_v27  ;;  %7279 = vmatprep.subr.mxu0 %v8122_v0 }
 0x723   :  { %7312 = vmatprep.subr.mxu1 %v8122_v0  ;;  %7280 = vmatpush3.msra.mxu0 %v8821_v19 }
 0x724   :  { %7313 = vmatpush3.msra.mxu1 %v8721_v28  ;;  %7281 = vmatprep.subr.mxu0 %v8122_v0 }
 0x725   :  { %7314 = vmatprep.subr.mxu1 %v8122_v0  ;;  %7282 = vmatpush3.msra.mxu0 %v8827_v20 }
 0x726   :  { %7315 = vmatpush3.msra.mxu1 %v8729_v29  ;;  %7283 = vmatprep.subr.mxu0 %v8122_v0 }
 0x727   :  { %7316 = vmatprep.subr.mxu1 %v8122_v0  ;;  %7284 = vmatpush3.msra.mxu0 %v8833_v21 }
 0x728   :  { %7285 = vmatprep.mubr.msk.f32.mxu0 %vm8123_vm0, %v8122_v0  ;;  %7317 = vmatpush3.msra.mxu1 %v8733_v30 }
 0x729   :  { %7318 = vmatprep.mubr.msk.f32.mxu1 %vm8123_vm0, %v8122_v0  ;;  %7286 = vmatmul.mubr.f32.vlgmr.msra.gmra.mxu0 %v8122_v0 }
 0x72a   :  { %7299 = vmatprep.subr.mxu0 %v8122_v0  ;;  %7319 = vmatmul.mubr.msk.f32.vlgmr.msra.gmra.mxu1 %vm213_vm1, %v8847_v22 }
 0x72b   :  { %7332 = vmatprep.subr.mxu1 %v8122_v0  ;;  %7300 = vmatpush3.msra.mxu0 %v8742_v36 }
 0x72c   :  { %7333 = vmatpush3.msra.mxu1 %v8744_v37  ;;  %7301 = vmatprep.subr.mxu0 %v8122_v0 }
 0x72d   :  { %7334 = vmatprep.subr.mxu1 %v8122_v0  ;;  %7302 = vmatpush3.msra.mxu0 %v8746_v38 }
 0x72e   :  { %7335 = vmatpush3.msra.mxu1 %v8750_v39  ;;  %7303 = vmatprep.subr.mxu0 %v8122_v0 }
 0x72f   :  { %7336 = vmatprep.subr.mxu1 %v8122_v0  ;;  %7304 = vmatpush3.msra.mxu0 %v8754_v40 }
 0x730   :  { %7337 = vmatpush3.msra.mxu1 %v8756_v41  ;;  %7305 = vmatprep.subr.mxu0 %v8122_v0 }
 0x731   :  { %7338 = vmatprep.subr.mxu1 %v8122_v0  ;;  %7306 = vmatpush3.msra.mxu0 %v8762_v42 }
 0x732   :  { %7307 = vmatprep.mubr.msk.f32.mxu0 %vm8123_vm0, %v8122_v0  ;;  %7339 = vmatpush3.msra.mxu1 %v8764_v43 }
 0x733   :  { %7340 = vmatprep.mubr.msk.f32.mxu1 %vm8123_vm0, %v8122_v0  ;;  %7308 = vmatmul.mubr.msk.f32.vlgmr.msra.gmra.mxu0 %vm213_vm1, %v8869_v23 }
 0x734   :  { %7321 = vmatprep.subr.mxu0 %v8122_v0  ;;  %7341 = vmatmul.mubr.msk.f32.vlgmr.msra.gmra.mxu1 %vm213_vm1, %v8875_v24 }
 0x735   :  { %7322 = vmatpush3.msra.mxu0 %v8782_v26  ;;  %7329 = vmatprep.mubr.msk.f32.mxu0 %vm8123_vm0, %v8122_v0 }
 0x736   :  { %7323 = vmatprep.subr.mxu0 %v8122_v0  ;;  %7354 = vmatprep.subr.mxu1 %v8122_v0 }
 0x737   :  { %7324 = vmatpush3.msra.mxu0 %v8789_v59  ;;  %7355 = vmatpush3.msra.mxu1 %v8780_v25 }
 0x738   :  { %7325 = vmatprep.subr.mxu0 %v8122_v0  ;;  %7356 = vmatprep.subr.mxu1 %v8122_v0 }
 0x739   :  { %7326 = vmatpush3.msra.mxu0 %v8797_v61  ;;  %7357 = vmatpush3.msra.mxu1 %v8785_v58 }
 0x73a   :  { %7327 = vmatprep.subr.mxu0 %v8122_v0  ;;  %7358 = vmatprep.subr.mxu1 %v8122_v0 }
 0x73b   :  { %7328 = vmatpush3.msra.mxu0 %v8803_v62  ;;  %7359 = vmatpush3.msra.mxu1 %v8793_v60 }
 0x73c   :  { %7330 = vmatmul.mubr.msk.f32.vlgmr.msra.gmra.mxu0 %vm213_vm1, %v8894_v1  ;;  %7343 = vmatprep.subr.mxu0 %v8122_v0 }
 0x73d   :  { %7344 = vmatpush3.msra.mxu0 %v8814_v10  ;;  %7360 = vmatprep.subr.mxu1 %v8122_v0 }
 0x73e   :  { %7345 = vmatprep.subr.mxu0 %v8122_v0  ;;  %7361 = vmatpush3.msra.mxu1 %v8805_v63 }
 0x73f   :  { %7346 = vmatpush3.msra.mxu0 %v8821_v19  ;;  %7362 = vmatprep.mubr.msk.f32.mxu1 %vm8123_vm0, %v8122_v0 }
 0x740   :  { %7347 = vmatprep.subr.mxu0 %v8122_v0  ;;  %7376 = vmatprep.subr.mxu1 %v8122_v0 }
 0x741   :  { %7348 = vmatpush3.msra.mxu0 %v8827_v20  ;;  %7351 = vmatprep.mubr.msk.f32.mxu0 %vm8123_vm0, %v8122_v0 }
 0x742   :  { %7349 = vmatprep.subr.mxu0 %v8122_v0 }
 0x743   :  { %7350 = vmatpush3.msra.mxu0 %v8833_v21 }
 0x744   :  { %7365 = vmatprep.subr.mxu0 %v8122_v0 }
 0x7d6   :  { %v2963_v2 = vpop.f32.mrf.mxu1 }
 0x7d7   :  { %v2741_v3 = vpop.f32.mrf.mxu0 }
 0x7d8   :  { %v7276_v4 = vpop.f32.mrf.mxu1  ;;  %v2815_v15 = vadd.f32 %v8776_v52, %v2741_v3 }
 0x7d9   :  { %v7243_v5 = vpop.f32.mrf.mxu0 }
 0x7da   :  { %v2818_v17 = vadd.f32 %v8925_v18, %v2815_v15 }
 0x7df   :  { %v2890_v6 = vpop.f32.mrf.mxu0 }
 0x7e0   :  { %v2964_v8 = vadd.f32 %v2963_v2, %v2890_v6 }
 0x7e1   :  { %v7265_v11 = vpop.f32.mrf.mxu0  ;;  %v3106_v12 = vpop.f32.mrf.mxu1 }
 0x7e2   :  { %v2967_v13 = vadd.f32 %v8918_v7, %v2964_v8 }
 0x7e3   :  { %v7298_v14 = vpop.f32.mrf.mxu1 }
 0x7e4   :  { %v3110_v16 = vadd.f32 %v3106_v12, %v2967_v13 }
 0x7e6   :  { %7831 = vtanh.f32 %v3110_v16 }
 0x7e9   :  { %v3034_v31 = vpop.f32.mrf.mxu0 }
 0x7ea   :  { %v3038_v32 = vadd.f32 %v3034_v31, %v2818_v17  ;;  %v3256_v33 = vpop.f32.mrf.mxu1 }
 0x7eb   :  { %v7287_v34 = vpop.f32.mrf.mxu0 }
 0x7ec   :  { %7833 = vtanh.f32 %v3038_v32  ;;  %v7320_v35 = vpop.f32.mrf.mxu1 }
 0x7f3   :  { %v8928_v44 = vpop.eup %7831  ;;  %v3183_v45 = vpop.f32.mrf.mxu0 }
 0x7f4   :  { %v8930_v46 = vadd.f32 %v3256_v33, %v3183_v45  ;;  %v3405_v47 = vpop.f32.mrf.mxu1  ;;  %7363 = vmatmul.mubr.msk.f32.vlgmr.msra.gmra.mxu1 %vm213_vm1, %v8928_v44  ;;  %v9037_v45 = vld [vmem:[#allocation2 + $0x6] sm:$0x3] }
 0x7f5   :  { %v7309_v48 = vpop.f32.mrf.mxu0  ;;  %7377 = vmatpush3.msra.mxu1 %v8715_v27  ;;  %7384 = vmatprep.mubr.msk.f32.mxu1 %vm8123_vm0, %v8122_v0 }
 0x7f6   :  { %v7342_v49 = vpop.f32.mrf.mxu1  ;;  %7378 = vmatprep.subr.mxu1 %v8122_v0  ;;  %v3260_v5 = vadd.f32 %v8925_v18, %v8930_v46  ;;  %v9067_v48 = vld [vmem:[#allocation2 + $0x8] sm:$0x3] }
 0x7f7   :  { %7379 = vmatpush3.msra.mxu1 %v8721_v28  ;;  %v9078_v49 = vld [vmem:[#allocation3 + $0x8] sm:$0x3] }
 0x7f8   :  { %7380 = vmatprep.subr.mxu1 %v8122_v0 }
 0x7f9   :  { %v8940_v50 = vpop.eup %7833  ;;  %7381 = vmatpush3.msra.mxu1 %v8729_v29 }
 0x7fa   :  { %7352 = vmatmul.mubr.msk.f32.vlgmr.msra.gmra.mxu0 %vm213_vm1, %v8940_v50  ;;  %7382 = vmatprep.subr.mxu1 %v8122_v0 }
 0x7fb   :  { %7366 = vmatpush3.msra.mxu0 %v8742_v36  ;;  %7383 = vmatpush3.msra.mxu1 %v8733_v30 }
 0x7fc   :  { %v3332_v52 = vpop.f32.mrf.mxu0  ;;  %7367 = vmatprep.subr.mxu0 %v8122_v0  ;;  %7385 = vmatmul.mubr.msk.f32.vlgmr.msra.gmra.mxu1 %vm213_vm1, %v8948_v51 }
 0x7fd   :  { %v3406_v53 = vadd.f32 %v3405_v47, %v3332_v52  ;;  %7368 = vmatpush3.msra.mxu0 %v8746_v38  ;;  %7398 = vmatprep.subr.mxu1 %v8122_v0  ;;  %v9053_v47 = vld [vmem:[#allocation3 + $0x6] sm:$0x3] }
 0x7fe   :  { %v7331_v54 = vpop.f32.mrf.mxu0  ;;  %7369 = vmatprep.subr.mxu0 %v8122_v0  ;;  %7399 = vmatpush3.msra.mxu1 %v8744_v37 }
 0x7ff   :  { %7370 = vmatpush3.msra.mxu0 %v8754_v40  ;;  %7400 = vmatprep.subr.mxu1 %v8122_v0  ;;  %v3409_v9 = vadd.f32 %v8918_v7, %v3406_v53 }
 0x800   :  { %7371 = vmatprep.subr.mxu0 %v8122_v0  ;;  %7373 = vmatprep.mubr.msk.f32.mxu0 %vm8123_vm0, %v8122_v0 }
 0x801   :  { %7372 = vmatpush3.msra.mxu0 %v8762_v42  ;;  %7401 = vmatpush3.msra.mxu1 %v8750_v39 }
 0x802   :  { %7374 = vmatmul.mubr.msk.f32.vlgmr.msra.gmra.mxu0 %vm213_vm1, %v8964_v55  ;;  %7387 = vmatprep.subr.mxu0 %v8122_v0 }
 0x803   :  { %7402 = vmatprep.subr.mxu1 %v8122_v0  ;;  %7388 = vmatpush3.msra.mxu0 %v8782_v26 }
 0x804   :  { %7403 = vmatpush3.msra.mxu1 %v8756_v41  ;;  %7389 = vmatprep.subr.mxu0 %v8122_v0 }
 0x805   :  { %7404 = vmatprep.subr.mxu1 %v8122_v0  ;;  %7390 = vmatpush3.msra.mxu0 %v8789_v59 }
 0x806   :  { %7405 = vmatpush3.msra.mxu1 %v8764_v43  ;;  %7406 = vmatprep.mubr.msk.f32.mxu1 %vm8123_vm0, %v8122_v0 }
 0x807   :  { %7391 = vmatprep.subr.mxu0 %v8122_v0  ;;  %7407 = vmatmul.mubr.msk.f32.vlgmr.msra.gmra.mxu1 %vm213_vm1, %v8978_v56 }
 0x808   :  { %7392 = vmatpush3.msra.mxu0 %v8797_v61  ;;  %7395 = vmatprep.mubr.msk.f32.mxu0 %vm8123_vm0, %v8122_v0 }
 0x809   :  { %7393 = vmatprep.subr.mxu0 %v8122_v0  ;;  %7420 = vmatprep.subr.mxu1 %v8122_v0 }
 0x80a   :  { %7394 = vmatpush3.msra.mxu0 %v8803_v62  ;;  %7421 = vmatpush3.msra.mxu1 %v8780_v25 }
 0x80b   :  { %7396 = vmatmul.mubr.msk.f32.vlgmr.msra.gmra.mxu0 %vm213_vm1, %v8989_v57  ;;  %7422 = vmatprep.subr.mxu1 %v8122_v0 }
 0x80c   :  { %7423 = vmatpush3.msra.mxu1 %v8785_v58  ;;  %7409 = vmatprep.subr.mxu0 %v8122_v0 }
 0x80d   :  { %7424 = vmatprep.subr.mxu1 %v8122_v0  ;;  %7410 = vmatpush3.msra.mxu0 %v8814_v10 }
 0x80e   :  { %7425 = vmatpush3.msra.mxu1 %v8793_v60  ;;  %7411 = vmatprep.subr.mxu0 %v8122_v0 }
 0x80f   :  { %7426 = vmatprep.subr.mxu1 %v8122_v0  ;;  %7412 = vmatpush3.msra.mxu0 %v8821_v19 }
 0x810   :  { %7427 = vmatpush3.msra.mxu1 %v8805_v63  ;;  %7413 = vmatprep.subr.mxu0 %v8122_v0 }
 0x811   :  { %7428 = vmatprep.mubr.msk.f32.mxu1 %vm8123_vm0, %v8122_v0  ;;  %7442 = vmatprep.subr.mxu1 %v8122_v0 }
 0x812   :  { %7414 = vmatpush3.msra.mxu0 %v8827_v20  ;;  %7417 = vmatprep.mubr.msk.f32.mxu0 %vm8123_vm0, %v8122_v0 }
 0x813   :  { %7415 = vmatprep.subr.mxu0 %v8122_v0 }
 0x814   :  { %7416 = vmatpush3.msra.mxu0 %v8833_v21 }
 0x815   :  { %7431 = vmatprep.subr.mxu0 %v8122_v0 }
 0x8b4   :  { %v3554_v2 = vpop.f32.mrf.mxu1 }
 0x8b5   :  { %v3558_v3 = vadd.f32 %v3554_v2, %v3409_v9 }
 0x8b6   :  { %v7364_v4 = vpop.f32.mrf.mxu1 }
 0x8b7   :  { %7835 = vtanh.f32 %v3558_v3 }
 0x8ba   :  { %v3479_v6 = vpop.f32.mrf.mxu0 }
 0x8bb   :  { %v3483_v8 = vadd.f32 %v3479_v6, %v3260_v5 }
 0x8bc   :  { %v7353_v11 = vpop.f32.mrf.mxu0  ;;  %v3706_v12 = vpop.f32.mrf.mxu1 }
 0x8bd   :  { %7837 = vtanh.f32 %v3483_v8 }
 0x8be   :  { %v7386_v13 = vpop.f32.mrf.mxu1 }
 0x8c2   :  { %v3633_v14 = vpop.f32.mrf.mxu0 }
 0x8c3   :  { %v9017_v15 = vadd.f32 %v3706_v12, %v3633_v14 }
 0x8c4   :  { %v9019_v16 = vpop.eup %7835  ;;  %v7375_v17 = vpop.f32.mrf.mxu0 }
 0x8c5   :  { %7429 = vmatmul.mubr.msk.f32.vlgmr.msra.gmra.mxu1 %vm213_vm1, %v9019_v16  ;;  %v3710_v2 = vadd.f32 %v8925_v18, %v9017_v15  ;;  %v3561_v12 = vmax.f32 %v8928_v44, %v9019_v16 }
 0x8c6   :  { %7443 = vmatpush3.msra.mxu1 %v8715_v27  ;;  %7450 = vmatprep.mubr.msk.f32.mxu1 %vm8123_vm0, %v8122_v0 }
 0x8c7   :  { %v3855_v31 = vpop.f32.mrf.mxu1  ;;  %7444 = vmatprep.subr.mxu1 %v8122_v0 }
 0x8c8   :  { %7445 = vmatpush3.msra.mxu1 %v8721_v28 }
 0x8c9   :  { %v7408_v32 = vpop.f32.mrf.mxu1  ;;  %7446 = vmatprep.subr.mxu1 %v8122_v0 }
 0x8ca   :  { %v9029_v33 = vpop.eup %7837  ;;  %7447 = vmatpush3.msra.mxu1 %v8729_v29 }
 0x8cb   :  { %v3782_v34 = vpop.f32.mrf.mxu0  ;;  %7418 = vmatmul.mubr.msk.f32.vlgmr.msra.gmra.mxu0 %vm213_vm1, %v9029_v33  ;;  %7448 = vmatprep.subr.mxu1 %v8122_v0  ;;  %v3560_v44 = vmax.f32 %v8940_v50, %v9029_v33 }
 0x8cc   :  { %v3856_v35 = vadd.f32 %v3855_v31, %v3782_v34  ;;  %7432 = vmatpush3.msra.mxu0 %v8742_v36  ;;  %7449 = vmatpush3.msra.mxu1 %v8733_v30 }
 0x8cd   :  { %v7397_v46 = vpop.f32.mrf.mxu0  ;;  %7433 = vmatprep.subr.mxu0 %v8122_v0  ;;  %7451 = vmatmul.mubr.msk.f32.vlgmr.msra.gmra.mxu1 %vm213_vm1, %v9037_v45 }
 0x8ce   :  { %7434 = vmatpush3.msra.mxu0 %v8746_v38  ;;  %7464 = vmatprep.subr.mxu1 %v8122_v0  ;;  %v3859_v52 = vadd.f32 %v8918_v7, %v3856_v35 }
 0x8cf   :  { %7435 = vmatprep.subr.mxu0 %v8122_v0  ;;  %7465 = vmatpush3.msra.mxu1 %v8744_v37 }
 0x8d0   :  { %7436 = vmatpush3.msra.mxu0 %v8754_v40  ;;  %7466 = vmatprep.subr.mxu1 %v8122_v0 }
 0x8d1   :  { %7437 = vmatprep.subr.mxu0 %v8122_v0  ;;  %7439 = vmatprep.mubr.msk.f32.mxu0 %vm8123_vm0, %v8122_v0 }
 0x8d2   :  { %7438 = vmatpush3.msra.mxu0 %v8762_v42  ;;  %7467 = vmatpush3.msra.mxu1 %v8750_v39 }
 0x8d3   :  { %7440 = vmatmul.mubr.msk.f32.vlgmr.msra.gmra.mxu0 %vm213_vm1, %v9053_v47  ;;  %7453 = vmatprep.subr.mxu0 %v8122_v0 }
 0x8d4   :  { %7468 = vmatprep.subr.mxu1 %v8122_v0  ;;  %7454 = vmatpush3.msra.mxu0 %v8782_v26 }
 0x8d5   :  { %7469 = vmatpush3.msra.mxu1 %v8756_v41  ;;  %7455 = vmatprep.subr.mxu0 %v8122_v0 }
 0x8d6   :  { %7470 = vmatprep.subr.mxu1 %v8122_v0  ;;  %7456 = vmatpush3.msra.mxu0 %v8789_v59 }
 0x8d7   :  { %7471 = vmatpush3.msra.mxu1 %v8764_v43  ;;  %7472 = vmatprep.mubr.msk.f32.mxu1 %vm8123_vm0, %v8122_v0 }
 0x8d8   :  { %7457 = vmatprep.subr.mxu0 %v8122_v0  ;;  %7473 = vmatmul.mubr.msk.f32.vlgmr.msra.gmra.mxu1 %vm213_vm1, %v9067_v48 }
 0x8d9   :  { %7458 = vmatpush3.msra.mxu0 %v8797_v61  ;;  %7461 = vmatprep.mubr.msk.f32.mxu0 %vm8123_vm0, %v8122_v0 }
 0x8da   :  { %7459 = vmatprep.subr.mxu0 %v8122_v0  ;;  %7486 = vmatprep.subr.mxu1 %v8122_v0 }
 0x8db   :  { %7460 = vmatpush3.msra.mxu0 %v8803_v62  ;;  %7487 = vmatpush3.msra.mxu1 %v8780_v25 }
 0x8dc   :  { %7462 = vmatmul.mubr.msk.f32.vlgmr.msra.gmra.mxu0 %vm213_vm1, %v9078_v49  ;;  %7488 = vmatprep.subr.mxu1 %v8122_v0 }
 0x8dd   :  { %7489 = vmatpush3.msra.mxu1 %v8785_v58  ;;  %7475 = vmatprep.subr.mxu0 %v8122_v0 }
 0x8de   :  { %7490 = vmatprep.subr.mxu1 %v8122_v0  ;;  %7476 = vmatpush3.msra.mxu0 %v8814_v10 }
 0x8df   :  { %7491 = vmatpush3.msra.mxu1 %v8793_v60  ;;  %7477 = vmatprep.subr.mxu0 %v8122_v0 }
 0x8e0   :  { %7492 = vmatprep.subr.mxu1 %v8122_v0  ;;  %7478 = vmatpush3.msra.mxu0 %v8821_v19 }
 0x8e1   :  { %7493 = vmatpush3.msra.mxu1 %v8805_v63  ;;  %7479 = vmatprep.subr.mxu0 %v8122_v0 }
 0x8e2   :  { %7494 = vmatprep.mubr.msk.f32.mxu1 %vm8123_vm0, %v8122_v0  ;;  %7508 = vmatprep.subr.mxu1 %v8122_v0 }
 0x8e3   :  { %7480 = vmatpush3.msra.mxu0 %v8827_v20  ;;  %7483 = vmatprep.mubr.msk.f32.mxu0 %vm8123_vm0, %v8122_v0 }
 0x8e4   :  { %7481 = vmatprep.subr.mxu0 %v8122_v0 }
 0x8e5   :  { %7482 = vmatpush3.msra.mxu0 %v8833_v21 }
 0x8e6   :  { %7497 = vmatprep.subr.mxu0 %v8122_v0 }
 0x985   :  { %v4004_v53 = vpop.f32.mrf.mxu1 }
 0x986   :  { %v4008_v54 = vadd.f32 %v4004_v53, %v3859_v52 }
 0x987   :  { %v7430_v9 = vpop.f32.mrf.mxu1 }
 0x988   :  { %7839 = vtanh.f32 %v4008_v54 }
 0x98b   :  { %v3929_v3 = vpop.f32.mrf.mxu0 }
 0x98c   :  { %v3933_v4 = vadd.f32 %v3929_v3, %v3710_v2 }
 0x98d   :  { %v7419_v5 = vpop.f32.mrf.mxu0  ;;  %v4156_v6 = vpop.f32.mrf.mxu1 }
 0x98e   :  { %7841 = vtanh.f32 %v3933_v4 }
 0x98f   :  { %v7452_v8 = vpop.f32.mrf.mxu1 }
 0x993   :  { %v4083_v11 = vpop.f32.mrf.mxu0 }
 0x994   :  { %v9108_v13 = vadd.f32 %v4156_v6, %v4083_v11 }
 0x995   :  { %v7840_v14 = vpop.eup %7839  ;;  %v7441_v17 = vpop.f32.mrf.mxu0 }
 0x996   :  { %v9110_v31 = vmax.f32 %v3561_v12, %v7840_v14  ;;  %7495 = vmatmul.mubr.msk.f32.vlgmr.msra.gmra.mxu1 %vm213_vm1, %v7840_v14 }
 0x997   :  { %7509 = vmatpush3.msra.mxu1 %v8715_v27  ;;  %7516 = vmatprep.mubr.msk.f32.mxu1 %vm8123_vm0, %v8122_v0 }
 0x998   :  { %v4305_v15 = vpop.f32.mrf.mxu1  ;;  %7510 = vmatprep.subr.mxu1 %v8122_v0 }
 0x999   :  { %7511 = vmatpush3.msra.mxu1 %v8721_v28 }
 0x99a   :  { %v7474_v16 = vpop.f32.mrf.mxu1  ;;  %7512 = vmatprep.subr.mxu1 %v8122_v0 }
 0x99b   :  { %v7842_v32 = vpop.eup %7841  ;;  %7513 = vmatpush3.msra.mxu1 %v8729_v29 }
 0x99c   :  { %v9122_v34 = vmax.f32 %v3560_v44, %v7842_v32  ;;  %v4232_v35 = vpop.f32.mrf.mxu0  ;;  %7484 = vmatmul.mubr.msk.f32.vlgmr.msra.gmra.mxu0 %vm213_vm1, %v7842_v32  ;;  %7514 = vmatprep.subr.mxu1 %v8122_v0  ;;  %v9292_v44 = vld [vmem:[#allocation10 + $0x8] sm:$0xff] }
 0x99d   :  { %v4306_v46 = vadd.f32 %v4305_v15, %v4232_v35  ;;  %7498 = vmatpush3.msra.mxu0 %v8742_v36  ;;  %7515 = vmatpush3.msra.mxu1 %v8733_v30 }
 0x99e   :  { %v7463_v52 = vpop.f32.mrf.mxu0  ;;  %7499 = vmatprep.subr.mxu0 %v8122_v0  ;;  %7517 = vmatmul.mubr.msk.f32.vlgmr.msra.gmra.mxu1 %vm213_vm1, %v9067_v48  ;;  %v4160_v48 = vadd.f32 %v8925_v18, %v9108_v13 }
 0x99f   :  { %7500 = vmatpush3.msra.mxu0 %v8746_v38  ;;  %7530 = vmatprep.subr.mxu1 %v8122_v0  ;;  %v4309_v50 = vadd.f32 %v8918_v7, %v4306_v46  ;;  %v9304_v46 = vld [vmem:[#allocation12 + $0x18] sm:$0xff]  ;;  %v9307_v52 = vld [vmem:[#allocation10] sm:$0xff] }
 0x9a0   :  { %7501 = vmatprep.subr.mxu0 %v8122_v0  ;;  %7531 = vmatpush3.msra.mxu1 %v8744_v37 }
 0x9a1   :  { %7502 = vmatpush3.msra.mxu0 %v8754_v40  ;;  %7532 = vmatprep.subr.mxu1 %v8122_v0 }
 0x9a2   :  { %7503 = vmatprep.subr.mxu0 %v8122_v0  ;;  %7505 = vmatprep.mubr.msk.f32.mxu0 %vm8123_vm0, %v8122_v0 }
 0x9a3   :  { %7504 = vmatpush3.msra.mxu0 %v8762_v42  ;;  %7533 = vmatpush3.msra.mxu1 %v8750_v39 }
 0x9a4   :  { %7506 = vmatmul.mubr.msk.f32.vlgmr.msra.gmra.mxu0 %vm213_vm1, %v9078_v49  ;;  %7519 = vmatprep.subr.mxu0 %v8122_v0 }
 0x9a5   :  { %7534 = vmatprep.subr.mxu1 %v8122_v0  ;;  %7520 = vmatpush3.msra.mxu0 %v8782_v26 }
 0x9a6   :  { %7535 = vmatpush3.msra.mxu1 %v8756_v41  ;;  %7521 = vmatprep.subr.mxu0 %v8122_v0 }
 0x9a7   :  { %7536 = vmatprep.subr.mxu1 %v8122_v0  ;;  %7522 = vmatpush3.msra.mxu0 %v8789_v59 }
 0x9a8   :  { %7537 = vmatpush3.msra.mxu1 %v8764_v43  ;;  %7538 = vmatprep.mubr.msk.f32.mxu1 %vm8123_vm0, %v8122_v0 }
 0x9a9   :  { %7523 = vmatprep.subr.mxu0 %v8122_v0  ;;  %7539 = vmatmul.mubr.msk.f32.vlgmr.msra.gmra.mxu1 %vm213_vm1, %v9037_v45 }
 0x9aa   :  { %7524 = vmatpush3.msra.mxu0 %v8797_v61  ;;  %7527 = vmatprep.mubr.msk.f32.mxu0 %vm8123_vm0, %v8122_v0 }
 0x9ab   :  { %7525 = vmatprep.subr.mxu0 %v8122_v0  ;;  %7552 = vmatprep.subr.mxu1 %v8122_v0 }
 0x9ac   :  { %7526 = vmatpush3.msra.mxu0 %v8803_v62  ;;  %7553 = vmatpush3.msra.mxu1 %v8780_v25 }
 0x9ad   :  { %7528 = vmatmul.mubr.msk.f32.vlgmr.msra.gmra.mxu0 %vm213_vm1, %v9053_v47  ;;  %7554 = vmatprep.subr.mxu1 %v8122_v0 }
 0x9ae   :  { %7555 = vmatpush3.msra.mxu1 %v8785_v58  ;;  %7541 = vmatprep.subr.mxu0 %v8122_v0 }
 0x9af   :  { %7556 = vmatprep.subr.mxu1 %v8122_v0  ;;  %7542 = vmatpush3.msra.mxu0 %v8814_v10 }
 0x9b0   :  { %7557 = vmatpush3.msra.mxu1 %v8793_v60  ;;  %7543 = vmatprep.subr.mxu0 %v8122_v0 }
 0x9b1   :  { %7558 = vmatprep.subr.mxu1 %v8122_v0  ;;  %7544 = vmatpush3.msra.mxu0 %v8821_v19 }
 0x9b2   :  { %7559 = vmatpush3.msra.mxu1 %v8805_v63  ;;  %7545 = vmatprep.subr.mxu0 %v8122_v0 }
 0x9b3   :  { %7560 = vmatprep.mubr.msk.f32.mxu1 %vm8123_vm0, %v8122_v0  ;;  %7574 = vmatprep.subr.mxu1 %v8122_v0 }
 0x9b4   :  { %7546 = vmatpush3.msra.mxu0 %v8827_v20  ;;  %7549 = vmatprep.mubr.msk.f32.mxu0 %vm8123_vm0, %v8122_v0 }
 0x9b5   :  { %7547 = vmatprep.subr.mxu0 %v8122_v0 }
 0x9b6   :  { %7548 = vmatpush3.msra.mxu0 %v8833_v21 }
 0x9b7   :  { %7563 = vmatprep.subr.mxu0 %v8122_v0 }
 0xa56   :  { %v4454_v33 = vpop.f32.mrf.mxu1 }
 0xa57   :  { %v4458_v45 = vadd.f32 %v4454_v33, %v4309_v50  ;;  %v9318_v33 = vld [vmem:[#allocation15 + $0x18] sm:$0xff] }
 0xa58   :  { %v7496_v47 = vpop.f32.mrf.mxu1 }
 0xa59   :  { %7843 = vtanh.f32 %v4458_v45  ;;  %v9321_v45 = vld [vmem:[#allocation12 + $0x8] sm:$0xff]  ;;  %v9331_v47 = vld [vmem:[#allocation15 + $0x10] sm:$0xff] }
 0xa5c   :  { %v4379_v49 = vpop.f32.mrf.mxu0 }
 0xa5d   :  { %v4383_v53 = vadd.f32 %v4379_v49, %v4160_v48  ;;  %v9339_v48 = vld [vmem:[#allocation15 + $0x8] sm:$0xff]  ;;  %v9345_v49 = vld [vmem:[#allocation15] sm:$0xff] }
 0xa5e   :  { %v7485_v54 = vpop.f32.mrf.mxu0  ;;  %v4598_v9 = vpop.f32.mrf.mxu1 }
 0xa5f   :  { %7845 = vtanh.f32 %v4383_v53 }
 0xa60   :  { %v7518_v2 = vpop.f32.mrf.mxu1 }
 0xa64   :  { %v4528_v3 = vpop.f32.mrf.mxu0 }
 0xa65   :  { %v9189_v4 = vadd.f32 %v4598_v9, %v4528_v3 }
 0xa66   :  { %v9191_v5 = vpop.eup %7843  ;;  %v7507_v6 = vpop.f32.mrf.mxu0 }
 0xa67   :  { %v4461_v8 = vmax.f32 %v9110_v31, %v9191_v5  ;;  %7561 = vmatmul.mubr.msk.f32.vlgmr.msra.gmra.mxu1 %vm213_vm1, %v9191_v5 }
 0xa68   :  { %7575 = vmatpush3.msra.mxu1 %v8715_v27  ;;  %7582 = vmatprep.mubr.msk.f32.mxu1 %vm8123_vm0, %v8122_v0 }
 0xa69   :  { %v4739_v11 = vpop.f32.mrf.mxu1  ;;  %7576 = vmatprep.subr.mxu1 %v8122_v0 }
 0xa6a   :  { %7577 = vmatpush3.msra.mxu1 %v8721_v28 }
 0xa6b   :  { %v7540_v12 = vpop.f32.mrf.mxu1  ;;  %7578 = vmatprep.subr.mxu1 %v8122_v0 }
 0xa6c   :  { %v9203_v13 = vpop.eup %7845  ;;  %7579 = vmatpush3.msra.mxu1 %v8729_v29 }
 0xa6d   :  { %v4460_v14 = vmax.f32 %v9122_v34, %v9203_v13  ;;  %v4669_v17 = vpop.f32.mrf.mxu0  ;;  %7550 = vmatmul.mubr.msk.f32.vlgmr.msra.gmra.mxu0 %vm213_vm1, %v9203_v13  ;;  %7580 = vmatprep.subr.mxu1 %v8122_v0  ;;  %v9313_v34 = vld [vmem:[#allocation12 + $0x10] sm:$0xff] }
 0xa6e   :  { %v4740_v27 = vadd.f32 %v4739_v11, %v4669_v17  ;;  %7564 = vmatpush3.msra.mxu0 %v8742_v36  ;;  %7581 = vmatpush3.msra.mxu1 %v8733_v30  ;;  %v7883_v17 = vld [vmem:[#allocation2 + $0xe] sm:$0x3] }
 0xa6f   :  { %v7529_v28 = vpop.f32.mrf.mxu0  ;;  %7565 = vmatprep.subr.mxu0 %v8122_v0  ;;  %7583 = vmatmul.mubr.msk.f32.vlgmr.msra.gmra.mxu1 %vm213_vm1, %v8978_v56 }
 0xa70   :  { %7566 = vmatpush3.msra.mxu0 %v8746_v38  ;;  %7596 = vmatprep.subr.mxu1 %v8122_v0  ;;  %v4743_v29 = vadd.f32 %v8918_v7, %v4740_v27  ;;  %v4602_v38 = vadd.f32 %v8925_v18, %v9189_v4  ;;  %v7884_v27 = vld [vmem:[#allocation3 + $0xe] sm:$0x3]  ;;  %v7885_v28 = vld [vmem:[#allocation16 + $0x18] sm:$0xff] }
 0xa71   :  { %7567 = vmatprep.subr.mxu0 %v8122_v0  ;;  %7597 = vmatpush3.msra.mxu1 %v8744_v37 }
 0xa72   :  { %7568 = vmatpush3.msra.mxu0 %v8754_v40  ;;  %7598 = vmatprep.subr.mxu1 %v8122_v0 }
 0xa73   :  { %7569 = vmatprep.subr.mxu0 %v8122_v0  ;;  %7571 = vmatprep.mubr.msk.f32.mxu0 %vm8123_vm0, %v8122_v0 }
 0xa74   :  { %7570 = vmatpush3.msra.mxu0 %v8762_v42  ;;  %7599 = vmatpush3.msra.mxu1 %v8750_v39 }
 0xa75   :  { %7572 = vmatmul.mubr.msk.f32.vlgmr.msra.gmra.mxu0 %vm213_vm1, %v8989_v57  ;;  %7585 = vmatprep.subr.mxu0 %v8122_v0  ;;  %v9288_v57 = vld [vmem:[#allocation10 + $0x10] sm:$0xff] }
 0xa76   :  { %7600 = vmatprep.subr.mxu1 %v8122_v0  ;;  %7586 = vmatpush3.msra.mxu0 %v8782_v26 }
 0xa77   :  { %7601 = vmatpush3.msra.mxu1 %v8756_v41  ;;  %7587 = vmatprep.subr.mxu0 %v8122_v0 }
 0xa78   :  { %7602 = vmatprep.subr.mxu1 %v8122_v0  ;;  %7588 = vmatpush3.msra.mxu0 %v8789_v59 }
 0xa79   :  { %7603 = vmatpush3.msra.mxu1 %v8764_v43  ;;  %7604 = vmatprep.mubr.msk.f32.mxu1 %vm8123_vm0, %v8122_v0 }
 0xa7a   :  { %7589 = vmatprep.subr.mxu0 %v8122_v0  ;;  %7605 = vmatmul.mubr.msk.f32.vlgmr.msra.gmra.mxu1 %vm213_vm1, %v8948_v51 }
 0xa7b   :  { %7590 = vmatpush3.msra.mxu0 %v8797_v61  ;;  %7593 = vmatprep.mubr.msk.f32.mxu0 %vm8123_vm0, %v8122_v0 }
 0xa7c   :  { %7591 = vmatprep.subr.mxu0 %v8122_v0  ;;  %7618 = vmatprep.subr.mxu1 %v8122_v0 }
 0xa7d   :  { %7592 = vmatpush3.msra.mxu0 %v8803_v62  ;;  %7619 = vmatpush3.msra.mxu1 %v8780_v25 }
 0xa7e   :  { %7594 = vmatmul.mubr.msk.f32.vlgmr.msra.gmra.mxu0 %vm213_vm1, %v8964_v55  ;;  %7620 = vmatprep.subr.mxu1 %v8122_v0  ;;  %v9282_v55 = vld [vmem:[#allocation10 + $0x18] sm:$0xff] }
 0xa7f   :  { %7621 = vmatpush3.msra.mxu1 %v8785_v58  ;;  %7607 = vmatprep.subr.mxu0 %v8122_v0 }
 0xa80   :  { %7622 = vmatprep.subr.mxu1 %v8122_v0  ;;  %7608 = vmatpush3.msra.mxu0 %v8814_v10 }
 0xa81   :  { %7623 = vmatpush3.msra.mxu1 %v8793_v60  ;;  %7609 = vmatprep.subr.mxu0 %v8122_v0 }
 0xa82   :  { %7624 = vmatprep.subr.mxu1 %v8122_v0  ;;  %7610 = vmatpush3.msra.mxu0 %v8821_v19 }
 0xa83   :  { %7625 = vmatpush3.msra.mxu1 %v8805_v63  ;;  %7611 = vmatprep.subr.mxu0 %v8122_v0 }
 0xa84   :  { %7626 = vmatprep.mubr.msk.f32.mxu1 %vm8123_vm0, %v8122_v0  ;;  %7640 = vmatprep.subr.mxu1 %v8122_v0 }
 0xa85   :  { %7612 = vmatpush3.msra.mxu0 %v8827_v20  ;;  %7615 = vmatprep.mubr.msk.f32.mxu0 %vm8123_vm0, %v8122_v0 }
 0xa86   :  { %7613 = vmatprep.subr.mxu0 %v8122_v0 }
 0xa87   :  { %7614 = vmatpush3.msra.mxu0 %v8833_v21 }
 0xa88   :  { %7629 = vmatprep.subr.mxu0 %v8122_v0 }
 0xb27   :  { %v4888_v30 = vpop.f32.mrf.mxu1 }
 0xb28   :  { %v4892_v36 = vadd.f32 %v4888_v30, %v4743_v29  ;;  %v7886_v29 = vld [vmem:[#allocation16 + $0x10] sm:$0xff] }
 0xb29   :  { %v7562_v37 = vpop.f32.mrf.mxu1  ;;  %v7887_v30 = vld [vmem:[#allocation2] sm:$0x3] }
 0xb2a   :  { %7847 = vtanh.f32 %v4892_v36  ;;  %v7888_v36 = vld [vmem:[#allocation16 + $0x8] sm:$0xff]  ;;  %v7889_v37 = vld [vmem:[#allocation16] sm:$0xff] }
 0xb2d   :  { %v4813_v39 = vpop.f32.mrf.mxu0 }
 0xb2e   :  { %v4817_v40 = vadd.f32 %v4813_v39, %v4602_v38  ;;  %v7890_v38 = vld [vmem:[#allocation3] sm:$0x3]  ;;  %v7891_v39 = vld [vmem:[#allocation13 + $0x18] sm:$0xff] }
 0xb2f   :  { %v7551_v41 = vpop.f32.mrf.mxu0  ;;  %v5032_v42 = vpop.f32.mrf.mxu1 }
 0xb30   :  { %7849 = vtanh.f32 %v4817_v40  ;;  %v7892_v40 = vld [vmem:[#allocation13 + $0x10] sm:$0xff]  ;;  %v7893_v41 = vld [vmem:[#allocation13 + $0x8] sm:$0xff] }
 0xb31   :  { %v7584_v43 = vpop.f32.mrf.mxu1 }
 0xb32   :  { %v7895_v43 = vld [vmem:[%s9538_s14] ss:$0 sm:$0xff] }
 0xb35   :  { %v4962_v25 = vpop.f32.mrf.mxu0 }
 0xb36   :  { %v9274_v58 = vadd.f32 %v5032_v42, %v4962_v25  ;;  %v7894_v42 = vld [vmem:[#allocation13] sm:$0xff] }
 0xb37   :  { %v7848_v60 = vpop.eup %7847  ;;  %v7573_v63 = vpop.f32.mrf.mxu0 }
 0xb38   :  { %v9279_v51 = vmax.f32 %v4461_v8, %v7848_v60  ;;  %7627 = vmatmul.mubr.msk.f32.vlgmr.msra.gmra.mxu1 %vm213_vm1, %v7848_v60 }
 0xb39   :  { %7641 = vmatpush3.msra.mxu1 %v9282_v55  ;;  %7648 = vmatprep.mubr.msk.f32.mxu1 %vm8123_vm0, %v8122_v0 }
 0xb3a   :  { %v5173_v56 = vpop.f32.mrf.mxu1  ;;  %7642 = vmatprep.subr.mxu1 %v8122_v0 }
 0xb3b   :  { %7643 = vmatpush3.msra.mxu1 %v9288_v57 }
 0xb3c   :  { %v7606_v15 = vpop.f32.mrf.mxu1  ;;  %7644 = vmatprep.subr.mxu1 %v8122_v0 }
 0xb3d   :  { %v7850_v31 = vpop.eup %7849  ;;  %7645 = vmatpush3.msra.mxu1 %v9292_v44 }
 0xb3e   :  { %v9298_v16 = vmax.f32 %v4460_v14, %v7850_v31  ;;  %v5103_v32 = vpop.f32.mrf.mxu0  ;;  %7616 = vmatmul.mubr.msk.f32.vlgmr.msra.gmra.mxu0 %vm213_vm1, %v7850_v31  ;;  %7646 = vmatprep.subr.mxu1 %v8122_v0 }
 0xb3f   :  { %v9302_v35 = vadd.f32 %v5173_v56, %v5103_v32  ;;  %7630 = vmatpush3.msra.mxu0 %v9304_v46  ;;  %7647 = vmatpush3.msra.mxu1 %v9307_v52 }
 0xb40   :  { %v7595_v50 = vpop.f32.mrf.mxu0  ;;  %7631 = vmatprep.subr.mxu0 %v8122_v0  ;;  %7649 = vmatmul.mubr.msk.f32.vlgmr.msra.gmra.mxu1 %vm213_vm1, %v8875_v24  ;;  %v9328_v24 = vld [vmem:[#allocation12] sm:$0xff] }
 0xb41   :  { %7632 = vmatpush3.msra.mxu0 %v9313_v34  ;;  %7662 = vmatprep.subr.mxu1 %v8122_v0 }
 0xb42   :  { %7633 = vmatprep.subr.mxu0 %v8122_v0  ;;  %7663 = vmatpush3.msra.mxu1 %v9318_v33 }
 0xb43   :  { %7634 = vmatpush3.msra.mxu0 %v9321_v45  ;;  %7664 = vmatprep.subr.mxu1 %v8122_v0 }
 0xb44   :  { %7635 = vmatprep.subr.mxu0 %v8122_v0  ;;  %7637 = vmatprep.mubr.msk.f32.mxu0 %vm8123_vm0, %v8122_v0 }
 0xb45   :  { %7636 = vmatpush3.msra.mxu0 %v9328_v24  ;;  %7665 = vmatpush3.msra.mxu1 %v9331_v47 }
 0xb46   :  { %7638 = vmatmul.mubr.msk.f32.vlgmr.msra.gmra.mxu0 %vm213_vm1, %v8894_v1  ;;  %7651 = vmatprep.subr.mxu0 %v8122_v0  ;;  %v5036_v1 = vadd.f32 %v8925_v18, %v9274_v58 }
 0xb47   :  { %7666 = vmatprep.subr.mxu1 %v8122_v0  ;;  %7652 = vmatpush3.msra.mxu0 %v8782_v26  ;;  %v9359_v26 = vld [vmem:[#allocation18 + $0x18] sm:$0xff] }
 0xb48   :  { %7667 = vmatpush3.msra.mxu1 %v9339_v48  ;;  %7653 = vmatprep.subr.mxu0 %v8122_v0 }
 0xb49   :  { %7668 = vmatprep.subr.mxu1 %v8122_v0  ;;  %7654 = vmatpush3.msra.mxu0 %v8789_v59  ;;  %v9365_v59 = vld [vmem:[#allocation18 + $0x10] sm:$0xff] }
 0xb4a   :  { %7669 = vmatpush3.msra.mxu1 %v9345_v49  ;;  %7670 = vmatprep.mubr.msk.f32.mxu1 %vm8123_vm0, %v8122_v0 }
 0xb4b   :  { %7655 = vmatprep.subr.mxu0 %v8122_v0  ;;  %7671 = vmatmul.mubr.msk.f32.vlgmr.msra.gmra.mxu1 %vm213_vm1, %v8847_v22 }
 0xb4c   :  { %7656 = vmatpush3.msra.mxu0 %v8797_v61  ;;  %7659 = vmatprep.mubr.msk.f32.mxu0 %vm8123_vm0, %v8122_v0  ;;  %v9371_v61 = vld [vmem:[#allocation18 + $0x8] sm:$0xff] }
 0xb4d   :  { %7657 = vmatprep.subr.mxu0 %v8122_v0  ;;  %7684 = vmatprep.subr.mxu1 %v8122_v0 }
 0xb4e   :  { %7658 = vmatpush3.msra.mxu0 %v8803_v62  ;;  %7685 = vmatpush3.msra.mxu1 %v9359_v26  ;;  %v9377_v62 = vld [vmem:[#allocation18] sm:$0xff] }
 0xb4f   :  { %7660 = vmatmul.mubr.msk.f32.vlgmr.msra.gmra.mxu0 %vm213_vm1, %v8869_v23  ;;  %7686 = vmatprep.subr.mxu1 %v8122_v0 }
 0xb50   :  { %7687 = vmatpush3.msra.mxu1 %v9365_v59  ;;  %7673 = vmatprep.subr.mxu0 %v8122_v0 }
 0xb51   :  { %7688 = vmatprep.subr.mxu1 %v8122_v0  ;;  %7674 = vmatpush3.msra.mxu0 %v8814_v10  ;;  %v5177_v10 = vadd.f32 %v8918_v7, %v9302_v35 }
 0xb52   :  { %7689 = vmatpush3.msra.mxu1 %v9371_v61  ;;  %7675 = vmatprep.subr.mxu0 %v8122_v0 }
 0xb53   :  { %7690 = vmatprep.subr.mxu1 %v8122_v0  ;;  %7676 = vmatpush3.msra.mxu0 %v8821_v19 }
 0xb54   :  { %7691 = vmatpush3.msra.mxu1 %v9377_v62  ;;  %7677 = vmatprep.subr.mxu0 %v8122_v0 }
 0xb55   :  { %7692 = vmatprep.mubr.msk.f32.mxu1 %vm8123_vm0, %v8122_v0  ;;  %7706 = vmatprep.subr.mxu1 %v8122_v0 }
 0xb56   :  { %7678 = vmatpush3.msra.mxu0 %v8827_v20  ;;  %7681 = vmatprep.mubr.msk.f32.mxu0 %vm8123_vm0, %v8122_v0 }
 0xb57   :  { %7679 = vmatprep.subr.mxu0 %v8122_v0 }
 0xb58   :  { %7680 = vmatpush3.msra.mxu0 %v8833_v21 }
 0xb59   :  { %7695 = vmatprep.subr.mxu0 %v8122_v0 }
 0xbf8   :  { %v5322_v19 = vpop.f32.mrf.mxu1 }
 0xbf9   :  { %v5326_v22 = vadd.f32 %v5322_v19, %v5177_v10  ;;  %v6202_v10 = vld [vmem:[%s9540_s16] sm:$0xff]  ;;  %v6199_v19 = vld [vmem:[%s9539_s15 + $0x8] sm:$0xff] }
 0xbfa   :  { %v7628_v23 = vpop.f32.mrf.mxu1 }
 0xbfb   :  { %7851 = vtanh.f32 %v5326_v22  ;;  %v6198_v22 = vld [vmem:[%s9539_s15] sm:$0xff] }
 0xbfe   :  { %v5247_v20 = vpop.f32.mrf.mxu0 }
 0xbff   :  { %v5251_v53 = vadd.f32 %v5247_v20, %v5036_v1 }
 0xc00   :  { %v7617_v54 = vpop.f32.mrf.mxu0  ;;  %v5466_v9 = vpop.f32.mrf.mxu1 }
 0xc01   :  { %7853 = vtanh.f32 %v5251_v53 }
 0xc02   :  { %v7650_v2 = vpop.f32.mrf.mxu1 }
 0xc06   :  { %v5396_v3 = vpop.f32.mrf.mxu0 }
 0xc07   :  { %v9394_v21 = vadd.f32 %v5466_v9, %v5396_v3 }
 0xc08   :  { %v9396_v4 = vpop.eup %7851  ;;  %v7639_v5 = vpop.f32.mrf.mxu0 }
 0xc09   :  { %v5329_v7 = vmax.f32 %v9279_v51, %v9396_v4  ;;  %7693 = vmatmul.mubr.msk.f32.vlgmr.msra.gmra.mxu1 %vm213_vm1, %v9396_v4  ;;  %v6205_v51 = vld [vmem:[%s9540_s16 + $0x18] sm:$0xff] }
 0xc0a   :  { %7707 = vmatpush3.msra.mxu1 %v9282_v55  ;;  %7714 = vmatprep.mubr.msk.f32.mxu1 %vm8123_vm0, %v8122_v0  ;;  %v7896_v55 = vld [vmem:[%s9534_s10] ss:$0 sm:$0xff] }
 0xc0b   :  { %v5607_v18 = vpop.f32.mrf.mxu1  ;;  %7708 = vmatprep.subr.mxu1 %v8122_v0  ;;  %v5470_v56 = vadd.f32 %v7896_v55, %v9394_v21 }
 0xc0c   :  { %7709 = vmatpush3.msra.mxu1 %v9288_v57 }
 0xc0d   :  { %v7672_v6 = vpop.f32.mrf.mxu1  ;;  %7710 = vmatprep.subr.mxu1 %v8122_v0 }
 0xc0e   :  { %v9408_v8 = vpop.eup %7853  ;;  %7711 = vmatpush3.msra.mxu1 %v9292_v44 }
 0xc0f   :  { %v5328_v11 = vmax.f32 %v9298_v16, %v9408_v8  ;;  %v5537_v12 = vpop.f32.mrf.mxu0  ;;  %7682 = vmatmul.mubr.msk.f32.vlgmr.msra.gmra.mxu0 %vm213_vm1, %v9408_v8  ;;  %7712 = vmatprep.subr.mxu1 %v8122_v0  ;;  %v6200_v16 = vld [vmem:[%s9539_s15 + $0x10] sm:$0xff]  ;;  %v6469_v8 = vld [vmem:[%s9541_s17] ss:$0 sm:$0xff] }
 0xc10   :  { %v9416_v13 = vadd.f32 %v5607_v18, %v5537_v12  ;;  %7696 = vmatpush3.msra.mxu0 %v9304_v46  ;;  %7713 = vmatpush3.msra.mxu1 %v9307_v52 }
 0xc11   :  { %v7661_v14 = vpop.f32.mrf.mxu0  ;;  %7697 = vmatprep.subr.mxu0 %v8122_v0  ;;  %7715 = vmatmul.mubr.msk.f32.vlgmr.msra.gmra.mxu1 %vm213_vm1, %v7883_v17 }
 0xc12   :  { %7698 = vmatpush3.msra.mxu0 %v9313_v34  ;;  %7728 = vmatprep.subr.mxu1 %v8122_v0  ;;  %v5611_v25 = vadd.f32 %v7895_v43, %v9416_v13 }
 0xc13   :  { %7699 = vmatprep.subr.mxu0 %v8122_v0  ;;  %7729 = vmatpush3.msra.mxu1 %v9318_v33 }
 0xc14   :  { %7700 = vmatpush3.msra.mxu0 %v9321_v45  ;;  %7730 = vmatprep.subr.mxu1 %v8122_v0 }
 0xc15   :  { %7701 = vmatprep.subr.mxu0 %v8122_v0  ;;  %7703 = vmatprep.mubr.msk.f32.mxu0 %vm8123_vm0, %v8122_v0 }
 0xc16   :  { %7702 = vmatpush3.msra.mxu0 %v9328_v24  ;;  %7731 = vmatpush3.msra.mxu1 %v9331_v47 }
 0xc17   :  { %7704 = vmatmul.mubr.msk.f32.vlgmr.msra.gmra.mxu0 %vm213_vm1, %v7884_v27  ;;  %7717 = vmatprep.subr.mxu0 %v8122_v0 }
 0xc18   :  { %7732 = vmatprep.subr.mxu1 %v8122_v0  ;;  %7718 = vmatpush3.msra.mxu0 %v7885_v28 }
 0xc19   :  { %7733 = vmatpush3.msra.mxu1 %v9339_v48  ;;  %7719 = vmatprep.subr.mxu0 %v8122_v0 }
 0xc1a   :  { %7734 = vmatprep.subr.mxu1 %v8122_v0  ;;  %7720 = vmatpush3.msra.mxu0 %v7886_v29 }
 0xc1b   :  { %7735 = vmatpush3.msra.mxu1 %v9345_v49  ;;  %7736 = vmatprep.mubr.msk.f32.mxu1 %vm8123_vm0, %v8122_v0 }
 0xc1c   :  { %7721 = vmatprep.subr.mxu0 %v8122_v0  ;;  %7737 = vmatmul.mubr.msk.f32.vlgmr.msra.gmra.mxu1 %vm213_vm1, %v7887_v30 }
 0xc1d   :  { %7722 = vmatpush3.msra.mxu0 %v7888_v36  ;;  %7725 = vmatprep.mubr.msk.f32.mxu0 %vm8123_vm0, %v8122_v0 }
 0xc1e   :  { %7723 = vmatprep.subr.mxu0 %v8122_v0  ;;  %7750 = vmatprep.subr.mxu1 %v8122_v0 }
 0xc1f   :  { %7724 = vmatpush3.msra.mxu0 %v7889_v37  ;;  %7751 = vmatpush3.msra.mxu1 %v9359_v26 }
 0xc20   :  { %7726 = vmatmul.mubr.msk.f32.vlgmr.msra.gmra.mxu0 %vm213_vm1, %v7890_v38  ;;  %7752 = vmatprep.subr.mxu1 %v8122_v0 }
 0xc21   :  { %7753 = vmatpush3.msra.mxu1 %v9365_v59  ;;  %7739 = vmatprep.subr.mxu0 %v8122_v0  ;;  %v6204_v59 = vld [vmem:[%s9540_s16 + $0x10] sm:$0xff] }
 0xc22   :  { %7754 = vmatprep.subr.mxu1 %v8122_v0  ;;  %7740 = vmatpush3.msra.mxu0 %v7891_v39 }
 0xc23   :  { %7755 = vmatpush3.msra.mxu1 %v9371_v61  ;;  %7741 = vmatprep.subr.mxu0 %v8122_v0  ;;  %v6201_v61 = vld [vmem:[%s9539_s15 + $0x18] sm:$0xff] }
 0xc24   :  { %7756 = vmatprep.subr.mxu1 %v8122_v0  ;;  %7742 = vmatpush3.msra.mxu0 %v7892_v40 }
 0xc25   :  { %7757 = vmatpush3.msra.mxu1 %v9377_v62  ;;  %7758 = vmatprep.mubr.msk.f32.mxu1 %vm8123_vm0, %v8122_v0  ;;  %v6203_v62 = vld [vmem:[%s9540_s16 + $0x8] sm:$0xff] }
 0xc26   :  { %7743 = vmatprep.subr.mxu0 %v8122_v0  ;;  %7747 = vmatprep.mubr.msk.f32.mxu0 %vm8123_vm0, %v8122_v0 }
 0xc27   :  { %7744 = vmatpush3.msra.mxu0 %v7893_v41  ;;  %7772 = vmatprep.subr.mxu1 %v8122_v0 }
 0xc28   :  { %7745 = vmatprep.subr.mxu0 %v8122_v0 }
 0xc29   :  { %7746 = vmatpush3.msra.mxu0 %v7894_v42 }
 0xc2a   :  { %7761 = vmatprep.subr.mxu0 %v8122_v0 }
 0xcc9   :  { %v5756_v58 = vpop.f32.mrf.mxu1 }
 0xcca   :  { %v5760_v60 = vadd.f32 %v5756_v58, %v5611_v25 }
 0xccb   :  { %v7694_v63 = vpop.f32.mrf.mxu1 }
 0xccc   :  { %7855 = vtanh.f32 %v5760_v60 }
 0xccf   :  { %v5681_v57 = vpop.f32.mrf.mxu0 }
 0xcd0   :  { %v5685_v15 = vadd.f32 %v5681_v57, %v5470_v56 }
 0xcd1   :  { %v7683_v31 = vpop.f32.mrf.mxu0  ;;  %v5900_v44 = vpop.f32.mrf.mxu1 }
 0xcd2   :  { %7857 = vtanh.f32 %v5685_v15 }
 0xcd3   :  { %v7716_v32 = vpop.f32.mrf.mxu1 }
 0xcd7   :  { %v5830_v35 = vpop.f32.mrf.mxu0 }
 0xcd8   :  { %v5901_v46 = vadd.f32 %v5900_v44, %v5830_v35 }
 0xcd9   :  { %v7856_v52 = vpop.eup %7855  ;;  %v7705_v50 = vpop.f32.mrf.mxu0 }
 0xcda   :  { %7759 = vmatmul.mubr.msk.f32.vlgmr.msra.gmra.mxu1 %vm213_vm1, %v7856_v52  ;;  %v5763_v34 = vmax.f32 %v5329_v7, %v7856_v52  ;;  %v5904_v54 = vadd.f32 %v7896_v55, %v5901_v46 }
 0xcdb   :  { %7780 = vmatprep.mubr.msk.f32.mxu1 %vm8123_vm0, %v8122_v0  ;;  %7773 = vmatpush3.msra.mxu1 %v6201_v61 }
 0xcdc   :  { %v6041_v33 = vpop.f32.mrf.mxu1  ;;  %7774 = vmatprep.subr.mxu1 %v8122_v0 }
 0xcdd   :  { %7775 = vmatpush3.msra.mxu1 %v6200_v16 }
 0xcde   :  { %v7738_v45 = vpop.f32.mrf.mxu1  ;;  %7776 = vmatprep.subr.mxu1 %v8122_v0 }
 0xcdf   :  { %v7858_v24 = vpop.eup %7857  ;;  %7777 = vmatpush3.msra.mxu1 %v6199_v19 }
 0xce0   :  { %v5971_v47 = vpop.f32.mrf.mxu0  ;;  %7748 = vmatmul.mubr.msk.f32.vlgmr.msra.gmra.mxu0 %vm213_vm1, %v7858_v24  ;;  %v5762_v48 = vmax.f32 %v5328_v11, %v7858_v24  ;;  %7778 = vmatprep.subr.mxu1 %v8122_v0 }
 0xce1   :  { %v6042_v49 = vadd.f32 %v6041_v33, %v5971_v47  ;;  %7769 = vmatprep.mubr.msk.f32.mxu0 %vm8123_vm0, %v8122_v0  ;;  %7762 = vmatpush3.msra.mxu0 %v6205_v51 }
 0xce2   :  { %v7727_v26 = vpop.f32.mrf.mxu0  ;;  %7763 = vmatprep.subr.mxu0 %v8122_v0  ;;  %7779 = vmatpush3.msra.mxu1 %v6198_v22 }
 0xce3   :  { %7764 = vmatpush3.msra.mxu0 %v6204_v59  ;;  %v6045_v23 = vadd.f32 %v7895_v43, %v6042_v49 }
 0xce4   :  { %7765 = vmatprep.subr.mxu0 %v8122_v0 }
 0xce5   :  { %7766 = vmatpush3.msra.mxu0 %v6203_v62 }
 0xce6   :  { %7767 = vmatprep.subr.mxu0 %v8122_v0 }
 0xce7   :  { %7768 = vmatpush3.msra.mxu0 %v6202_v10 }
 0xd9a   :  { %v6190_v1 = vpop.f32.mrf.mxu1 }
 0xd9b   :  { %v6194_v20 = vadd.f32 %v6190_v1, %v6045_v23 }
 0xd9c   :  { %v7760_v53 = vpop.f32.mrf.mxu1 }
 0xd9d   :  { %7859 = vtanh.f32 %v6194_v20 }
 0xda0   :  { %v6115_v9 = vpop.f32.mrf.mxu0 }
 0xda1   :  { %v6119_v2 = vadd.f32 %v6115_v9, %v5904_v54 }
 0xda2   :  { %v7749_v3 = vpop.f32.mrf.mxu0 }
 0xda3   :  { %7861 = vtanh.f32 %v6119_v2 }
 0xdaa   :  { %v7860_v21 = vpop.eup %7859 }
 0xdab   :  { %v6197_v4 = vmax.f32 %v5763_v34, %v7860_v21 }
 0xdad   :  { %7770 = vmatmul.mubr.msk.f32.vlgmr.msra.gmra.mxu0 %vm213_vm1, %v6197_v4 }
 0xdb0   :  { %v7862_v5 = vpop.eup %7861 }
 0xdb1   :  { %v6196_v7 = vmax.f32 %v5762_v48, %v7862_v5 }
 0xdb3   :  { %7781 = vmatmul.mubr.msk.f32.vlgmr.msra.gmra.mxu1 %vm213_vm1, %v6196_v7 }
 0xe6d   :  { %v6275_v0 = vpop.f32.mrf.mxu0 }
 0xe6f   :  { %v7771_v18 = vpop.f32.mrf.mxu0 }
 0xe73   :  { %v6348_v6 = vpop.f32.mrf.mxu1 }
 0xe74   :  { %v6349_v11 = vadd.f32 %v6348_v6, %v6275_v0 }
 0xe75   :  { %v7782_v12 = vpop.f32.mrf.mxu1 }
 0xe76   :  { %v6359_v13 = vadd.f32 %v6469_v8, %v6349_v11 }
 0xe78   :  { %v6470_v14 = vmul.f32 -1.442695, %v6359_v13 }
 0xe7a   :  { %7863 = vpow2.f32 %v6470_v14 }
 0xe87   :  { %v7864_v17 = vpop.eup %7863 }
 0xe88   :  { %v6363_v27 = vadd.f32 1.0, %v7864_v17 }
 0xe8a   :  { %7865 = vrcp.f32 %v6363_v27 }
 0xe97   :  { %v7866_v28 = vpop.eup %7865 }
 0xe98   :  { %6367 = vst.msk [vmem:[#allocation19] sm:$0x3] %vm6366_vm3, %v7866_v28 }
 0xe99   :  { %8088 = shalt.err (!%p8085_p7)
}
 0xe9a   :  { %6377 = dma.vmem_to_hbm [thread:$0]  %s6375_s8, 32, %s9542_s18, [#allocation6]  }
 0xe9b   :  { %8107 = dma.done.wait [#allocation6], 32  }
 0xe9c   :  { %8108 = vsyncadd [#allocation6], 4294967264 }
 0xe9d   :  { %6381 = vsyncpa [#allocation5], 1 }
 0xe9e   :  { %6382 = vsyncpa [#allocation8], 1 }
 0xe9f   :  { %6383 = vsyncpa [#allocation11], 1 }
 0xea0   :  { %6384 = vsyncpa [#allocation14], 1 }
 0xea1   :  { %6385 = vsyncpa [#allocation17], 1 }
 0xea2   :  { %6386 = vsyncpa [#allocation6], 1 }

</bundles_post_ra>
